<compile_context>
chip_gen: v7x
topology: tpu7x:2x2x1
jax: 0.10.0
libtpu: 0.0.40
codegen_flags: <defaults>
</compile_context>

<pallas_src>
import functools

import jax
import jax.numpy as jnp
from jax.experimental import pallas as pl
from jax.experimental.pallas import tpu as pltpu

D_IN = 512
D_H = 1024
D_OUT = 512


def mlp_kernel(x_ref,
               w1_ref, b1_ref,
               w2_ref, b2_ref,
               w3_ref, b3_ref,
               w4_ref, b4_ref,
               o_ref):
    x = x_ref[...]  # bf16 [TB, 512]

    # Linear(512, 1024) + ReLU (bias add + ReLU fused on the f32 accumulator).
    h1 = jnp.dot(x, w1_ref[...], preferred_element_type=jnp.float32)
    h1 = jnp.maximum(h1 + b1_ref[...], 0.0).astype(jnp.bfloat16)

    # Linear(1024, 512)
    h2 = jnp.dot(h1, w2_ref[...], preferred_element_type=jnp.float32) + b2_ref[...]

    # Linear(512, 512)
    h3 = jnp.dot(h2.astype(jnp.bfloat16), w3_ref[...],
                 preferred_element_type=jnp.float32) + b3_ref[...]

    # Linear(512, 512)
    h4 = jnp.dot(h3.astype(jnp.bfloat16), w4_ref[...],
                 preferred_element_type=jnp.float32) + b4_ref[...]

    o_ref[...] = h4.astype(o_ref.dtype)


@functools.partial(jax.jit, static_argnames=("tb",))
def mlp_forward(x, params, *, tb=512):
    """x: [B, 512] float32 -> [B, 512] float32.

    params: ((w1,b1),(w2,b2),(w3,b3),(w4,b4)) with w_i shaped [in, out],
    b_i shaped [1, out]; cast to bf16 (weights) / f32 (biases) here.
    """
    (w1, b1), (w2, b2), (w3, b3), (w4, b4) = params
    B = x.shape[0]

    # Batch tile: full (sublane-padded) batch when small, else `tb`. Pad the
    # batch so the grid divides evenly; strip padding at the end.
    b8 = ((B + 7) // 8) * 8
    TB = min(tb, b8)
    b_pad = pl.cdiv(b8, TB) * TB
    if b_pad != B:
        x = jnp.pad(x, ((0, b_pad - B), (0, 0)))

    # bf16 activations/weights, f32 biases (added on the f32 accumulator).
    x = x.astype(jnp.bfloat16)
    w1, w2, w3, w4 = (w.astype(jnp.bfloat16) for w in (w1, w2, w3, w4))
    b1, b2, b3, b4 = (b.astype(jnp.float32) for b in (b1, b2, b3, b4))

    # Weights/biases: constant index_map -> DMA'd once, resident across grid.
    resident = lambda shape: pl.BlockSpec(shape, lambda i: tuple(0 for _ in shape))

    flops = 2 * b_pad * (D_IN * D_H + D_H * D_OUT + 2 * D_OUT * D_OUT)
    bytes_accessed = (
        b_pad * D_IN * 2                                       # x (bf16)
        + (D_IN * D_H + D_H * D_OUT + 2 * D_OUT * D_OUT) * 2   # weights (bf16)
        + (D_H + 3 * D_OUT) * 4                                # biases (f32)
        + b_pad * D_OUT * 4                                    # out (f32)
    )

    out = pl.pallas_call(
        mlp_kernel,
        out_shape=jax.ShapeDtypeStruct((b_pad, D_OUT), jnp.float32),
        grid=(b_pad // TB,),
        in_specs=[
            pl.BlockSpec((TB, D_IN), lambda i: (i, 0)),
            resident((D_IN, D_H)), resident((1, D_H)),
            resident((D_H, D_OUT)), resident((1, D_OUT)),
            resident((D_OUT, D_OUT)), resident((1, D_OUT)),
            resident((D_OUT, D_OUT)), resident((1, D_OUT)),
        ],
        out_specs=pl.BlockSpec((TB, D_OUT), lambda i: (i, 0)),
        compiler_params=pltpu.CompilerParams(
            dimension_semantics=("parallel",),
            vmem_limit_bytes=32 << 20,
        ),
        cost_estimate=pl.CostEstimate(
            flops=flops, bytes_accessed=bytes_accessed, transcendentals=0),
    )(x, w1, b1, w2, b2, w3, b3, w4, b4)

    return out[:B]


def init_params(key):
    """Deterministic init matching nn.Linear shapes; weights stored as [in, out]."""
    def linear(key, fan_in, fan_out):
        kw, kb = jax.random.split(key)
        bound = 1.0 / (fan_in ** 0.5)
        w = jax.random.uniform(kw, (fan_in, fan_out), jnp.float32, -bound, bound)
        b = jax.random.uniform(kb, (1, fan_out), jnp.float32, -bound, bound)
        return w, b

    k1, k2, k3, k4 = jax.random.split(key, 4)
    return (
        linear(k1, D_IN, D_H),
        linear(k2, D_H, D_OUT),
        linear(k3, D_OUT, D_OUT),
        linear(k4, D_OUT, D_OUT),
    )


def mlp_reference(x, params):
    (w1, b1), (w2, b2), (w3, b3), (w4, b4) = params
    h = jnp.maximum(x @ w1 + b1, 0.0)
    h = h @ w2 + b2
    h = h @ w3 + b3
    h = h @ w4 + b4
    return h


if __name__ == "__main__":
    key = jax.random.PRNGKey(0)
    k_x, k_p = jax.random.split(key)

    B = 8
    x = jax.random.normal(k_x, (B, D_IN), jnp.float32)
    params = init_params(k_p)

    out = mlp_forward(x, params)
    out = jax.block_until_ready(out)

    ref = mlp_reference(x, params)
    assert out.shape == (B, D_OUT)

    # bf16 weights/activations with f32 accumulation -> loose tolerance vs f32 ref.
    rel_err = jnp.max(jnp.abs(out - ref)) / (jnp.max(jnp.abs(ref)) + 1e-6)
    assert rel_err < 5e-2, f"mismatch vs reference: rel_err={rel_err}"

    print("KERNEL_OK")
</pallas_src>

<mosaic_0001>
module attributes {stable_mosaic.version = 11 : i64} {
  func.func @mlp_kernel(%arg0: i32, %arg1: memref<8x512xbf16, #tpu.memory_space<vmem>>, %arg2: memref<512x1024xbf16, #tpu.memory_space<vmem>>, %arg3: memref<1x1024xf32, #tpu.memory_space<vmem>>, %arg4: memref<1024x512xbf16, #tpu.memory_space<vmem>>, %arg5: memref<1x512xf32, #tpu.memory_space<vmem>>, %arg6: memref<512x512xbf16, #tpu.memory_space<vmem>>, %arg7: memref<1x512xf32, #tpu.memory_space<vmem>>, %arg8: memref<512x512xbf16, #tpu.memory_space<vmem>>, %arg9: memref<1x512xf32, #tpu.memory_space<vmem>>, %arg10: memref<8x512xf32, #tpu.memory_space<vmem>>) attributes {dimension_semantics = [#tpu.dimension_semantics<parallel>], iteration_bounds = array<i64: 1>, scalar_prefetch = 0 : i64, scratch_operands = 0 : i64, tpu.core_type = #tpu.core_type<tc>, window_params = [{transform_indices = @transform_0, window_bounds = array<i64: 8, 512>}, {pipeline_mode = #tpu.pipeline_mode<synchronous>, transform_indices = @transform_1, window_bounds = array<i64: 512, 1024>}, {pipeline_mode = #tpu.pipeline_mode<synchronous>, transform_indices = @transform_2, window_bounds = array<i64: 1, 1024>}, {pipeline_mode = #tpu.pipeline_mode<synchronous>, transform_indices = @transform_3, window_bounds = array<i64: 1024, 512>}, {pipeline_mode = #tpu.pipeline_mode<synchronous>, transform_indices = @transform_4, window_bounds = array<i64: 1, 512>}, {pipeline_mode = #tpu.pipeline_mode<synchronous>, transform_indices = @transform_5, window_bounds = array<i64: 512, 512>}, {pipeline_mode = #tpu.pipeline_mode<synchronous>, transform_indices = @transform_6, window_bounds = array<i64: 1, 512>}, {pipeline_mode = #tpu.pipeline_mode<synchronous>, transform_indices = @transform_7, window_bounds = array<i64: 512, 512>}, {pipeline_mode = #tpu.pipeline_mode<synchronous>, transform_indices = @transform_8, window_bounds = array<i64: 1, 512>}, {transform_indices = @transform_9, window_bounds = array<i64: 8, 512>}]} {
    %c0 = arith.constant 0 : index
    %c0_0 = arith.constant 0 : index
    %0 = vector.load %arg1[%c0, %c0_0] : memref<8x512xbf16, #tpu.memory_space<vmem>>, vector<8x512xbf16>
    %c0_1 = arith.constant 0 : index
    %c0_2 = arith.constant 0 : index
    %1 = vector.load %arg2[%c0_1, %c0_2] : memref<512x1024xbf16, #tpu.memory_space<vmem>>, vector<512x1024xbf16>
    %cst = arith.constant dense<0.000000e+00> : vector<8x1024xf32>
    %2 = tpu.matmul %0, %1, %cst {dimension_numbers = #tpu.dot_dimension_numbers<[1], [0], [0], [1], [0, 0, 1, 1], [], []>} : vector<8x512xbf16>, vector<512x1024xbf16>, vector<8x1024xf32> -> vector<8x1024xf32>
    %c0_3 = arith.constant 0 : index
    %c0_4 = arith.constant 0 : index
    %3 = vector.load %arg3[%c0_3, %c0_4] : memref<1x1024xf32, #tpu.memory_space<vmem>>, vector<1x1024xf32>
    %4 = vector.broadcast %3 : vector<1x1024xf32> to vector<8x1024xf32>
    %5 = arith.addf %2, %4 : vector<8x1024xf32>
    %cst_5 = arith.constant 0.000000e+00 : f32
    %6 = vector.broadcast %cst_5 : f32 to vector<8x1024xf32>
    %7 = arith.maximumf %5, %6 : vector<8x1024xf32>
    %8 = arith.truncf %7 : vector<8x1024xf32> to vector<8x1024xbf16>
    %c0_6 = arith.constant 0 : index
    %c0_7 = arith.constant 0 : index
    %9 = vector.load %arg4[%c0_6, %c0_7] : memref<1024x512xbf16, #tpu.memory_space<vmem>>, vector<1024x512xbf16>
    %cst_8 = arith.constant dense<0.000000e+00> : vector<8x512xf32>
    %10 = tpu.matmul %8, %9, %cst_8 {dimension_numbers = #tpu.dot_dimension_numbers<[1], [0], [0], [1], [0, 0, 1, 1], [], []>} : vector<8x1024xbf16>, vector<1024x512xbf16>, vector<8x512xf32> -> vector<8x512xf32>
    %c0_9 = arith.constant 0 : index
    %c0_10 = arith.constant 0 : index
    %11 = vector.load %arg5[%c0_9, %c0_10] : memref<1x512xf32, #tpu.memory_space<vmem>>, vector<1x512xf32>
    %12 = vector.broadcast %11 : vector<1x512xf32> to vector<8x512xf32>
    %13 = arith.addf %10, %12 : vector<8x512xf32>
    %14 = arith.truncf %13 : vector<8x512xf32> to vector<8x512xbf16>
    %c0_11 = arith.constant 0 : index
    %c0_12 = arith.constant 0 : index
    %15 = vector.load %arg6[%c0_11, %c0_12] : memref<512x512xbf16, #tpu.memory_space<vmem>>, vector<512x512xbf16>
    %cst_13 = arith.constant dense<0.000000e+00> : vector<8x512xf32>
    %16 = tpu.matmul %14, %15, %cst_13 {dimension_numbers = #tpu.dot_dimension_numbers<[1], [0], [0], [1], [0, 0, 1, 1], [], []>} : vector<8x512xbf16>, vector<512x512xbf16>, vector<8x512xf32> -> vector<8x512xf32>
    %c0_14 = arith.constant 0 : index
    %c0_15 = arith.constant 0 : index
    %17 = vector.load %arg7[%c0_14, %c0_15] : memref<1x512xf32, #tpu.memory_space<vmem>>, vector<1x512xf32>
    %18 = vector.broadcast %17 : vector<1x512xf32> to vector<8x512xf32>
    %19 = arith.addf %16, %18 : vector<8x512xf32>
    %20 = arith.truncf %19 : vector<8x512xf32> to vector<8x512xbf16>
    %c0_16 = arith.constant 0 : index
    %c0_17 = arith.constant 0 : index
    %21 = vector.load %arg8[%c0_16, %c0_17] : memref<512x512xbf16, #tpu.memory_space<vmem>>, vector<512x512xbf16>
    %cst_18 = arith.constant dense<0.000000e+00> : vector<8x512xf32>
    %22 = tpu.matmul %20, %21, %cst_18 {dimension_numbers = #tpu.dot_dimension_numbers<[1], [0], [0], [1], [0, 0, 1, 1], [], []>} : vector<8x512xbf16>, vector<512x512xbf16>, vector<8x512xf32> -> vector<8x512xf32>
    %c0_19 = arith.constant 0 : index
    %c0_20 = arith.constant 0 : index
    %23 = vector.load %arg9[%c0_19, %c0_20] : memref<1x512xf32, #tpu.memory_space<vmem>>, vector<1x512xf32>
    %24 = vector.broadcast %23 : vector<1x512xf32> to vector<8x512xf32>
    %25 = arith.addf %22, %24 : vector<8x512xf32>
    %c0_21 = arith.constant 0 : index
    %c0_22 = arith.constant 0 : index
    %26 = vector.load %arg10[%c0_21, %c0_22] : memref<8x512xf32, #tpu.memory_space<vmem>>, vector<8x512xf32>
    tpu.vector_store %arg10[%c0_21, %c0_22], %25 {strides = array<i32>} : memref<8x512xf32, #tpu.memory_space<vmem>>, vector<8x512xf32>,
    return
  }
  func.func @transform_0(%arg0: i32) -> (i32, i32) {
    %c0_i32 = arith.constant 0 : i32
    %c0_i32_0 = arith.constant 0 : i32
    return %arg0, %c0_i32 : i32, i32
  }
  func.func @transform_1(%arg0: i32) -> (i32, i32) {
    %c0_i32 = arith.constant 0 : i32
    %c0_i32_0 = arith.constant 0 : i32
    %c0_i32_1 = arith.constant 0 : i32
    return %c0_i32, %c0_i32_0 : i32, i32
  }
  func.func @transform_2(%arg0: i32) -> (i32, i32) {
    %c0_i32 = arith.constant 0 : i32
    %c0_i32_0 = arith.constant 0 : i32
    %c0_i32_1 = arith.constant 0 : i32
    return %c0_i32, %c0_i32_0 : i32, i32
  }
  func.func @transform_3(%arg0: i32) -> (i32, i32) {
    %c0_i32 = arith.constant 0 : i32
    %c0_i32_0 = arith.constant 0 : i32
    %c0_i32_1 = arith.constant 0 : i32
    return %c0_i32, %c0_i32_0 : i32, i32
  }
  func.func @transform_4(%arg0: i32) -> (i32, i32) {
    %c0_i32 = arith.constant 0 : i32
    %c0_i32_0 = arith.constant 0 : i32
    %c0_i32_1 = arith.constant 0 : i32
    return %c0_i32, %c0_i32_0 : i32, i32
  }
  func.func @transform_5(%arg0: i32) -> (i32, i32) {
    %c0_i32 = arith.constant 0 : i32
    %c0_i32_0 = arith.constant 0 : i32
    %c0_i32_1 = arith.constant 0 : i32
    return %c0_i32, %c0_i32_0 : i32, i32
  }
  func.func @transform_6(%arg0: i32) -> (i32, i32) {
    %c0_i32 = arith.constant 0 : i32
    %c0_i32_0 = arith.constant 0 : i32
    %c0_i32_1 = arith.constant 0 : i32
    return %c0_i32, %c0_i32_0 : i32, i32
  }
  func.func @transform_7(%arg0: i32) -> (i32, i32) {
    %c0_i32 = arith.constant 0 : i32
    %c0_i32_0 = arith.constant 0 : i32
    %c0_i32_1 = arith.constant 0 : i32
    return %c0_i32, %c0_i32_0 : i32, i32
  }
  func.func @transform_8(%arg0: i32) -> (i32, i32) {
    %c0_i32 = arith.constant 0 : i32
    %c0_i32_0 = arith.constant 0 : i32
    %c0_i32_1 = arith.constant 0 : i32
    return %c0_i32, %c0_i32_0 : i32, i32
  }
  func.func @transform_9(%arg0: i32) -> (i32, i32) {
    %c0_i32 = arith.constant 0 : i32
    %c0_i32_0 = arith.constant 0 : i32
    return %arg0, %c0_i32 : i32, i32
  }
}

</mosaic_0001>

<bundles_post_ra>
// kernel: mlp_forward.1
= control target key start
LH: loop header
LB: loop body
LE: loop exit
PB: predicated region body
PF: predicated region fallthrough
CT: control target
= control target key end

     0   :  { %s9925_s0 = inlined_call_operand.vmem [shape: bf16[8,512], index: 0, kind: input, shape index: {}]   ;;  %s9926_s1 = inlined_call_operand.vmem [shape: bf16[512,1024], index: 1, kind: input, shape index: {}]   ;;  %s9927_s2 = inlined_call_operand.vmem [shape: f32[1,1024], index: 2, kind: input, shape index: {}]   ;;  %s9928_s3 = inlined_call_operand.vmem [shape: bf16[1024,512], index: 3, kind: input, shape index: {}]   ;;  %s9929_s4 = inlined_call_operand.vmem [shape: f32[1,512], index: 4, kind: input, shape index: {}]   ;;  %s9930_s5 = inlined_call_operand.vmem [shape: bf16[512,512], index: 5, kind: input, shape index: {}]   ;;  %s9931_s6 = inlined_call_operand.vmem [shape: f32[1,512], index: 6, kind: input, shape index: {}]   ;;  %s9932_s7 = inlined_call_operand.vmem [shape: bf16[512,512], index: 7, kind: input, shape index: {}]   ;;  %s9933_s8 = inlined_call_operand.vmem [shape: f32[1,512], index: 8, kind: input, shape index: {}]   ;;  %s9934_s9 = inlined_call_operand.hbm [shape: f32[8,512], index: 9, kind: output, shape index: {}]  }
   0x1   :  { %v35_v0 = vld [vmem:[%s9926_s1] sm:$0xff]  ;;  %v36_v2 = vld [vmem:[%s9926_s1 + $0x8] sm:$0xff] }
   0x2   :  { %v39_v1 = vld [vmem:[%s9926_s1 + $0x20] sm:$0xff]  ;;  %v40_v4 = vld [vmem:[%s9926_s1 + $0x28] sm:$0xff] }
   0x3   :  { %v5796_v3 = vcombine.high %v35_v0, %v39_v1  ;;  %v5795_v5 = vcombine.low %v35_v0, %v39_v1  ;;  %v43_v6 = vld [vmem:[%s9926_s1 + $0x40] sm:$0xff]  ;;  %v5798_v8 = vcombine.high %v36_v2, %v40_v4  ;;  %v5797_v9 = vcombine.low %v36_v2, %v40_v4  ;;  %v44_v11 = vld [vmem:[%s9926_s1 + $0x48] sm:$0xff] }
   0x4   :  { %v47_v7 = vld [vmem:[%s9926_s1 + $0x60] sm:$0xff]  ;;  %v48_v12 = vld [vmem:[%s9926_s1 + $0x68] sm:$0xff] }
   0x5   :  { %v5804_v10 = vcombine.high %v43_v6, %v47_v7  ;;  %v51_v13 = vld [vmem:[%s9926_s1 + $0x80] sm:$0xff]  ;;  %1627 = vmatprep.subr.bf16.mxu0 %v5796_v3  ;;  %v5806_v14 = vcombine.high %v44_v11, %v48_v12  ;;  %v52_v16 = vld [vmem:[%s9926_s1 + $0x88] sm:$0xff]  ;;  %1709 = vmatprep.subr.bf16.mxu1 %v5798_v8  ;;  %v5803_v18 = vcombine.low %v43_v6, %v47_v7 }
   0x6   :  { %v55_v15 = vld [vmem:[%s9926_s1 + $0xa0] sm:$0xff]  ;;  %v56_v17 = vld [vmem:[%s9926_s1 + $0xa8] sm:$0xff]  ;;  %1628 = vmatpush1.bf16.msra.mxu0 %v5795_v5  ;;  %1710 = vmatpush1.bf16.msra.mxu1 %v5797_v9  ;;  %v5805_v19 = vcombine.low %v44_v11, %v48_v12 }
   0x7   :  { %1629 = vmatprep.subr.bf16.mxu0 %v5804_v10  ;;  %v5812_v20 = vcombine.high %v51_v13, %v55_v15  ;;  %1711 = vmatprep.subr.bf16.mxu1 %v5806_v14  ;;  %v5814_v21 = vcombine.high %v52_v16, %v56_v17  ;;  %v59_v22 = vld [vmem:[%s9926_s1 + $0xc0] sm:$0xff]  ;;  %v60_v24 = vld [vmem:[%s9926_s1 + $0xc8] sm:$0xff]  ;;  %v5811_v26 = vcombine.low %v51_v13, %v55_v15 }
   0x8   :  { %v63_v23 = vld [vmem:[%s9926_s1 + $0xe0] sm:$0xff]  ;;  %v64_v25 = vld [vmem:[%s9926_s1 + $0xe8] sm:$0xff]  ;;  %v5813_v27 = vcombine.low %v52_v16, %v56_v17 }
   0x9   :  { %v5820_v28 = vcombine.high %v59_v22, %v63_v23  ;;  %v5822_v29 = vcombine.high %v60_v24, %v64_v25  ;;  %v67_v30 = vld [vmem:[%s9926_s1 + $0x100] sm:$0xff]  ;;  %v68_v32 = vld [vmem:[%s9926_s1 + $0x108] sm:$0xff]  ;;  %v5819_v34 = vcombine.low %v59_v22, %v63_v23  ;;  %v5821_v35 = vcombine.low %v60_v24, %v64_v25 }
   0xa   :  { %1630 = vmatpush1.bf16.msra.mxu0 %v5803_v18  ;;  %1712 = vmatpush1.bf16.msra.mxu1 %v5805_v19  ;;  %v71_v31 = vld [vmem:[%s9926_s1 + $0x120] sm:$0xff]  ;;  %v72_v33 = vld [vmem:[%s9926_s1 + $0x128] sm:$0xff] }
   0xb   :  { %1631 = vmatprep.subr.bf16.mxu0 %v5812_v20  ;;  %1713 = vmatprep.subr.bf16.mxu1 %v5814_v21  ;;  %v5828_v36 = vcombine.high %v67_v30, %v71_v31  ;;  %v5830_v37 = vcombine.high %v68_v32, %v72_v33  ;;  %v75_v38 = vld [vmem:[%s9926_s1 + $0x140] sm:$0xff]  ;;  %v76_v40 = vld [vmem:[%s9926_s1 + $0x148] sm:$0xff]  ;;  %v5827_v42 = vcombine.low %v67_v30, %v71_v31 }
   0xc   :  { %v79_v39 = vld [vmem:[%s9926_s1 + $0x160] sm:$0xff]  ;;  %v80_v41 = vld [vmem:[%s9926_s1 + $0x168] sm:$0xff]  ;;  %v5829_v43 = vcombine.low %v68_v32, %v72_v33 }
   0xd   :  { %v5836_v44 = vcombine.high %v75_v38, %v79_v39  ;;  %v5838_v45 = vcombine.high %v76_v40, %v80_v41  ;;  %v83_v46 = vld [vmem:[%s9926_s1 + $0x180] sm:$0xff]  ;;  %v84_v48 = vld [vmem:[%s9926_s1 + $0x188] sm:$0xff]  ;;  %v5835_v50 = vcombine.low %v75_v38, %v79_v39  ;;  %v5837_v51 = vcombine.low %v76_v40, %v80_v41 }
   0xe   :  { %1632 = vmatpush1.bf16.msra.mxu0 %v5811_v26  ;;  %1714 = vmatpush1.bf16.msra.mxu1 %v5813_v27  ;;  %v87_v47 = vld [vmem:[%s9926_s1 + $0x1a0] sm:$0xff]  ;;  %v88_v49 = vld [vmem:[%s9926_s1 + $0x1a8] sm:$0xff] }
   0xf   :  { %1633 = vmatprep.subr.bf16.mxu0 %v5820_v28  ;;  %1715 = vmatprep.subr.bf16.mxu1 %v5822_v29  ;;  %v5844_v52 = vcombine.high %v83_v46, %v87_v47  ;;  %v7574_v53 = vld [vmem:[%s9925_s0] sm:$0xff]  ;;  %v5846_v54 = vcombine.high %v84_v48, %v88_v49  ;;  %v92_v58 = vld [vmem:[%s9926_s1 + $0x1c8] sm:$0xff]  ;;  %v5843_v60 = vcombine.low %v83_v46, %v87_v47 }
  0x10   :  { %v91_v55 = vld [vmem:[%s9926_s1 + $0x1c0] sm:$0xff]  ;;  %v7584_v57 = vcombine.high %v7574_v53, %v7574_v53  ;;  %v96_v59 = vld [vmem:[%s9926_s1 + $0x1e8] sm:$0xff]  ;;  %v5845_v61 = vcombine.low %v84_v48, %v88_v49 }
  0x11   :  { %v95_v56 = vld [vmem:[%s9926_s1 + $0x1e0] sm:$0xff]  ;;  %v5854_v63 = vcombine.high %v92_v58, %v96_v59  ;;  %v100_v2 = vld [vmem:[%s9926_s1 + $0x208] sm:$0xff]  ;;  %v5853_v5 = vcombine.low %v92_v58, %v96_v59 }
  0x12   :  { %1634 = vmatpush1.bf16.msra.mxu0 %v5819_v34  ;;  %1716 = vmatpush1.bf16.msra.mxu1 %v5821_v35  ;;  %v5852_v62 = vcombine.high %v91_v55, %v95_v56  ;;  %v99_v0 = vld [vmem:[%s9926_s1 + $0x200] sm:$0xff]  ;;  %v104_v3 = vld [vmem:[%s9926_s1 + $0x228] sm:$0xff]  ;;  %v5851_v4 = vcombine.low %v91_v55, %v95_v56 }
  0x13   :  { %1635 = vmatprep.subr.bf16.mxu0 %v5828_v36  ;;  %1717 = vmatprep.subr.bf16.mxu1 %v5830_v37  ;;  %v103_v1 = vld [vmem:[%s9926_s1 + $0x220] sm:$0xff]  ;;  %v5862_v7 = vcombine.high %v100_v2, %v104_v3  ;;  %v108_v10 = vld [vmem:[%s9926_s1 + $0x248] sm:$0xff]  ;;  %v5861_v13 = vcombine.low %v100_v2, %v104_v3 }
  0x14   :  { %1659 = vmatprep.mubr.bf16.mxu0 %v7584_v57  ;;  %1741 = vmatprep.mubr.bf16.mxu1 %v7584_v57  ;;  %v5860_v6 = vcombine.high %v99_v0, %v103_v1  ;;  %v107_v8 = vld [vmem:[%s9926_s1 + $0x240] sm:$0xff]  ;;  %v112_v11 = vld [vmem:[%s9926_s1 + $0x268] sm:$0xff]  ;;  %v5859_v12 = vcombine.low %v99_v0, %v103_v1 }
  0x15   :  { %v111_v9 = vld [vmem:[%s9926_s1 + $0x260] sm:$0xff]  ;;  %v5870_v15 = vcombine.high %v108_v10, %v112_v11  ;;  %v116_v18 = vld [vmem:[%s9926_s1 + $0x288] sm:$0xff]  ;;  %v5869_v21 = vcombine.low %v108_v10, %v112_v11 }
  0x16   :  { %1636 = vmatpush1.bf16.msra.mxu0 %v5827_v42  ;;  %1718 = vmatpush1.bf16.msra.mxu1 %v5829_v43  ;;  %v5868_v14 = vcombine.high %v107_v8, %v111_v9  ;;  %v115_v16 = vld [vmem:[%s9926_s1 + $0x280] sm:$0xff]  ;;  %v120_v19 = vld [vmem:[%s9926_s1 + $0x2a8] sm:$0xff]  ;;  %v5867_v20 = vcombine.low %v107_v8, %v111_v9 }
  0x17   :  { %1637 = vmatprep.subr.bf16.mxu0 %v5836_v44  ;;  %1719 = vmatprep.subr.bf16.mxu1 %v5838_v45  ;;  %v119_v17 = vld [vmem:[%s9926_s1 + $0x2a0] sm:$0xff]  ;;  %v5878_v23 = vcombine.high %v116_v18, %v120_v19  ;;  %v124_v26 = vld [vmem:[%s9926_s1 + $0x2c8] sm:$0xff]  ;;  %v5877_v29 = vcombine.low %v116_v18, %v120_v19 }
  0x18   :  { %v5876_v22 = vcombine.high %v115_v16, %v119_v17  ;;  %v123_v24 = vld [vmem:[%s9926_s1 + $0x2c0] sm:$0xff]  ;;  %v128_v27 = vld [vmem:[%s9926_s1 + $0x2e8] sm:$0xff]  ;;  %v5875_v28 = vcombine.low %v115_v16, %v119_v17 }
  0x19   :  { %v127_v25 = vld [vmem:[%s9926_s1 + $0x2e0] sm:$0xff]  ;;  %v5886_v31 = vcombine.high %v124_v26, %v128_v27  ;;  %v132_v34 = vld [vmem:[%s9926_s1 + $0x308] sm:$0xff]  ;;  %v5885_v37 = vcombine.low %v124_v26, %v128_v27 }
  0x1a   :  { %1638 = vmatpush1.bf16.msra.mxu0 %v5835_v50  ;;  %1720 = vmatpush1.bf16.msra.mxu1 %v5837_v51  ;;  %v5884_v30 = vcombine.high %v123_v24, %v127_v25  ;;  %v131_v32 = vld [vmem:[%s9926_s1 + $0x300] sm:$0xff]  ;;  %v136_v35 = vld [vmem:[%s9926_s1 + $0x328] sm:$0xff]  ;;  %v5883_v36 = vcombine.low %v123_v24, %v127_v25 }
  0x1b   :  { %1639 = vmatprep.subr.bf16.mxu0 %v5844_v52  ;;  %1721 = vmatprep.subr.bf16.mxu1 %v5846_v54  ;;  %v135_v33 = vld [vmem:[%s9926_s1 + $0x320] sm:$0xff]  ;;  %v5894_v39 = vcombine.high %v132_v34, %v136_v35  ;;  %v140_v42 = vld [vmem:[%s9926_s1 + $0x348] sm:$0xff]  ;;  %v5893_v45 = vcombine.low %v132_v34, %v136_v35 }
  0x1c   :  { %v5892_v38 = vcombine.high %v131_v32, %v135_v33  ;;  %v139_v40 = vld [vmem:[%s9926_s1 + $0x340] sm:$0xff]  ;;  %v144_v43 = vld [vmem:[%s9926_s1 + $0x368] sm:$0xff]  ;;  %v5891_v44 = vcombine.low %v131_v32, %v135_v33 }
  0x1d   :  { %v143_v41 = vld [vmem:[%s9926_s1 + $0x360] sm:$0xff]  ;;  %v5902_v47 = vcombine.high %v140_v42, %v144_v43  ;;  %v148_v50 = vld [vmem:[%s9926_s1 + $0x388] sm:$0xff]  ;;  %v5901_v54 = vcombine.low %v140_v42, %v144_v43 }
  0x1e   :  { %1640 = vmatpush1.bf16.msra.mxu0 %v5843_v60  ;;  %1722 = vmatpush1.bf16.msra.mxu1 %v5845_v61  ;;  %v5900_v46 = vcombine.high %v139_v40, %v143_v41  ;;  %v147_v48 = vld [vmem:[%s9926_s1 + $0x380] sm:$0xff]  ;;  %v152_v51 = vld [vmem:[%s9926_s1 + $0x3a8] sm:$0xff]  ;;  %v5899_v52 = vcombine.low %v139_v40, %v143_v41 }
  0x1f   :  { %1641 = vmatprep.subr.bf16.mxu0 %v5852_v62  ;;  %1723 = vmatprep.subr.bf16.mxu1 %v5854_v63  ;;  %v151_v49 = vld [vmem:[%s9926_s1 + $0x3a0] sm:$0xff]  ;;  %v5910_v56 = vcombine.high %v148_v50, %v152_v51  ;;  %v156_v60 = vld [vmem:[%s9926_s1 + $0x3c8] sm:$0xff]  ;;  %v5909_v63 = vcombine.low %v148_v50, %v152_v51 }
  0x20   :  { %v5908_v55 = vcombine.high %v147_v48, %v151_v49  ;;  %v155_v58 = vld [vmem:[%s9926_s1 + $0x3c0] sm:$0xff]  ;;  %v160_v61 = vld [vmem:[%s9926_s1 + $0x3e8] sm:$0xff]  ;;  %v5907_v62 = vcombine.low %v147_v48, %v151_v49 }
  0x21   :  { %v159_v59 = vld [vmem:[%s9926_s1 + $0x3e0] sm:$0xff]  ;;  %v5918_v1 = vcombine.high %v156_v60, %v160_v61 }
  0x22   :  { %1642 = vmatpush1.bf16.msra.mxu0 %v5851_v4  ;;  %1724 = vmatpush1.bf16.msra.mxu1 %v5853_v5  ;;  %v5916_v0 = vcombine.high %v155_v58, %v159_v59  ;;  %v163_v2 = vld [vmem:[%s9926_s1 + $0x400] sm:$0xff]  ;;  %v164_v4 = vld [vmem:[%s9926_s1 + $0x408] sm:$0xff] }
  0x23   :  { %1643 = vmatprep.subr.bf16.mxu0 %v5860_v6  ;;  %1725 = vmatprep.subr.bf16.mxu1 %v5862_v7  ;;  %v167_v3 = vld [vmem:[%s9926_s1 + $0x420] sm:$0xff]  ;;  %v168_v5 = vld [vmem:[%s9926_s1 + $0x428] sm:$0xff]  ;;  %v5915_v6 = vcombine.low %v155_v58, %v159_v59  ;;  %v5917_v7 = vcombine.low %v156_v60, %v160_v61 }
  0x24   :  { %v5924_v8 = vcombine.high %v163_v2, %v167_v3  ;;  %v5926_v9 = vcombine.high %v164_v4, %v168_v5  ;;  %v171_v10 = vld [vmem:[%s9926_s1 + $0x440] sm:$0xff]  ;;  %v5923_v16 = vcombine.low %v163_v2, %v167_v3  ;;  %v5925_v17 = vcombine.low %v164_v4, %v168_v5 }
  0x25   :  { %v175_v11 = vld [vmem:[%s9926_s1 + $0x460] sm:$0xff] }
  0x26   :  { %1644 = vmatpush1.bf16.msra.mxu0 %v5859_v12  ;;  %1726 = vmatpush1.bf16.msra.mxu1 %v5861_v13  ;;  %v7710_v12 = vcombine.low %v7574_v53, %v7574_v53  ;;  %v172_v13 = vld [vmem:[%s9926_s1 + $0x448] sm:$0xff]  ;;  %v5932_v53 = vcombine.high %v171_v10, %v175_v11  ;;  %v179_v18 = vld [vmem:[%s9926_s1 + $0x480] sm:$0xff]  ;;  %v5931_v24 = vcombine.low %v171_v10, %v175_v11 }
  0x27   :  { %1645 = vmatprep.subr.bf16.mxu0 %v5868_v14  ;;  %1727 = vmatprep.subr.bf16.mxu1 %v5870_v15  ;;  %v176_v14 = vld [vmem:[%s9926_s1 + $0x468] sm:$0xff]  ;;  %v183_v19 = vld [vmem:[%s9926_s1 + $0x4a0] sm:$0xff] }
  0x28   :  { %v7721_v15 = vld [vmem:[%s9925_s0 + $0x8] sm:$0xff]  ;;  %v5933_v25 = vcombine.low %v172_v13, %v176_v14  ;;  %v5940_v26 = vcombine.high %v179_v18, %v183_v19  ;;  %v187_v27 = vld [vmem:[%s9926_s1 + $0x4c0] sm:$0xff]  ;;  %v5939_v32 = vcombine.low %v179_v18, %v183_v19 }
  0x29   :  { %v195_v35 = vld [vmem:[%s9926_s1 + $0x500] sm:$0xff]  ;;  %v240_v18 = vld [vmem:[%s9926_s1 + $0x668] sm:$0xff] }
  0x2a   :  { %1646 = vmatpush1.bf16.msra.mxu0 %v5867_v20  ;;  %1728 = vmatpush1.bf16.msra.mxu1 %v5869_v21  ;;  %v180_v20 = vld [vmem:[%s9926_s1 + $0x488] sm:$0xff]  ;;  %v5934_v21 = vcombine.high %v172_v13, %v176_v14  ;;  %v203_v43 = vld [vmem:[%s9926_s1 + $0x540] sm:$0xff] }
  0x2b   :  { %1647 = vmatprep.subr.bf16.mxu0 %v5876_v22  ;;  %1729 = vmatprep.subr.bf16.mxu1 %v5878_v23  ;;  %v184_v22 = vld [vmem:[%s9926_s1 + $0x4a8] sm:$0xff]  ;;  %v7737_v23 = vcombine.high %v7721_v15, %v7721_v15  ;;  %v211_v51 = vld [vmem:[%s9926_s1 + $0x580] sm:$0xff] }
  0x2c   :  { %v5941_v33 = vcombine.low %v180_v20, %v184_v22  ;;  %v219_v61 = vld [vmem:[%s9926_s1 + $0x5c0] sm:$0xff] }
  0x2d   :  { %v227_v5 = vld [vmem:[%s9926_s1 + $0x600] sm:$0xff] }
  0x2e   :  { %1648 = vmatpush1.bf16.msra.mxu0 %v5875_v28  ;;  %1730 = vmatpush1.bf16.msra.mxu1 %v5877_v29  ;;  %v191_v28 = vld [vmem:[%s9926_s1 + $0x4e0] sm:$0xff]  ;;  %v188_v29 = vld [vmem:[%s9926_s1 + $0x4c8] sm:$0xff] }
  0x2f   :  { %1649 = vmatprep.subr.bf16.mxu0 %v5884_v30  ;;  %1731 = vmatprep.subr.bf16.mxu1 %v5886_v31  ;;  %v5942_v30 = vcombine.high %v180_v20, %v184_v22  ;;  %v192_v31 = vld [vmem:[%s9926_s1 + $0x4e8] sm:$0xff]  ;;  %v5948_v34 = vcombine.high %v187_v27, %v191_v28  ;;  %v5947_v40 = vcombine.low %v187_v27, %v191_v28  ;;  %v235_v14 = vld [vmem:[%s9926_s1 + $0x640] sm:$0xff] }
  0x30   :  { %v5949_v41 = vcombine.low %v188_v29, %v192_v31  ;;  %v243_v22 = vld [vmem:[%s9926_s1 + $0x680] sm:$0xff]  ;;  %v248_v27 = vld [vmem:[%s9926_s1 + $0x6a8] sm:$0xff] }
  0x32   :  { %1650 = vmatpush1.bf16.msra.mxu0 %v5883_v36  ;;  %1732 = vmatpush1.bf16.msra.mxu1 %v5885_v37  ;;  %v199_v36 = vld [vmem:[%s9926_s1 + $0x520] sm:$0xff]  ;;  %v196_v37 = vld [vmem:[%s9926_s1 + $0x508] sm:$0xff] }
  0x33   :  { %1651 = vmatprep.subr.bf16.mxu0 %v5892_v38  ;;  %1733 = vmatprep.subr.bf16.mxu1 %v5894_v39  ;;  %v5950_v38 = vcombine.high %v188_v29, %v192_v31  ;;  %v200_v39 = vld [vmem:[%s9926_s1 + $0x528] sm:$0xff]  ;;  %v5956_v42 = vcombine.high %v195_v35, %v199_v36  ;;  %v5955_v48 = vcombine.low %v195_v35, %v199_v36  ;;  %v251_v31 = vld [vmem:[%s9926_s1 + $0x6c0] sm:$0xff] }
  0x34   :  { %v5957_v49 = vcombine.low %v196_v37, %v200_v39  ;;  %v256_v35 = vld [vmem:[%s9926_s1 + $0x6e8] sm:$0xff] }
  0x36   :  { %1652 = vmatpush1.bf16.msra.mxu0 %v5891_v44  ;;  %1734 = vmatpush1.bf16.msra.mxu1 %v5893_v45  ;;  %v207_v44 = vld [vmem:[%s9926_s1 + $0x560] sm:$0xff]  ;;  %v204_v45 = vld [vmem:[%s9926_s1 + $0x548] sm:$0xff] }
  0x37   :  { %1653 = vmatprep.subr.bf16.mxu0 %v5900_v46  ;;  %1735 = vmatprep.subr.bf16.mxu1 %v5902_v47  ;;  %v5958_v46 = vcombine.high %v196_v37, %v200_v39  ;;  %v208_v47 = vld [vmem:[%s9926_s1 + $0x568] sm:$0xff]  ;;  %v5964_v50 = vcombine.high %v203_v43, %v207_v44  ;;  %v5963_v58 = vcombine.low %v203_v43, %v207_v44  ;;  %v259_v39 = vld [vmem:[%s9926_s1 + $0x700] sm:$0xff] }
  0x38   :  { %v5965_v59 = vcombine.low %v204_v45, %v208_v47  ;;  %v264_v43 = vld [vmem:[%s9926_s1 + $0x728] sm:$0xff] }
  0x3a   :  { %1654 = vmatpush1.bf16.msra.mxu0 %v5899_v52  ;;  %1736 = vmatpush1.bf16.msra.mxu1 %v5901_v54  ;;  %v215_v52 = vld [vmem:[%s9926_s1 + $0x5a0] sm:$0xff]  ;;  %v212_v54 = vld [vmem:[%s9926_s1 + $0x588] sm:$0xff] }
  0x3b   :  { %1655 = vmatprep.subr.bf16.mxu0 %v5908_v55  ;;  %1737 = vmatprep.subr.bf16.mxu1 %v5910_v56  ;;  %v5966_v55 = vcombine.high %v204_v45, %v208_v47  ;;  %v216_v56 = vld [vmem:[%s9926_s1 + $0x5a8] sm:$0xff]  ;;  %v5972_v60 = vcombine.high %v211_v51, %v215_v52  ;;  %v5971_v2 = vcombine.low %v211_v51, %v215_v52  ;;  %v267_v47 = vld [vmem:[%s9926_s1 + $0x740] sm:$0xff] }
  0x3c   :  { %v5973_v3 = vcombine.low %v212_v54, %v216_v56  ;;  %v272_v51 = vld [vmem:[%s9926_s1 + $0x768] sm:$0xff] }
  0x3e   :  { %1656 = vmatpush1.bf16.msra.mxu0 %v5907_v62  ;;  %1738 = vmatpush1.bf16.msra.mxu1 %v5909_v63  ;;  %v223_v62 = vld [vmem:[%s9926_s1 + $0x5e0] sm:$0xff]  ;;  %v220_v63 = vld [vmem:[%s9926_s1 + $0x5c8] sm:$0xff] }
  0x3f   :  { %1657 = vmatprep.subr.bf16.mxu0 %v5916_v0  ;;  %1739 = vmatprep.subr.bf16.mxu1 %v5918_v1  ;;  %v5974_v0 = vcombine.high %v212_v54, %v216_v56  ;;  %v224_v1 = vld [vmem:[%s9926_s1 + $0x5e8] sm:$0xff]  ;;  %v5980_v4 = vcombine.high %v219_v61, %v223_v62  ;;  %v5979_v10 = vcombine.low %v219_v61, %v223_v62  ;;  %v275_v56 = vld [vmem:[%s9926_s1 + $0x780] sm:$0xff] }
  0x40   :  { %v5981_v11 = vcombine.low %v220_v63, %v224_v1  ;;  %v280_v61 = vld [vmem:[%s9926_s1 + $0x7a8] sm:$0xff] }
  0x42   :  { %1658 = vmatpush1.bf16.msra.mxu0 %v5915_v6  ;;  %1740 = vmatpush1.bf16.msra.mxu1 %v5917_v7  ;;  %v231_v6 = vld [vmem:[%s9926_s1 + $0x620] sm:$0xff]  ;;  %v228_v7 = vld [vmem:[%s9926_s1 + $0x608] sm:$0xff] }
  0x43   :  { %1668 = vmatprep.subr.bf16.mxu0 %v5924_v8  ;;  %1750 = vmatprep.subr.bf16.mxu1 %v5926_v9  ;;  %v5982_v8 = vcombine.high %v220_v63, %v224_v1  ;;  %v232_v9 = vld [vmem:[%s9926_s1 + $0x628] sm:$0xff]  ;;  %v5988_v13 = vcombine.high %v227_v5, %v231_v6  ;;  %v5987_v19 = vcombine.low %v227_v5, %v231_v6  ;;  %v283_v1 = vld [vmem:[%s9926_s1 + $0x7c0] sm:$0xff] }
  0x44   :  { %v5989_v20 = vcombine.low %v228_v7, %v232_v9  ;;  %v288_v5 = vld [vmem:[%s9926_s1 + $0x7e8] sm:$0xff] }
  0x45   :  { %1660 = vmatmul.mubr.bf16.vlgmr.msra.gmra.mrb[0].mxu0 %v7710_v12  ;;  %1742 = vmatmul.mubr.bf16.vlgmr.msra.gmra.mrb[0].mxu1 %v7710_v12 }
  0x46   :  { %1669 = vmatpush1.bf16.msra.mxu0 %v5923_v16  ;;  %1751 = vmatpush1.bf16.msra.mxu1 %v5925_v17  ;;  %v239_v16 = vld [vmem:[%s9926_s1 + $0x660] sm:$0xff]  ;;  %v236_v17 = vld [vmem:[%s9926_s1 + $0x648] sm:$0xff] }
  0x47   :  { %1670 = vmatprep.subr.bf16.mxu0 %v5932_v53  ;;  %1752 = vmatprep.subr.bf16.mxu1 %v5934_v21  ;;  %v5990_v53 = vcombine.high %v228_v7, %v232_v9  ;;  %v5996_v21 = vcombine.high %v235_v14, %v239_v16  ;;  %v5995_v28 = vcombine.low %v235_v14, %v239_v16  ;;  %v37_v9 = vld [vmem:[%s9926_s1 + $0x10] sm:$0xff]  ;;  %v42_v14 = vld [vmem:[%s9926_s1 + $0x38] sm:$0xff] }
  0x48   :  { %1700 = vmatprep.mubr.bf16.mxu0 %v7737_v23  ;;  %1782 = vmatprep.mubr.bf16.mxu1 %v7737_v23  ;;  %v5997_v29 = vcombine.low %v236_v17, %v240_v18 }
  0x4a   :  { %1671 = vmatpush1.bf16.msra.mxu0 %v5931_v24  ;;  %1753 = vmatpush1.bf16.msra.mxu1 %v5933_v25  ;;  %v247_v24 = vld [vmem:[%s9926_s1 + $0x6a0] sm:$0xff]  ;;  %v244_v25 = vld [vmem:[%s9926_s1 + $0x688] sm:$0xff] }
  0x4b   :  { %1672 = vmatprep.subr.bf16.mxu0 %v5940_v26  ;;  %1754 = vmatprep.subr.bf16.mxu1 %v5942_v30  ;;  %v5998_v26 = vcombine.high %v236_v17, %v240_v18  ;;  %v6004_v30 = vcombine.high %v243_v22, %v247_v24  ;;  %v6003_v36 = vcombine.low %v243_v22, %v247_v24  ;;  %v45_v18 = vld [vmem:[%s9926_s1 + $0x50] sm:$0xff]  ;;  %v50_v22 = vld [vmem:[%s9926_s1 + $0x78] sm:$0xff] }
  0x4c   :  { %v6005_v37 = vcombine.low %v244_v25, %v248_v27  ;;  %v7925_v24 = vcombine.low %v7721_v15, %v7721_v15  ;;  %v58_v15 = vld [vmem:[%s9926_s1 + $0xb8] sm:$0xff] }
  0x4e   :  { %1673 = vmatpush1.bf16.msra.mxu0 %v5939_v32  ;;  %1755 = vmatpush1.bf16.msra.mxu1 %v5941_v33  ;;  %v255_v32 = vld [vmem:[%s9926_s1 + $0x6e0] sm:$0xff]  ;;  %v252_v33 = vld [vmem:[%s9926_s1 + $0x6c8] sm:$0xff] }
  0x4f   :  { %1674 = vmatprep.subr.bf16.mxu0 %v5948_v34  ;;  %1756 = vmatprep.subr.bf16.mxu1 %v5950_v38  ;;  %v6006_v34 = vcombine.high %v244_v25, %v248_v27  ;;  %v6012_v38 = vcombine.high %v251_v31, %v255_v32  ;;  %v6011_v44 = vcombine.low %v251_v31, %v255_v32  ;;  %v57_v27 = vld [vmem:[%s9926_s1 + $0xb0] sm:$0xff] }
  0x50   :  { %v6013_v45 = vcombine.low %v252_v33, %v256_v35 }
  0x52   :  { %1675 = vmatpush1.bf16.msra.mxu0 %v5947_v40  ;;  %1757 = vmatpush1.bf16.msra.mxu1 %v5949_v41  ;;  %v263_v40 = vld [vmem:[%s9926_s1 + $0x720] sm:$0xff]  ;;  %v260_v41 = vld [vmem:[%s9926_s1 + $0x708] sm:$0xff] }
  0x53   :  { %1676 = vmatprep.subr.bf16.mxu0 %v5956_v42  ;;  %1758 = vmatprep.subr.bf16.mxu1 %v5958_v46  ;;  %v6014_v42 = vcombine.high %v252_v33, %v256_v35  ;;  %v6020_v46 = vcombine.high %v259_v39, %v263_v40  ;;  %v6019_v52 = vcombine.low %v259_v39, %v263_v40  ;;  %v61_v35 = vld [vmem:[%s9926_s1 + $0xd0] sm:$0xff]  ;;  %v66_v39 = vld [vmem:[%s9926_s1 + $0xf8] sm:$0xff] }
  0x54   :  { %v6021_v54 = vcombine.low %v260_v41, %v264_v43 }
  0x56   :  { %1677 = vmatpush1.bf16.msra.mxu0 %v5955_v48  ;;  %1759 = vmatpush1.bf16.msra.mxu1 %v5957_v49  ;;  %v271_v48 = vld [vmem:[%s9926_s1 + $0x760] sm:$0xff]  ;;  %v268_v49 = vld [vmem:[%s9926_s1 + $0x748] sm:$0xff] }
  0x57   :  { %1678 = vmatprep.subr.bf16.mxu0 %v5964_v50  ;;  %1760 = vmatprep.subr.bf16.mxu1 %v5966_v55  ;;  %v6022_v50 = vcombine.high %v260_v41, %v264_v43  ;;  %v6028_v55 = vcombine.high %v267_v47, %v271_v48  ;;  %v6027_v62 = vcombine.low %v267_v47, %v271_v48  ;;  %v69_v43 = vld [vmem:[%s9926_s1 + $0x110] sm:$0xff] }
  0x58   :  { %v6029_v63 = vcombine.low %v268_v49, %v272_v51 }
  0x5a   :  { %1679 = vmatpush1.bf16.msra.mxu0 %v5963_v58  ;;  %1761 = vmatpush1.bf16.msra.mxu1 %v5965_v59  ;;  %v279_v58 = vld [vmem:[%s9926_s1 + $0x7a0] sm:$0xff]  ;;  %v276_v59 = vld [vmem:[%s9926_s1 + $0x788] sm:$0xff] }
  0x5b   :  { %1680 = vmatprep.subr.bf16.mxu0 %v5972_v60  ;;  %1762 = vmatprep.subr.bf16.mxu1 %v5974_v0  ;;  %v6030_v60 = vcombine.high %v268_v49, %v272_v51  ;;  %v6036_v0 = vcombine.high %v275_v56, %v279_v58  ;;  %v6035_v6 = vcombine.low %v275_v56, %v279_v58  ;;  %v81_v51 = vld [vmem:[%s9926_s1 + $0x170] sm:$0xff] }
  0x5c   :  { %v6037_v7 = vcombine.low %v276_v59, %v280_v61 }
  0x5e   :  { %1681 = vmatpush1.bf16.msra.mxu0 %v5971_v2  ;;  %1763 = vmatpush1.bf16.msra.mxu1 %v5973_v3  ;;  %v287_v2 = vld [vmem:[%s9926_s1 + $0x7e0] sm:$0xff]  ;;  %v284_v3 = vld [vmem:[%s9926_s1 + $0x7c8] sm:$0xff] }
  0x5f   :  { %1682 = vmatprep.subr.bf16.mxu0 %v5980_v4  ;;  %1764 = vmatprep.subr.bf16.mxu1 %v5982_v8  ;;  %v6038_v4 = vcombine.high %v276_v59, %v280_v61  ;;  %v6044_v8 = vcombine.high %v283_v1, %v287_v2  ;;  %v6043_v16 = vcombine.low %v283_v1, %v287_v2  ;;  %v89_v61 = vld [vmem:[%s9926_s1 + $0x1b0] sm:$0xff] }
  0x60   :  { %v6045_v17 = vcombine.low %v284_v3, %v288_v5 }
  0x62   :  { %1683 = vmatpush1.bf16.msra.mxu0 %v5979_v10  ;;  %1765 = vmatpush1.bf16.msra.mxu1 %v5981_v11  ;;  %v41_v10 = vld [vmem:[%s9926_s1 + $0x30] sm:$0xff]  ;;  %v38_v11 = vld [vmem:[%s9926_s1 + $0x18] sm:$0xff] }
  0x63   :  { %1684 = vmatprep.subr.bf16.mxu0 %v5988_v13  ;;  %1766 = vmatprep.subr.bf16.mxu1 %v5990_v53  ;;  %v6046_v13 = vcombine.high %v284_v3, %v288_v5  ;;  %v5800_v53 = vcombine.high %v37_v9, %v41_v10  ;;  %v5799_v25 = vcombine.low %v37_v9, %v41_v10  ;;  %v97_v5 = vld [vmem:[%s9926_s1 + $0x1f0] sm:$0xff] }
  0x66   :  { %1685 = vmatpush1.bf16.msra.mxu0 %v5987_v19  ;;  %1767 = vmatpush1.bf16.msra.mxu1 %v5989_v20  ;;  %v49_v19 = vld [vmem:[%s9926_s1 + $0x70] sm:$0xff]  ;;  %v46_v20 = vld [vmem:[%s9926_s1 + $0x58] sm:$0xff] }
  0x67   :  { %1686 = vmatprep.subr.bf16.mxu0 %v5996_v21  ;;  %1768 = vmatprep.subr.bf16.mxu1 %v5998_v26  ;;  %v5802_v21 = vcombine.high %v38_v11, %v42_v14  ;;  %v53_v26 = vld [vmem:[%s9926_s1 + $0x90] sm:$0xff]  ;;  %v5810_v31 = vcombine.high %v46_v20, %v50_v22  ;;  %v5807_v32 = vcombine.low %v45_v18, %v49_v19 }
  0x68   :  { %v5809_v33 = vcombine.low %v46_v20, %v50_v22  ;;  %v5815_v40 = vcombine.low %v53_v26, %v57_v27  ;;  %v113_v22 = vld [vmem:[%s9926_s1 + $0x270] sm:$0xff] }
  0x6a   :  { %1687 = vmatpush1.bf16.msra.mxu0 %v5995_v28  ;;  %1769 = vmatpush1.bf16.msra.mxu1 %v5997_v29  ;;  %v5801_v28 = vcombine.low %v38_v11, %v42_v14  ;;  %v5808_v29 = vcombine.high %v45_v18, %v49_v19  ;;  %v105_v14 = vld [vmem:[%s9926_s1 + $0x230] sm:$0xff] }
  0x6b   :  { %1688 = vmatprep.subr.bf16.mxu0 %v6004_v30  ;;  %1770 = vmatprep.subr.bf16.mxu1 %v6006_v34  ;;  %v54_v30 = vld [vmem:[%s9926_s1 + $0x98] sm:$0xff]  ;;  %v5816_v34 = vcombine.high %v53_v26, %v57_v27 }
  0x6c   :  { %v5817_v41 = vcombine.low %v54_v30, %v58_v15  ;;  %v114_v27 = vld [vmem:[%s9926_s1 + $0x278] sm:$0xff] }
  0x6e   :  { %1689 = vmatpush1.bf16.msra.mxu0 %v6003_v36  ;;  %1771 = vmatpush1.bf16.msra.mxu1 %v6005_v37  ;;  %v65_v36 = vld [vmem:[%s9926_s1 + $0xf0] sm:$0xff]  ;;  %v5818_v37 = vcombine.high %v54_v30, %v58_v15 }
  0x6f   :  { %1690 = vmatprep.subr.bf16.mxu0 %v6012_v38  ;;  %1772 = vmatprep.subr.bf16.mxu1 %v6014_v42  ;;  %v62_v38 = vld [vmem:[%s9926_s1 + $0xd8] sm:$0xff]  ;;  %v5824_v42 = vcombine.high %v61_v35, %v65_v36  ;;  %v5823_v47 = vcombine.low %v61_v35, %v65_v36  ;;  %v117_v15 = vld [vmem:[%s9926_s1 + $0x290] sm:$0xff] }
  0x70   :  { %v5825_v48 = vcombine.low %v62_v38, %v66_v39 }
  0x72   :  { %1691 = vmatpush1.bf16.msra.mxu0 %v6011_v44  ;;  %1773 = vmatpush1.bf16.msra.mxu1 %v6013_v45  ;;  %v73_v44 = vld [vmem:[%s9926_s1 + $0x130] sm:$0xff]  ;;  %v70_v45 = vld [vmem:[%s9926_s1 + $0x118] sm:$0xff] }
  0x73   :  { %1692 = vmatprep.subr.bf16.mxu0 %v6020_v46  ;;  %1774 = vmatprep.subr.bf16.mxu1 %v6022_v50  ;;  %v74_v46 = vld [vmem:[%s9926_s1 + $0x138] sm:$0xff]  ;;  %v5832_v49 = vcombine.high %v69_v43, %v73_v44  ;;  %v77_v50 = vld [vmem:[%s9926_s1 + $0x150] sm:$0xff]  ;;  %v5831_v56 = vcombine.low %v69_v43, %v73_v44 }
  0x74   :  { %v5833_v58 = vcombine.low %v70_v45, %v74_v46  ;;  %v5840_v59 = vcombine.high %v77_v50, %v81_v51  ;;  %v5839_v1 = vcombine.low %v77_v50, %v81_v51 }
  0x76   :  { %1693 = vmatpush1.bf16.msra.mxu0 %v6019_v52  ;;  %1775 = vmatpush1.bf16.msra.mxu1 %v6021_v54  ;;  %v78_v52 = vld [vmem:[%s9926_s1 + $0x158] sm:$0xff]  ;;  %v5834_v54 = vcombine.high %v70_v45, %v74_v46  ;;  %v137_v46 = vld [vmem:[%s9926_s1 + $0x330] sm:$0xff] }
  0x77   :  { %1694 = vmatprep.subr.bf16.mxu0 %v6028_v55  ;;  %1776 = vmatprep.subr.bf16.mxu1 %v6030_v60  ;;  %v82_v55 = vld [vmem:[%s9926_s1 + $0x178] sm:$0xff]  ;;  %v85_v60 = vld [vmem:[%s9926_s1 + $0x190] sm:$0xff] }
  0x78   :  { %v5841_v2 = vcombine.low %v78_v52, %v82_v55  ;;  %v5848_v3 = vcombine.high %v85_v60, %v89_v61  ;;  %v5847_v9 = vcombine.low %v85_v60, %v89_v61 }
  0x7a   :  { %1695 = vmatpush1.bf16.msra.mxu0 %v6027_v62  ;;  %1777 = vmatpush1.bf16.msra.mxu1 %v6029_v63  ;;  %v86_v62 = vld [vmem:[%s9926_s1 + $0x198] sm:$0xff]  ;;  %v5842_v63 = vcombine.high %v78_v52, %v82_v55  ;;  %v145_v55 = vld [vmem:[%s9926_s1 + $0x370] sm:$0xff] }
  0x7b   :  { %1696 = vmatprep.subr.bf16.mxu0 %v6036_v0  ;;  %1778 = vmatprep.subr.bf16.mxu1 %v6038_v4  ;;  %v90_v0 = vld [vmem:[%s9926_s1 + $0x1b8] sm:$0xff]  ;;  %v93_v4 = vld [vmem:[%s9926_s1 + $0x1d0] sm:$0xff] }
  0x7c   :  { %v5849_v10 = vcombine.low %v86_v62, %v90_v0  ;;  %v5856_v11 = vcombine.high %v93_v4, %v97_v5  ;;  %v5855_v18 = vcombine.low %v93_v4, %v97_v5 }
  0x7e   :  { %1697 = vmatpush1.bf16.msra.mxu0 %v6035_v6  ;;  %1779 = vmatpush1.bf16.msra.mxu1 %v6037_v7  ;;  %v94_v6 = vld [vmem:[%s9926_s1 + $0x1d8] sm:$0xff]  ;;  %v5850_v7 = vcombine.high %v86_v62, %v90_v0  ;;  %v153_v0 = vld [vmem:[%s9926_s1 + $0x3b0] sm:$0xff] }
  0x7f   :  { %1698 = vmatprep.subr.bf16.mxu0 %v6044_v8  ;;  %1780 = vmatprep.subr.bf16.mxu1 %v6046_v13  ;;  %v98_v8 = vld [vmem:[%s9926_s1 + $0x1f8] sm:$0xff]  ;;  %v101_v13 = vld [vmem:[%s9926_s1 + $0x210] sm:$0xff] }
  0x80   :  { %v5857_v19 = vcombine.low %v94_v6, %v98_v8  ;;  %v5864_v20 = vcombine.high %v101_v13, %v105_v14 }
  0x82   :  { %1699 = vmatpush1.bf16.msra.mxu0 %v6043_v16  ;;  %1781 = vmatpush1.bf16.msra.mxu1 %v6045_v17  ;;  %v102_v16 = vld [vmem:[%s9926_s1 + $0x218] sm:$0xff]  ;;  %v5858_v17 = vcombine.high %v94_v6, %v98_v8  ;;  %v161_v8 = vld [vmem:[%s9926_s1 + $0x3f0] sm:$0xff] }
  0x83   :  { %1791 = vmatprep.subr.bf16.mxu0 %v5800_v53  ;;  %1873 = vmatprep.subr.bf16.mxu1 %v5802_v21  ;;  %v106_v53 = vld [vmem:[%s9926_s1 + $0x238] sm:$0xff]  ;;  %v109_v21 = vld [vmem:[%s9926_s1 + $0x250] sm:$0xff] }
  0x84   :  { %v5866_v26 = vcombine.high %v102_v16, %v106_v53  ;;  %v5872_v30 = vcombine.high %v109_v21, %v113_v22  ;;  %v5871_v35 = vcombine.low %v109_v21, %v113_v22  ;;  %v173_v22 = vld [vmem:[%s9926_s1 + $0x450] sm:$0xff] }
  0x85   :  { %1701 = vmatmul.mubr.bf16.vlgmr.msra.gmra.mrb[0].mxu0 %v7925_v24  ;;  %1783 = vmatmul.mubr.bf16.vlgmr.msra.gmra.mrb[0].mxu1 %v7925_v24 }
  0x86   :  { %1792 = vmatpush1.bf16.msra.mxu0 %v5799_v25  ;;  %1874 = vmatpush1.bf16.msra.mxu1 %v5801_v28  ;;  %v110_v25 = vld [vmem:[%s9926_s1 + $0x258] sm:$0xff]  ;;  %v5863_v28 = vcombine.low %v101_v13, %v105_v14  ;;  %v165_v14 = vld [vmem:[%s9926_s1 + $0x410] sm:$0xff] }
  0x87   :  { %1793 = vmatprep.subr.bf16.mxu0 %v5808_v29  ;;  %1875 = vmatprep.subr.bf16.mxu1 %v5810_v31  ;;  %v5865_v29 = vcombine.low %v102_v16, %v106_v53  ;;  %v121_v31 = vld [vmem:[%s9926_s1 + $0x2b0] sm:$0xff]  ;;  %v5873_v36 = vcombine.low %v110_v25, %v114_v27 }
  0x88   :  { %1823 = vmatprep.mubr.bf16.mxu0 %v7584_v57  ;;  %1905 = vmatprep.mubr.bf16.mxu1 %v7584_v57  ;;  %v5826_v57 = vcombine.high %v62_v38, %v66_v39  ;;  %v125_v38 = vld [vmem:[%s9926_s1 + $0x2d0] sm:$0xff]  ;;  %v5879_v43 = vcombine.low %v117_v15, %v121_v31 }
  0x89   :  { %v129_v39 = vld [vmem:[%s9926_s1 + $0x2f0] sm:$0xff] }
  0x8a   :  { %1794 = vmatpush1.bf16.msra.mxu0 %v5807_v32  ;;  %1876 = vmatpush1.bf16.msra.mxu1 %v5809_v33  ;;  %v118_v32 = vld [vmem:[%s9926_s1 + $0x298] sm:$0xff]  ;;  %v5874_v33 = vcombine.high %v110_v25, %v114_v27  ;;  %v5888_v45 = vcombine.high %v125_v38, %v129_v39  ;;  %v5887_v50 = vcombine.low %v125_v38, %v129_v39  ;;  %v169_v16 = vld [vmem:[%s9926_s1 + $0x430] sm:$0xff] }
  0x8b   :  { %1795 = vmatprep.subr.bf16.mxu0 %v5816_v34  ;;  %1877 = vmatprep.subr.bf16.mxu1 %v5818_v37  ;;  %v122_v34 = vld [vmem:[%s9926_s1 + $0x2b8] sm:$0xff]  ;;  %v5880_v37 = vcombine.high %v117_v15, %v121_v31  ;;  %v177_v25 = vld [vmem:[%s9926_s1 + $0x470] sm:$0xff]  ;;  %v5928_v27 = vcombine.high %v165_v14, %v169_v16  ;;  %v5927_v15 = vcombine.low %v165_v14, %v169_v16 }
  0x8c   :  { %v5881_v44 = vcombine.low %v118_v32, %v122_v34  ;;  %v181_v31 = vld [vmem:[%s9926_s1 + $0x490] sm:$0xff]  ;;  %v5935_v38 = vcombine.low %v173_v22, %v177_v25 }
  0x8d   :  { %v189_v39 = vld [vmem:[%s9926_s1 + $0x4d0] sm:$0xff] }
  0x8e   :  { %1796 = vmatpush1.bf16.msra.mxu0 %v5815_v40  ;;  %1878 = vmatpush1.bf16.msra.mxu1 %v5817_v41  ;;  %v126_v40 = vld [vmem:[%s9926_s1 + $0x2d8] sm:$0xff]  ;;  %v5882_v41 = vcombine.high %v118_v32, %v122_v34  ;;  %v185_v32 = vld [vmem:[%s9926_s1 + $0x4b0] sm:$0xff]  ;;  %v5936_v34 = vcombine.high %v173_v22, %v177_v25 }
  0x8f   :  { %1797 = vmatprep.subr.bf16.mxu0 %v5824_v42  ;;  %1879 = vmatprep.subr.bf16.mxu1 %v5826_v57  ;;  %v130_v42 = vld [vmem:[%s9926_s1 + $0x2f8] sm:$0xff]  ;;  %v133_v57 = vld [vmem:[%s9926_s1 + $0x310] sm:$0xff] }
  0x90   :  { %v5889_v51 = vcombine.low %v126_v40, %v130_v42  ;;  %v5896_v52 = vcombine.high %v133_v57, %v137_v46  ;;  %v5895_v60 = vcombine.low %v133_v57, %v137_v46  ;;  %v197_v57 = vld [vmem:[%s9926_s1 + $0x510] sm:$0xff] }
  0x91   :  { %v201_v46 = vld [vmem:[%s9926_s1 + $0x530] sm:$0xff] }
  0x92   :  { %1798 = vmatpush1.bf16.msra.mxu0 %v5823_v47  ;;  %1880 = vmatpush1.bf16.msra.mxu1 %v5825_v48  ;;  %v134_v47 = vld [vmem:[%s9926_s1 + $0x318] sm:$0xff]  ;;  %v5890_v48 = vcombine.high %v126_v40, %v130_v42  ;;  %v193_v40 = vld [vmem:[%s9926_s1 + $0x4f0] sm:$0xff]  ;;  %v5944_v42 = vcombine.high %v181_v31, %v185_v32 }
  0x93   :  { %1799 = vmatprep.subr.bf16.mxu0 %v5832_v49  ;;  %1881 = vmatprep.subr.bf16.mxu1 %v5834_v54  ;;  %v138_v49 = vld [vmem:[%s9926_s1 + $0x338] sm:$0xff]  ;;  %v141_v54 = vld [vmem:[%s9926_s1 + $0x350] sm:$0xff] }
  0x94   :  { %v5897_v61 = vcombine.low %v134_v47, %v138_v49  ;;  %v5904_v62 = vcombine.high %v141_v54, %v145_v55  ;;  %v5903_v4 = vcombine.low %v141_v54, %v145_v55  ;;  %v209_v54 = vld [vmem:[%s9926_s1 + $0x570] sm:$0xff] }
  0x96   :  { %1800 = vmatpush1.bf16.msra.mxu0 %v5831_v56  ;;  %1882 = vmatpush1.bf16.msra.mxu1 %v5833_v58  ;;  %v142_v56 = vld [vmem:[%s9926_s1 + $0x358] sm:$0xff]  ;;  %v5898_v58 = vcombine.high %v134_v47, %v138_v49 }
  0x97   :  { %1801 = vmatprep.subr.bf16.mxu0 %v5840_v59  ;;  %1883 = vmatprep.subr.bf16.mxu1 %v5842_v63  ;;  %v146_v59 = vld [vmem:[%s9926_s1 + $0x378] sm:$0xff]  ;;  %v149_v63 = vld [vmem:[%s9926_s1 + $0x390] sm:$0xff] }
  0x98   :  { %v5905_v5 = vcombine.low %v142_v56, %v146_v59  ;;  %v5912_v6 = vcombine.high %v149_v63, %v153_v0  ;;  %v5911_v13 = vcombine.low %v149_v63, %v153_v0  ;;  %v198_v49 = vld [vmem:[%s9926_s1 + $0x518] sm:$0xff]  ;;  %v217_v63 = vld [vmem:[%s9926_s1 + $0x5b0] sm:$0xff] }
  0x9a   :  { %1802 = vmatpush1.bf16.msra.mxu0 %v5839_v1  ;;  %1884 = vmatpush1.bf16.msra.mxu1 %v5841_v2  ;;  %v150_v1 = vld [vmem:[%s9926_s1 + $0x398] sm:$0xff]  ;;  %v5906_v2 = vcombine.high %v142_v56, %v146_v59  ;;  %v5960_v56 = vcombine.high %v197_v57, %v201_v46 }
  0x9b   :  { %1803 = vmatprep.subr.bf16.mxu0 %v5848_v3  ;;  %1885 = vmatprep.subr.bf16.mxu1 %v5850_v7  ;;  %v154_v3 = vld [vmem:[%s9926_s1 + $0x3b8] sm:$0xff]  ;;  %v157_v7 = vld [vmem:[%s9926_s1 + $0x3d0] sm:$0xff] }
  0x9c   :  { %v5920_v53 = vcombine.high %v157_v7, %v161_v8  ;;  %v5919_v21 = vcombine.low %v157_v7, %v161_v8  ;;  %v210_v59 = vld [vmem:[%s9926_s1 + $0x578] sm:$0xff]  ;;  %v221_v8 = vld [vmem:[%s9926_s1 + $0x5d0] sm:$0xff] }
  0x9e   :  { %1804 = vmatpush1.bf16.msra.mxu0 %v5847_v9  ;;  %1886 = vmatpush1.bf16.msra.mxu1 %v5849_v10  ;;  %v158_v9 = vld [vmem:[%s9926_s1 + $0x3d8] sm:$0xff]  ;;  %v5914_v10 = vcombine.high %v150_v1, %v154_v3 }
  0x9f   :  { %1805 = vmatprep.subr.bf16.mxu0 %v5856_v11  ;;  %1887 = vmatprep.subr.bf16.mxu1 %v5858_v17  ;;  %v162_v11 = vld [vmem:[%s9926_s1 + $0x3f8] sm:$0xff]  ;;  %v5913_v17 = vcombine.low %v150_v1, %v154_v3 }
  0xa0   :  { %v218_v3 = vld [vmem:[%s9926_s1 + $0x5b8] sm:$0xff] }
  0xa2   :  { %1806 = vmatpush1.bf16.msra.mxu0 %v5855_v18  ;;  %1888 = vmatpush1.bf16.msra.mxu1 %v5857_v19  ;;  %v166_v18 = vld [vmem:[%s9926_s1 + $0x418] sm:$0xff] }
  0xa3   :  { %1807 = vmatprep.subr.bf16.mxu0 %v5864_v20  ;;  %1889 = vmatprep.subr.bf16.mxu1 %v5866_v26  ;;  %v170_v19 = vld [vmem:[%s9926_s1 + $0x438] sm:$0xff]  ;;  %v5922_v20 = vcombine.high %v158_v9, %v162_v11  ;;  %v5921_v26 = vcombine.low %v158_v9, %v162_v11  ;;  %v225_v9 = vld [vmem:[%s9926_s1 + $0x5f0] sm:$0xff] }
  0xa4   :  { %v222_v11 = vld [vmem:[%s9926_s1 + $0x5d8] sm:$0xff]  ;;  %v5983_v22 = vcombine.low %v221_v8, %v225_v9 }
  0xa6   :  { %1808 = vmatpush1.bf16.msra.mxu0 %v5863_v28  ;;  %1890 = vmatpush1.bf16.msra.mxu1 %v5865_v29  ;;  %v174_v28 = vld [vmem:[%s9926_s1 + $0x458] sm:$0xff] }
  0xa7   :  { %1809 = vmatprep.subr.bf16.mxu0 %v5872_v30  ;;  %1891 = vmatprep.subr.bf16.mxu1 %v5874_v33  ;;  %v178_v29 = vld [vmem:[%s9926_s1 + $0x478] sm:$0xff]  ;;  %v5930_v30 = vcombine.high %v166_v18, %v170_v19  ;;  %v5929_v33 = vcombine.low %v166_v18, %v170_v19  ;;  %v233_v18 = vld [vmem:[%s9926_s1 + $0x630] sm:$0xff] }
  0xaa   :  { %1810 = vmatpush1.bf16.msra.mxu0 %v5871_v35  ;;  %1892 = vmatpush1.bf16.msra.mxu1 %v5873_v36  ;;  %v182_v35 = vld [vmem:[%s9926_s1 + $0x498] sm:$0xff] }
  0xab   :  { %1811 = vmatprep.subr.bf16.mxu0 %v5880_v37  ;;  %1893 = vmatprep.subr.bf16.mxu1 %v5882_v41  ;;  %v186_v36 = vld [vmem:[%s9926_s1 + $0x4b8] sm:$0xff]  ;;  %v5938_v37 = vcombine.high %v174_v28, %v178_v29  ;;  %v5937_v41 = vcombine.low %v174_v28, %v178_v29  ;;  %v241_v28 = vld [vmem:[%s9926_s1 + $0x670] sm:$0xff] }
  0xac   :  { %v5945_v47 = vcombine.low %v182_v35, %v186_v36 }
  0xae   :  { %1812 = vmatpush1.bf16.msra.mxu0 %v5879_v43  ;;  %1894 = vmatpush1.bf16.msra.mxu1 %v5881_v44  ;;  %v190_v43 = vld [vmem:[%s9926_s1 + $0x4d8] sm:$0xff]  ;;  %v5946_v44 = vcombine.high %v182_v35, %v186_v36  ;;  %v249_v35 = vld [vmem:[%s9926_s1 + $0x6b0] sm:$0xff] }
  0xaf   :  { %1813 = vmatprep.subr.bf16.mxu0 %v5888_v45  ;;  %1895 = vmatprep.subr.bf16.mxu1 %v5890_v48  ;;  %v5943_v45 = vcombine.low %v181_v31, %v185_v32  ;;  %v5952_v48 = vcombine.high %v189_v39, %v193_v40  ;;  %v246_v36 = vld [vmem:[%s9926_s1 + $0x698] sm:$0xff] }
  0xb2   :  { %1814 = vmatpush1.bf16.msra.mxu0 %v5887_v50  ;;  %1896 = vmatpush1.bf16.msra.mxu1 %v5889_v51  ;;  %v5951_v51 = vcombine.low %v189_v39, %v193_v40  ;;  %v253_v40 = vld [vmem:[%s9926_s1 + $0x6d0] sm:$0xff] }
  0xb3   :  { %1815 = vmatprep.subr.bf16.mxu0 %v5896_v52  ;;  %1897 = vmatprep.subr.bf16.mxu1 %v5898_v58  ;;  %v205_v52 = vld [vmem:[%s9926_s1 + $0x550] sm:$0xff]  ;;  %v206_v58 = vld [vmem:[%s9926_s1 + $0x558] sm:$0xff] }
  0xb4   :  { %v5968_v1 = vcombine.high %v205_v52, %v209_v54 }
  0xb6   :  { %1816 = vmatpush1.bf16.msra.mxu0 %v5895_v60  ;;  %1898 = vmatpush1.bf16.msra.mxu1 %v5897_v61  ;;  %v5959_v61 = vcombine.low %v197_v57, %v201_v46  ;;  %v261_v46 = vld [vmem:[%s9926_s1 + $0x710] sm:$0xff] }
  0xb7   :  { %1817 = vmatprep.subr.bf16.mxu0 %v5904_v62  ;;  %1899 = vmatprep.subr.bf16.mxu1 %v5906_v2  ;;  %v213_v62 = vld [vmem:[%s9926_s1 + $0x590] sm:$0xff]  ;;  %v214_v2 = vld [vmem:[%s9926_s1 + $0x598] sm:$0xff] }
  0xb8   :  { %v5976_v7 = vcombine.high %v213_v62, %v217_v63  ;;  %v5975_v14 = vcombine.low %v213_v62, %v217_v63  ;;  %v5977_v16 = vcombine.low %v214_v2, %v218_v3  ;;  %v277_v63 = vld [vmem:[%s9926_s1 + $0x790] sm:$0xff] }
  0xba   :  { %1818 = vmatpush1.bf16.msra.mxu0 %v5903_v4  ;;  %1900 = vmatpush1.bf16.msra.mxu1 %v5905_v5  ;;  %v5970_v4 = vcombine.high %v206_v58, %v210_v59  ;;  %v5967_v5 = vcombine.low %v205_v52, %v209_v54  ;;  %v269_v54 = vld [vmem:[%s9926_s1 + $0x750] sm:$0xff] }
  0xbb   :  { %1819 = vmatprep.subr.bf16.mxu0 %v5912_v6  ;;  %1901 = vmatprep.subr.bf16.mxu1 %v5914_v10  ;;  %v5969_v6 = vcombine.low %v206_v58, %v210_v59  ;;  %v5978_v10 = vcombine.high %v214_v2, %v218_v3  ;;  %v270_v59 = vld [vmem:[%s9926_s1 + $0x758] sm:$0xff] }
  0xbc   :  { %v278_v3 = vld [vmem:[%s9926_s1 + $0x798] sm:$0xff] }
  0xbe   :  { %1820 = vmatpush1.bf16.msra.mxu0 %v5911_v13  ;;  %1902 = vmatpush1.bf16.msra.mxu1 %v5913_v17  ;;  %v226_v13 = vld [vmem:[%s9926_s1 + $0x5f8] sm:$0xff]  ;;  %v5984_v17 = vcombine.high %v221_v8, %v225_v9  ;;  %v289_v8 = vld [vmem:[%s9926_s1 + $0x7f0] sm:$0xff] }
  0xbf   :  { %1821 = vmatprep.subr.bf16.mxu0 %v5920_v53  ;;  %1903 = vmatprep.subr.bf16.mxu1 %v5922_v20  ;;  %v229_v53 = vld [vmem:[%s9926_s1 + $0x610] sm:$0xff]  ;;  %v5986_v19 = vcombine.high %v222_v11, %v226_v13  ;;  %v230_v20 = vld [vmem:[%s9926_s1 + $0x618] sm:$0xff]  ;;  %v5985_v25 = vcombine.low %v222_v11, %v226_v13 }
  0xc0   :  { %v5991_v31 = vcombine.low %v229_v53, %v233_v18  ;;  %v286_v11 = vld [vmem:[%s9926_s1 + $0x7d8] sm:$0xff] }
  0xc1   :  { %v290_v13 = vld [vmem:[%s9926_s1 + $0x7f8] sm:$0xff] }
  0xc2   :  { %1822 = vmatpush1.bf16.msra.mxu0 %v5919_v21  ;;  %1904 = vmatpush1.bf16.msra.mxu1 %v5921_v26  ;;  %v234_v21 = vld [vmem:[%s9926_s1 + $0x638] sm:$0xff]  ;;  %v5992_v26 = vcombine.high %v229_v53, %v233_v18  ;;  %v6050_v18 = vcombine.high %v286_v11, %v290_v13 }
  0xc3   :  { %1832 = vmatprep.subr.bf16.mxu0 %v5928_v27  ;;  %1914 = vmatprep.subr.bf16.mxu1 %v5930_v30  ;;  %v237_v27 = vld [vmem:[%s9926_s1 + $0x650] sm:$0xff]  ;;  %v5994_v29 = vcombine.high %v230_v20, %v234_v21  ;;  %v238_v30 = vld [vmem:[%s9926_s1 + $0x658] sm:$0xff]  ;;  %v5993_v32 = vcombine.low %v230_v20, %v234_v21  ;;  %v6049_v20 = vcombine.low %v286_v11, %v290_v13 }
  0xc4   :  { %v5999_v39 = vcombine.low %v237_v27, %v241_v28  ;;  %v6646_v21 = vld [vmem:[%s9928_s3 + $0x4] ss:$16 sps:$4 sm:$0xff]  }
  0xc5   :  { %1824 = vmatmul.mubr.bf16.vlgmr.msra.gmra.mrb[4].mxu0 %v7710_v12  ;;  %1906 = vmatmul.mubr.bf16.vlgmr.msra.gmra.mrb[4].mxu1 %v7710_v12  ;;  %v194_v12 = vld [vmem:[%s9926_s1 + $0x4f8] sm:$0xff] }
  0xc6   :  { %1833 = vmatpush1.bf16.msra.mxu0 %v5927_v15  ;;  %1915 = vmatpush1.bf16.msra.mxu1 %v5929_v33  ;;  %v5954_v50 = vcombine.high %v190_v43, %v194_v12  ;;  %v5953_v55 = vcombine.low %v190_v43, %v194_v12  ;;  %v242_v15 = vld [vmem:[%s9926_s1 + $0x678] sm:$0xff]  ;;  %v6000_v33 = vcombine.high %v237_v27, %v241_v28  ;;  %v6652_v27 = vld [vmem:[%s9928_s3 + $0x24] ss:$16 sps:$4 sm:$0xff]  }
  0xc7   :  { %1834 = vmatprep.subr.bf16.mxu0 %v5936_v34  ;;  %1916 = vmatprep.subr.bf16.mxu1 %v5938_v37  ;;  %v245_v34 = vld [vmem:[%s9926_s1 + $0x690] sm:$0xff]  ;;  %v6002_v37 = vcombine.high %v238_v30, %v242_v15  ;;  %v254_v12 = vld [vmem:[%s9926_s1 + $0x6d8] sm:$0xff] }
  0xc8   :  { %1864 = vmatprep.mubr.bf16.mxu0 %v7737_v23  ;;  %1946 = vmatprep.mubr.bf16.mxu1 %v7737_v23  ;;  %v202_v23 = vld [vmem:[%s9926_s1 + $0x538] sm:$0xff]  ;;  %v6008_v43 = vcombine.high %v245_v34, %v249_v35  ;;  %v6007_v57 = vcombine.low %v245_v34, %v249_v35  ;;  %v6662_v35 = vld [vmem:[%s9928_s3 + $0x60] ss:$16 sps:$4 sm:$0xff]  }
  0xc9   :  { %v5962_v60 = vcombine.high %v198_v49, %v202_v23  ;;  %v5961_v0 = vcombine.low %v198_v49, %v202_v23  ;;  %v262_v23 = vld [vmem:[%s9926_s1 + $0x718] sm:$0xff] }
  0xca   :  { %1835 = vmatpush1.bf16.msra.mxu0 %v5935_v38  ;;  %1917 = vmatpush1.bf16.msra.mxu1 %v5937_v41  ;;  %v250_v38 = vld [vmem:[%s9926_s1 + $0x6b8] sm:$0xff]  ;;  %v257_v41 = vld [vmem:[%s9926_s1 + $0x6f0] sm:$0xff] }
  0xcb   :  { %1836 = vmatprep.subr.bf16.mxu0 %v5944_v42  ;;  %1918 = vmatprep.subr.bf16.mxu1 %v5946_v44  ;;  %v6001_v42 = vcombine.low %v238_v30, %v242_v15  ;;  %v258_v44 = vld [vmem:[%s9926_s1 + $0x6f8] sm:$0xff]  ;;  %v6016_v49 = vcombine.high %v253_v40, %v257_v41  ;;  %v6015_v52 = vcombine.low %v253_v40, %v257_v41  ;;  %v6658_v15 = vld [vmem:[%s9928_s3 + $0x44] ss:$16 sps:$4 sm:$0xff]  }
  0xcc   :  { %v6655_v28 = vld [vmem:[%s9928_s3 + $0x2c] ss:$16 sps:$4 sm:$0xff]   ;;  %v6653_v30 = vld [vmem:[%s9928_s3 + $0x28] ss:$16 sps:$4 sm:$0xff]   ;;  %v6676_v41 = vld [vmem:[%s9928_s3 + $0xa4] ss:$16 sps:$4 sm:$0xff]  }
  0xcd   :  { %v6667_v34 = vld [vmem:[%s9928_s3 + $0x6c] ss:$16 sps:$4 sm:$0xff]   ;;  %v6671_v40 = vld [vmem:[%s9928_s3 + $0x88] ss:$16 sps:$4 sm:$0xff]  }
  0xce   :  { %1837 = vmatpush1.bf16.msra.mxu0 %v5943_v45  ;;  %1919 = vmatpush1.bf16.msra.mxu1 %v5945_v47  ;;  %v6010_v45 = vcombine.high %v246_v36, %v250_v38  ;;  %v265_v47 = vld [vmem:[%s9926_s1 + $0x730] sm:$0xff] }
  0xcf   :  { %1838 = vmatprep.subr.bf16.mxu0 %v5952_v48  ;;  %1920 = vmatprep.subr.bf16.mxu1 %v5954_v50  ;;  %v6009_v48 = vcombine.low %v246_v36, %v250_v38  ;;  %v266_v50 = vld [vmem:[%s9926_s1 + $0x738] sm:$0xff]  ;;  %v6024_v58 = vcombine.high %v261_v46, %v265_v47  ;;  %v6023_v62 = vcombine.low %v261_v46, %v265_v47  ;;  %v6688_v47 = vld [vmem:[%s9928_s3 + $0xe4] ss:$16 sps:$4 sm:$0xff]  }
  0xd0   :  { %v6665_v36 = vld [vmem:[%s9928_s3 + $0x68] ss:$16 sps:$4 sm:$0xff]   ;;  %v6673_v38 = vld [vmem:[%s9928_s3 + $0x8c] ss:$16 sps:$4 sm:$0xff]  }
  0xd1   :  { %v6683_v46 = vld [vmem:[%s9928_s3 + $0xc8] ss:$16 sps:$4 sm:$0xff]  }
  0xd2   :  { %1839 = vmatpush1.bf16.msra.mxu0 %v5951_v51  ;;  %1921 = vmatpush1.bf16.msra.mxu1 %v5953_v55  ;;  %v6018_v51 = vcombine.high %v254_v12, %v258_v44  ;;  %v273_v55 = vld [vmem:[%s9926_s1 + $0x770] sm:$0xff] }
  0xd3   :  { %1840 = vmatprep.subr.bf16.mxu0 %v5960_v56  ;;  %1922 = vmatprep.subr.bf16.mxu1 %v5962_v60  ;;  %v6017_v56 = vcombine.low %v254_v12, %v258_v44  ;;  %v274_v60 = vld [vmem:[%s9926_s1 + $0x778] sm:$0xff]  ;;  %v6032_v2 = vcombine.high %v269_v54, %v273_v55  ;;  %v6682_v44 = vld [vmem:[%s9928_s3 + $0xc4] ss:$16 sps:$4 sm:$0xff]  }
  0xd4   :  { %v6033_v9 = vcombine.low %v270_v59, %v274_v60  ;;  %v6677_v12 = vld [vmem:[%s9928_s3 + $0xa8] ss:$16 sps:$4 sm:$0xff]  }
  0xd6   :  { %1841 = vmatpush1.bf16.msra.mxu0 %v5959_v61  ;;  %1923 = vmatpush1.bf16.msra.mxu1 %v5961_v0  ;;  %v6026_v61 = vcombine.high %v262_v23, %v266_v50  ;;  %v281_v0 = vld [vmem:[%s9926_s1 + $0x7b0] sm:$0xff] }
  0xd7   :  { %1842 = vmatprep.subr.bf16.mxu0 %v5968_v1  ;;  %1924 = vmatprep.subr.bf16.mxu1 %v5970_v4  ;;  %v6025_v1 = vcombine.low %v262_v23, %v266_v50  ;;  %v282_v4 = vld [vmem:[%s9926_s1 + $0x7b8] sm:$0xff]  ;;  %v6694_v50 = vld [vmem:[%s9928_s3 + $0x104] ss:$16 sps:$4 sm:$0xff]  }
  0xd8   :  { %v6689_v23 = vld [vmem:[%s9928_s3 + $0xe8] ss:$16 sps:$4 sm:$0xff]  }
  0xda   :  { %1843 = vmatpush1.bf16.msra.mxu0 %v5967_v5  ;;  %1925 = vmatpush1.bf16.msra.mxu1 %v5969_v6  ;;  %v6034_v5 = vcombine.high %v270_v59, %v274_v60  ;;  %v6031_v6 = vcombine.low %v269_v54, %v273_v55  ;;  %v6695_v54 = vld [vmem:[%s9928_s3 + $0x108] ss:$16 sps:$4 sm:$0xff]   ;;  %v6700_v55 = vld [vmem:[%s9928_s3 + $0x124] ss:$16 sps:$4 sm:$0xff]  }
  0xdb   :  { %1844 = vmatprep.subr.bf16.mxu0 %v5976_v7  ;;  %1926 = vmatprep.subr.bf16.mxu1 %v5978_v10  ;;  %v285_v7 = vld [vmem:[%s9926_s1 + $0x7d0] sm:$0xff]  ;;  %v6040_v10 = vcombine.high %v277_v63, %v281_v0  ;;  %v6701_v59 = vld [vmem:[%s9928_s3 + $0x128] ss:$16 sps:$4 sm:$0xff]  }
  0xdc   :  { %v6048_v53 = vcombine.high %v285_v7, %v289_v8  ;;  %v6706_v60 = vld [vmem:[%s9928_s3 + $0x144] ss:$16 sps:$4 sm:$0xff]  }
  0xde   :  { %1845 = vmatpush1.bf16.msra.mxu0 %v5975_v14  ;;  %1927 = vmatpush1.bf16.msra.mxu1 %v5977_v16  ;;  %v6042_v14 = vcombine.high %v278_v3, %v282_v4  ;;  %v6039_v16 = vcombine.low %v277_v63, %v281_v0  ;;  %v6707_v63 = vld [vmem:[%s9928_s3 + $0x148] ss:$16 sps:$4 sm:$0xff]   ;;  %v6712_v0 = vld [vmem:[%s9928_s3 + $0x164] ss:$16 sps:$4 sm:$0xff]  }
  0xdf   :  { %1846 = vmatprep.subr.bf16.mxu0 %v5984_v17  ;;  %1928 = vmatprep.subr.bf16.mxu1 %v5986_v19  ;;  %v6041_v17 = vcombine.low %v278_v3, %v282_v4  ;;  %v6047_v19 = vcombine.low %v285_v7, %v289_v8  ;;  %v6713_v3 = vld [vmem:[%s9928_s3 + $0x168] ss:$16 sps:$4 sm:$0xff]   ;;  %v6718_v4 = vld [vmem:[%s9928_s3 + $0x184] ss:$16 sps:$4 sm:$0xff]  }
  0xe0   :  { %v6719_v7 = vld [vmem:[%s9928_s3 + $0x188] ss:$16 sps:$4 sm:$0xff]   ;;  %v6724_v8 = vld [vmem:[%s9928_s3 + $0x1a4] ss:$16 sps:$4 sm:$0xff]  }
  0xe2   :  { %1847 = vmatpush1.bf16.msra.mxu0 %v5983_v22  ;;  %1929 = vmatpush1.bf16.msra.mxu1 %v5985_v25  ;;  %v6649_v22 = vld [vmem:[%s9928_s3 + $0xc] ss:$16 sps:$4 sm:$0xff]   ;;  %v6644_v25 = vld [vmem:[%s9928_s3] ss:$16 sps:$4 sm:$0xff]  }
  0xe3   :  { %1848 = vmatprep.subr.bf16.mxu0 %v5992_v26  ;;  %1930 = vmatprep.subr.bf16.mxu1 %v5994_v29  ;;  %v6647_v26 = vld [vmem:[%s9928_s3 + $0x8] ss:$16 sps:$4 sm:$0xff]   ;;  %v6650_v29 = vld [vmem:[%s9928_s3 + $0x20] ss:$16 sps:$4 sm:$0xff]  }
  0xe6   :  { %1849 = vmatpush1.bf16.msra.mxu0 %v5991_v31  ;;  %1931 = vmatpush1.bf16.msra.mxu1 %v5993_v32  ;;  %v6661_v31 = vld [vmem:[%s9928_s3 + $0x4c] ss:$16 sps:$4 sm:$0xff]   ;;  %v6659_v32 = vld [vmem:[%s9928_s3 + $0x48] ss:$16 sps:$4 sm:$0xff]  }
  0xe7   :  { %1850 = vmatprep.subr.bf16.mxu0 %v6000_v33  ;;  %1932 = vmatprep.subr.bf16.mxu1 %v6002_v37  ;;  %v6664_v33 = vld [vmem:[%s9928_s3 + $0x64] ss:$16 sps:$4 sm:$0xff]  }
  0xe8   :  { %v6670_v37 = vld [vmem:[%s9928_s3 + $0x84] ss:$16 sps:$4 sm:$0xff]  }
  0xea   :  { %1851 = vmatpush1.bf16.msra.mxu0 %v5999_v39  ;;  %1933 = vmatpush1.bf16.msra.mxu1 %v6001_v42  ;;  %v6668_v39 = vld [vmem:[%s9928_s3 + $0x80] ss:$16 sps:$4 sm:$0xff]   ;;  %v6679_v42 = vld [vmem:[%s9928_s3 + $0xac] ss:$16 sps:$4 sm:$0xff]  }
  0xeb   :  { %1852 = vmatprep.subr.bf16.mxu0 %v6008_v43  ;;  %1934 = vmatprep.subr.bf16.mxu1 %v6010_v45  ;;  %v6674_v43 = vld [vmem:[%s9928_s3 + $0xa0] ss:$16 sps:$4 sm:$0xff]   ;;  %v6685_v45 = vld [vmem:[%s9928_s3 + $0xcc] ss:$16 sps:$4 sm:$0xff]  }
  0xee   :  { %1853 = vmatpush1.bf16.msra.mxu0 %v6007_v57  ;;  %1935 = vmatpush1.bf16.msra.mxu1 %v6009_v48  ;;  %v6680_v57 = vld [vmem:[%s9928_s3 + $0xc0] ss:$16 sps:$4 sm:$0xff]   ;;  %v6691_v48 = vld [vmem:[%s9928_s3 + $0xec] ss:$16 sps:$4 sm:$0xff]  }
  0xef   :  { %1854 = vmatprep.subr.bf16.mxu0 %v6016_v49  ;;  %1936 = vmatprep.subr.bf16.mxu1 %v6018_v51  ;;  %v6686_v49 = vld [vmem:[%s9928_s3 + $0xe0] ss:$16 sps:$4 sm:$0xff]   ;;  %v6697_v51 = vld [vmem:[%s9928_s3 + $0x10c] ss:$16 sps:$4 sm:$0xff]  }
  0xf2   :  { %1855 = vmatpush1.bf16.msra.mxu0 %v6015_v52  ;;  %1937 = vmatpush1.bf16.msra.mxu1 %v6017_v56  ;;  %v6692_v52 = vld [vmem:[%s9928_s3 + $0x100] ss:$16 sps:$4 sm:$0xff]   ;;  %v6703_v56 = vld [vmem:[%s9928_s3 + $0x12c] ss:$16 sps:$4 sm:$0xff]  }
  0xf3   :  { %1856 = vmatprep.subr.bf16.mxu0 %v6024_v58  ;;  %1938 = vmatprep.subr.bf16.mxu1 %v6026_v61  ;;  %v6698_v58 = vld [vmem:[%s9928_s3 + $0x120] ss:$16 sps:$4 sm:$0xff]   ;;  %v6709_v61 = vld [vmem:[%s9928_s3 + $0x14c] ss:$16 sps:$4 sm:$0xff]  }
  0xf6   :  { %1857 = vmatpush1.bf16.msra.mxu0 %v6023_v62  ;;  %1939 = vmatpush1.bf16.msra.mxu1 %v6025_v1  ;;  %v6704_v62 = vld [vmem:[%s9928_s3 + $0x140] ss:$16 sps:$4 sm:$0xff]   ;;  %v6715_v1 = vld [vmem:[%s9928_s3 + $0x16c] ss:$16 sps:$4 sm:$0xff]  }
  0xf7   :  { %1858 = vmatprep.subr.bf16.mxu0 %v6032_v2  ;;  %1940 = vmatprep.subr.bf16.mxu1 %v6034_v5  ;;  %v6710_v2 = vld [vmem:[%s9928_s3 + $0x160] ss:$16 sps:$4 sm:$0xff]   ;;  %v6721_v5 = vld [vmem:[%s9928_s3 + $0x18c] ss:$16 sps:$4 sm:$0xff]  }
  0xfa   :  { %1859 = vmatpush1.bf16.msra.mxu0 %v6031_v6  ;;  %1941 = vmatpush1.bf16.msra.mxu1 %v6033_v9  ;;  %v6716_v6 = vld [vmem:[%s9928_s3 + $0x180] ss:$16 sps:$4 sm:$0xff]   ;;  %v6727_v9 = vld [vmem:[%s9928_s3 + $0x1ac] ss:$16 sps:$4 sm:$0xff]  }
  0xfb   :  { %1860 = vmatprep.subr.bf16.mxu0 %v6040_v10  ;;  %1942 = vmatprep.subr.bf16.mxu1 %v6042_v14  ;;  %v6722_v10 = vld [vmem:[%s9928_s3 + $0x1a0] ss:$16 sps:$4 sm:$0xff]  }
  0xfe   :  { %1861 = vmatpush1.bf16.msra.mxu0 %v6039_v16  ;;  %1943 = vmatpush1.bf16.msra.mxu1 %v6041_v17 }
  0xff   :  { %1862 = vmatprep.subr.bf16.mxu0 %v6048_v53  ;;  %1944 = vmatprep.subr.bf16.mxu1 %v6050_v18 }
 0x102   :  { %1863 = vmatpush1.bf16.msra.mxu0 %v6047_v19  ;;  %1945 = vmatpush1.bf16.msra.mxu1 %v6049_v20 }
 0x103   :  { %3529 = vmatprep.subr.bf16.mxu0 %v6646_v21  ;;  %3693 = vmatprep.subr.bf16.mxu1 %v6649_v22 }
 0x105   :  { %1865 = vmatmul.mubr.bf16.vlgmr.msra.gmra.mrb[4].mxu0 %v7925_v24  ;;  %1947 = vmatmul.mubr.bf16.vlgmr.msra.gmra.mrb[4].mxu1 %v7925_v24  ;;  %v6656_v24 = vld [vmem:[%s9928_s3 + $0x40] ss:$16 sps:$4 sm:$0xff]  }
 0x106   :  { %3530 = vmatpush1.bf16.msra.mxu0 %v6644_v25  ;;  %3694 = vmatpush1.bf16.msra.mxu1 %v6647_v26 }
 0x107   :  { %3531 = vmatprep.subr.bf16.mxu0 %v6652_v27  ;;  %3695 = vmatprep.subr.bf16.mxu1 %v6655_v28 }
 0x10a   :  { %3532 = vmatpush1.bf16.msra.mxu0 %v6650_v29  ;;  %3696 = vmatpush1.bf16.msra.mxu1 %v6653_v30 }
 0x10b   :  { %3533 = vmatprep.subr.bf16.mxu0 %v6658_v15  ;;  %3697 = vmatprep.subr.bf16.mxu1 %v6661_v31 }
 0x10e   :  { %3534 = vmatpush1.bf16.msra.mxu0 %v6656_v24  ;;  %3698 = vmatpush1.bf16.msra.mxu1 %v6659_v32 }
 0x10f   :  { %3535 = vmatprep.subr.bf16.mxu0 %v6664_v33  ;;  %3699 = vmatprep.subr.bf16.mxu1 %v6667_v34 }
 0x112   :  { %3536 = vmatpush1.bf16.msra.mxu0 %v6662_v35  ;;  %3700 = vmatpush1.bf16.msra.mxu1 %v6665_v36 }
 0x113   :  { %3537 = vmatprep.subr.bf16.mxu0 %v6670_v37  ;;  %3701 = vmatprep.subr.bf16.mxu1 %v6673_v38 }
 0x116   :  { %3538 = vmatpush1.bf16.msra.mxu0 %v6668_v39  ;;  %3702 = vmatpush1.bf16.msra.mxu1 %v6671_v40 }
 0x117   :  { %3539 = vmatprep.subr.bf16.mxu0 %v6676_v41  ;;  %3703 = vmatprep.subr.bf16.mxu1 %v6679_v42 }
 0x11a   :  { %3540 = vmatpush1.bf16.msra.mxu0 %v6674_v43  ;;  %3704 = vmatpush1.bf16.msra.mxu1 %v6677_v12 }
 0x11b   :  { %3541 = vmatprep.subr.bf16.mxu0 %v6682_v44  ;;  %3705 = vmatprep.subr.bf16.mxu1 %v6685_v45 }
 0x11e   :  { %3542 = vmatpush1.bf16.msra.mxu0 %v6680_v57  ;;  %3706 = vmatpush1.bf16.msra.mxu1 %v6683_v46 }
 0x11f   :  { %3543 = vmatprep.subr.bf16.mxu0 %v6688_v47  ;;  %3707 = vmatprep.subr.bf16.mxu1 %v6691_v48 }
 0x122   :  { %3544 = vmatpush1.bf16.msra.mxu0 %v6686_v49  ;;  %3708 = vmatpush1.bf16.msra.mxu1 %v6689_v23 }
 0x123   :  { %3545 = vmatprep.subr.bf16.mxu0 %v6694_v50  ;;  %3709 = vmatprep.subr.bf16.mxu1 %v6697_v51 }
 0x126   :  { %3546 = vmatpush1.bf16.msra.mxu0 %v6692_v52  ;;  %3710 = vmatpush1.bf16.msra.mxu1 %v6695_v54 }
 0x127   :  { %3547 = vmatprep.subr.bf16.mxu0 %v6700_v55  ;;  %3711 = vmatprep.subr.bf16.mxu1 %v6703_v56 }
 0x12a   :  { %3548 = vmatpush1.bf16.msra.mxu0 %v6698_v58  ;;  %3712 = vmatpush1.bf16.msra.mxu1 %v6701_v59 }
 0x12b   :  { %3549 = vmatprep.subr.bf16.mxu0 %v6706_v60  ;;  %3713 = vmatprep.subr.bf16.mxu1 %v6709_v61 }
 0x12e   :  { %3550 = vmatpush1.bf16.msra.mxu0 %v6704_v62  ;;  %3714 = vmatpush1.bf16.msra.mxu1 %v6707_v63 }
 0x12f   :  { %3551 = vmatprep.subr.bf16.mxu0 %v6712_v0  ;;  %3715 = vmatprep.subr.bf16.mxu1 %v6715_v1 }
 0x132   :  { %3552 = vmatpush1.bf16.msra.mxu0 %v6710_v2  ;;  %3716 = vmatpush1.bf16.msra.mxu1 %v6713_v3 }
 0x133   :  { %3553 = vmatprep.subr.bf16.mxu0 %v6718_v4  ;;  %3717 = vmatprep.subr.bf16.mxu1 %v6721_v5 }
 0x136   :  { %3554 = vmatpush1.bf16.msra.mxu0 %v6716_v6 }
 0x137   :  { %14 = vsyncpa [#allocation3], 0  ;;  %3718 = vmatpush1.bf16.msra.mxu1 %v6719_v7  ;;  %3555 = vmatprep.subr.bf16.mxu0 %v6724_v8  ;;  %v6725_v11 = vld [vmem:[%s9928_s3 + $0x1a8] ss:$16 sps:$4 sm:$0xff]   ;;  %v6730_v13 = vld [vmem:[%s9928_s3 + $0x1c4] ss:$16 sps:$4 sm:$0xff]   ;;  %v293_v25 = vlaneseq }
 0x138   :  { %3719 = vmatprep.subr.bf16.mxu1 %v6727_v9  ;;  %v6733_v14 = vld [vmem:[%s9928_s3 + $0x1cc] ss:$16 sps:$4 sm:$0xff]   ;;  %v6728_v16 = vld [vmem:[%s9928_s3 + $0x1c0] ss:$16 sps:$4 sm:$0xff]   ;;  %v6731_v17 = vld [vmem:[%s9928_s3 + $0x1c8] ss:$16 sps:$4 sm:$0xff]  }
 0x139   :  { %v6736_v53 = vld [vmem:[%s9928_s3 + $0x1e4] ss:$16 sps:$4 sm:$0xff]   ;;  %v6739_v18 = vld [vmem:[%s9928_s3 + $0x1ec] ss:$16 sps:$4 sm:$0xff]   ;;  %v6734_v19 = vld [vmem:[%s9928_s3 + $0x1e0] ss:$16 sps:$4 sm:$0xff]  }
 0x13a   :  { %3556 = vmatpush1.bf16.msra.mxu0 %v6722_v10  ;;  %v6737_v20 = vld [vmem:[%s9928_s3 + $0x1e8] ss:$16 sps:$4 sm:$0xff]   ;;  %v6742_v21 = vld [vmem:[%s9928_s3 + $0x204] ss:$16 sps:$4 sm:$0xff]   ;;  %v6745_v22 = vld [vmem:[%s9928_s3 + $0x20c] ss:$16 sps:$4 sm:$0xff]  }
 0x13b   :  { %3720 = vmatpush1.bf16.msra.mxu1 %v6725_v11  ;;  %3557 = vmatprep.subr.bf16.mxu0 %v6730_v13  ;;  %v8495_v26 = vshrl.u32 %v293_v25, 7  ;;  %v8503_v28 = vld [vmem:[%s9927_s2] sm:$0xff]  ;;  %v6743_v46 = vld [vmem:[%s9928_s3 + $0x208] ss:$16 sps:$4 sm:$0xff]   ;;  %v6751_v49 = vld [vmem:[%s9928_s3 + $0x22c] ss:$16 sps:$4 sm:$0xff]  }
 0x13c   :  { %3721 = vmatprep.subr.bf16.mxu1 %v6733_v14  ;;  %v6740_v57 = vld [vmem:[%s9928_s3 + $0x200] ss:$16 sps:$4 sm:$0xff]   ;;  %v6748_v48 = vld [vmem:[%s9928_s3 + $0x224] ss:$16 sps:$4 sm:$0xff]   ;;  %v6749_v51 = vld [vmem:[%s9928_s3 + $0x228] ss:$16 sps:$4 sm:$0xff]  }
 0x13d   :  { %v8498_v27 = vsub.s32 0, %v8495_v26  ;;  %v8506_v29 = vsub.s32 1, %v8495_v26  ;;  %v8509_v30 = vsub.s32 3, %v8495_v26  ;;  %v6746_v50 = vld [vmem:[%s9928_s3 + $0x220] ss:$16 sps:$4 sm:$0xff]  }
 0x13e   :  { %3558 = vmatpush1.bf16.msra.mxu0 %v6728_v16  ;;  %v6754_v52 = vld [vmem:[%s9928_s3 + $0x244] ss:$16 sps:$4 sm:$0xff]   ;;  %v6757_v54 = vld [vmem:[%s9928_s3 + $0x24c] ss:$16 sps:$4 sm:$0xff]   ;;  %v6752_v55 = vld [vmem:[%s9928_s3 + $0x240] ss:$16 sps:$4 sm:$0xff]  }
 0x13f   :  { %3722 = vmatpush1.bf16.msra.mxu1 %v6731_v17  ;;  %3559 = vmatprep.subr.bf16.mxu0 %v6736_v53  ;;  %v296_v15 = vrot.slane %v8503_v28, %v8498_v27  ;;  %v300_v31 = vrot.slane %v8503_v28, %v8506_v29  ;;  %v308_v24 = vrot.slane %v8503_v28, %v8509_v30  ;;  %v6755_v56 = vld [vmem:[%s9928_s3 + $0x248] ss:$16 sps:$4 sm:$0xff]   ;;  %v6760_v58 = vld [vmem:[%s9928_s3 + $0x264] ss:$16 sps:$4 sm:$0xff]   ;;  %v6763_v59 = vld [vmem:[%s9928_s3 + $0x26c] ss:$16 sps:$4 sm:$0xff]  }
 0x140   :  { %3723 = vmatprep.subr.bf16.mxu1 %v6739_v18  ;;  %v6758_v60 = vld [vmem:[%s9928_s3 + $0x260] ss:$16 sps:$4 sm:$0xff]   ;;  %v6761_v61 = vld [vmem:[%s9928_s3 + $0x268] ss:$16 sps:$4 sm:$0xff]   ;;  %v6766_v62 = vld [vmem:[%s9928_s3 + $0x284] ss:$16 sps:$4 sm:$0xff]  }
 0x141   :  { %v6769_v63 = vld [vmem:[%s9928_s3 + $0x28c] ss:$16 sps:$4 sm:$0xff]   ;;  %v6764_v0 = vld [vmem:[%s9928_s3 + $0x280] ss:$16 sps:$4 sm:$0xff]   ;;  %v6767_v1 = vld [vmem:[%s9928_s3 + $0x288] ss:$16 sps:$4 sm:$0xff]  }
 0x142   :  { %3560 = vmatpush1.bf16.msra.mxu0 %v6734_v19  ;;  %v6772_v2 = vld [vmem:[%s9928_s3 + $0x2a4] ss:$16 sps:$4 sm:$0xff]   ;;  %v6775_v3 = vld [vmem:[%s9928_s3 + $0x2ac] ss:$16 sps:$4 sm:$0xff]   ;;  %v6770_v4 = vld [vmem:[%s9928_s3 + $0x2a0] ss:$16 sps:$4 sm:$0xff]  }
 0x143   :  { %3724 = vmatpush1.bf16.msra.mxu1 %v6737_v20  ;;  %3570 = vmatprep.subr.bf16.mxu0 %v6742_v21  ;;  %v6773_v5 = vld [vmem:[%s9928_s3 + $0x2a8] ss:$16 sps:$4 sm:$0xff]   ;;  %v6778_v6 = vld [vmem:[%s9928_s3 + $0x2c4] ss:$16 sps:$4 sm:$0xff]   ;;  %v6781_v7 = vld [vmem:[%s9928_s3 + $0x2cc] ss:$16 sps:$4 sm:$0xff]  }
 0x144   :  { %3734 = vmatprep.subr.bf16.mxu1 %v6745_v22  ;;  %v6776_v8 = vld [vmem:[%s9928_s3 + $0x2c0] ss:$16 sps:$4 sm:$0xff]   ;;  %v6779_v9 = vld [vmem:[%s9928_s3 + $0x2c8] ss:$16 sps:$4 sm:$0xff]   ;;  %v6784_v10 = vld [vmem:[%s9928_s3 + $0x2e4] ss:$16 sps:$4 sm:$0xff]  }
 0x145   :  { %v6787_v11 = vld [vmem:[%s9928_s3 + $0x2ec] ss:$16 sps:$4 sm:$0xff]   ;;  %v6782_v13 = vld [vmem:[%s9928_s3 + $0x2e0] ss:$16 sps:$4 sm:$0xff]   ;;  %v6785_v14 = vld [vmem:[%s9928_s3 + $0x2e8] ss:$16 sps:$4 sm:$0xff]  }
 0x146   :  { %v6790_v16 = vld [vmem:[%s9928_s3 + $0x304] ss:$16 sps:$4 sm:$0xff]   ;;  %v6793_v17 = vld [vmem:[%s9928_s3 + $0x30c] ss:$16 sps:$4 sm:$0xff]   ;;  %v6788_v53 = vld [vmem:[%s9928_s3 + $0x300] ss:$16 sps:$4 sm:$0xff]  }
 0x147   :  { %v6791_v18 = vld [vmem:[%s9928_s3 + $0x308] ss:$16 sps:$4 sm:$0xff]   ;;  %v6796_v19 = vld [vmem:[%s9928_s3 + $0x324] ss:$16 sps:$4 sm:$0xff]   ;;  %v6799_v20 = vld [vmem:[%s9928_s3 + $0x32c] ss:$16 sps:$4 sm:$0xff]  }
 0x148   :  { %v6794_v21 = vld [vmem:[%s9928_s3 + $0x320] ss:$16 sps:$4 sm:$0xff]   ;;  %v6797_v22 = vld [vmem:[%s9928_s3 + $0x328] ss:$16 sps:$4 sm:$0xff]   ;;  %v6802_v25 = vld [vmem:[%s9928_s3 + $0x344] ss:$16 sps:$4 sm:$0xff]  }
 0x158   :  { %v1702_v32 = vpop.f32.mrb[0].mxu0  ;;  %v8517_v34 = vpop.f32.mrb[0].mxu1 }
 0x159   :  { %v6563_v33 = vadd.f32 %v1702_v32, %v296_v15  ;;  %v1704_v35 = vpop.f32.mrb[1].mxu0  ;;  %v1786_v37 = vpop.f32.mrb[1].mxu1  ;;  %v6805_v15 = vld [vmem:[%s9928_s3 + $0x34c] ss:$16 sps:$4 sm:$0xff]   ;;  %v6808_v32 = vld [vmem:[%s9928_s3 + $0x364] ss:$16 sps:$4 sm:$0xff]  }
 0x15a   :  { %v6564_v36 = vadd.f32 %v1704_v35, %v300_v31  ;;  %v1706_v38 = vpop.f32.mrb[2].mxu0  ;;  %v6566_v40 = vadd.f32 %v1786_v37, %v308_v24  ;;  %v1788_v41 = vpop.f32.mrb[2].mxu1  ;;  %v6800_v31 = vld [vmem:[%s9928_s3 + $0x340] ss:$16 sps:$4 sm:$0xff]   ;;  %v6803_v24 = vld [vmem:[%s9928_s3 + $0x348] ss:$16 sps:$4 sm:$0xff]  }
 0x15b   :  { %v1955_v39 = vmax.f32 %v6563_v33, 0.0  ;;  %v1707_v42 = vpop.f32.mrb[3].mxu0  ;;  %v1789_v12 = vpop.f32.mrb[3].mxu1  ;;  %v6811_v33 = vld [vmem:[%s9928_s3 + $0x36c] ss:$16 sps:$4 sm:$0xff]   ;;  %v8670_v41 = vsub.s32 2, %v8495_v26 }
 0x15c   :  { %v1956_v43 = vmax.f32 %v6564_v36, 0.0  ;;  %v1958_v44 = vmax.f32 %v6566_v40, 0.0  ;;  %v6806_v35 = vld [vmem:[%s9928_s3 + $0x360] ss:$16 sps:$4 sm:$0xff]   ;;  %v6809_v36 = vld [vmem:[%s9928_s3 + $0x368] ss:$16 sps:$4 sm:$0xff]  }
 0x15d   :  { %v1963_v47 = vpack.c.bf16 %v1955_v39, %v1955_v39  ;;  %v6814_v37 = vld [vmem:[%s9928_s3 + $0x384] ss:$16 sps:$4 sm:$0xff]   ;;  %v6817_v38 = vld [vmem:[%s9928_s3 + $0x38c] ss:$16 sps:$4 sm:$0xff]   ;;  %v6812_v39 = vld [vmem:[%s9928_s3 + $0x380] ss:$16 sps:$4 sm:$0xff]  }
 0x15e   :  { %v1964_v45 = vpack.c.bf16 %v1956_v43, %v1956_v43  ;;  %v1966_v23 = vpack.c.bf16 %v1958_v44, %v1958_v44  ;;  %v6815_v40 = vld [vmem:[%s9928_s3 + $0x388] ss:$16 sps:$4 sm:$0xff]   ;;  %v6820_v42 = vld [vmem:[%s9928_s3 + $0x3a4] ss:$16 sps:$4 sm:$0xff]   ;;  %v6823_v43 = vld [vmem:[%s9928_s3 + $0x3ac] ss:$16 sps:$4 sm:$0xff]  }
 0x15f   :  { %v6818_v12 = vld [vmem:[%s9928_s3 + $0x3a0] ss:$16 sps:$4 sm:$0xff]   ;;  %v6821_v44 = vld [vmem:[%s9928_s3 + $0x3a8] ss:$16 sps:$4 sm:$0xff]  }
 0x160   :  { %3561 = vmatprep.mubr.bf16.mxu0 %v1964_v45  ;;  %3725 = vmatprep.mubr.bf16.mxu1 %v1964_v45  ;;  %v304_v45 = vrot.slane %v8503_v28, %v8670_v41 }
 0x161   :  { %3562 = vmatmul.mubr.bf16.vlgmr.msra.gmra.mrb[8].mxu0 %v1963_v47  ;;  %3726 = vmatmul.mubr.bf16.vlgmr.msra.gmra.mrb[8].mxu1 %v1963_v47  ;;  %v6824_v47 = vld [vmem:[%s9928_s3 + $0x3c0] ss:$16 sps:$4 sm:$0xff]  }
 0x162   :  { %3571 = vmatpush1.bf16.msra.mxu0 %v6740_v57  ;;  %3735 = vmatpush1.bf16.msra.mxu1 %v6743_v46  ;;  %v6826_v57 = vld [vmem:[%s9928_s3 + $0x3c4] ss:$16 sps:$4 sm:$0xff]   ;;  %v6829_v46 = vld [vmem:[%s9928_s3 + $0x3cc] ss:$16 sps:$4 sm:$0xff]  }
 0x163   :  { %3602 = vmatprep.mubr.bf16.mxu0 %v1966_v23  ;;  %3766 = vmatprep.mubr.bf16.mxu1 %v1966_v23  ;;  %v6832_v23 = vld [vmem:[%s9928_s3 + $0x3e4] ss:$16 sps:$4 sm:$0xff]  }
 0x164   :  { %3572 = vmatprep.subr.bf16.mxu0 %v6748_v48  ;;  %3736 = vmatprep.subr.bf16.mxu1 %v6751_v49  ;;  %v6827_v48 = vld [vmem:[%s9928_s3 + $0x3c8] ss:$16 sps:$4 sm:$0xff]   ;;  %v6565_v49 = vadd.f32 %v8517_v34, %v304_v45  ;;  %v6902_v45 = vld [vmem:[%s9928_s3 + $0x560] ss:$16 sps:$4 sm:$0xff]  }
 0x165   :  { %v6833_v34 = vld [vmem:[%s9928_s3 + $0x3e8] ss:$16 sps:$4 sm:$0xff]  }
 0x166   :  { %3573 = vmatpush1.bf16.msra.mxu0 %v6746_v50  ;;  %3737 = vmatpush1.bf16.msra.mxu1 %v6749_v51  ;;  %v6835_v50 = vld [vmem:[%s9928_s3 + $0x3ec] ss:$16 sps:$4 sm:$0xff]   ;;  %v6830_v51 = vld [vmem:[%s9928_s3 + $0x3e0] ss:$16 sps:$4 sm:$0xff]  }
 0x167   :  { %3574 = vmatprep.subr.bf16.mxu0 %v6754_v52  ;;  %3738 = vmatprep.subr.bf16.mxu1 %v6757_v54  ;;  %v1957_v52 = vmax.f32 %v6565_v49, 0.0  ;;  %v6838_v54 = vld [vmem:[%s9928_s3 + $0x404] ss:$16 sps:$4 sm:$0xff]   ;;  %v6911_v49 = vld [vmem:[%s9928_s3 + $0x588] ss:$16 sps:$4 sm:$0xff]  }
 0x16a   :  { %3575 = vmatpush1.bf16.msra.mxu0 %v6752_v55  ;;  %3739 = vmatpush1.bf16.msra.mxu1 %v6755_v56  ;;  %v6841_v55 = vld [vmem:[%s9928_s3 + $0x40c] ss:$16 sps:$4 sm:$0xff]   ;;  %v6836_v56 = vld [vmem:[%s9928_s3 + $0x400] ss:$16 sps:$4 sm:$0xff]  }
 0x16b   :  { %3576 = vmatprep.subr.bf16.mxu0 %v6760_v58  ;;  %3740 = vmatprep.subr.bf16.mxu1 %v6763_v59  ;;  %v6839_v58 = vld [vmem:[%s9928_s3 + $0x408] ss:$16 sps:$4 sm:$0xff]   ;;  %v1965_v59 = vpack.c.bf16 %v1957_v52, %v1957_v52 }
 0x16c   :  { %v6917_v52 = vld [vmem:[%s9928_s3 + $0x5a8] ss:$16 sps:$4 sm:$0xff]  }
 0x16e   :  { %3577 = vmatpush1.bf16.msra.mxu0 %v6758_v60  ;;  %3741 = vmatpush1.bf16.msra.mxu1 %v6761_v61  ;;  %v6844_v60 = vld [vmem:[%s9928_s3 + $0x424] ss:$16 sps:$4 sm:$0xff]   ;;  %v6847_v61 = vld [vmem:[%s9928_s3 + $0x42c] ss:$16 sps:$4 sm:$0xff]  }
 0x16f   :  { %3578 = vmatprep.subr.bf16.mxu0 %v6766_v62  ;;  %3742 = vmatprep.subr.bf16.mxu1 %v6769_v63  ;;  %v6842_v62 = vld [vmem:[%s9928_s3 + $0x420] ss:$16 sps:$4 sm:$0xff]   ;;  %v6845_v63 = vld [vmem:[%s9928_s3 + $0x428] ss:$16 sps:$4 sm:$0xff]  }
 0x172   :  { %3579 = vmatpush1.bf16.msra.mxu0 %v6764_v0  ;;  %3743 = vmatpush1.bf16.msra.mxu1 %v6767_v1  ;;  %v6850_v0 = vld [vmem:[%s9928_s3 + $0x444] ss:$16 sps:$4 sm:$0xff]   ;;  %v6853_v1 = vld [vmem:[%s9928_s3 + $0x44c] ss:$16 sps:$4 sm:$0xff]  }
 0x173   :  { %3580 = vmatprep.subr.bf16.mxu0 %v6772_v2  ;;  %3744 = vmatprep.subr.bf16.mxu1 %v6775_v3  ;;  %v6848_v2 = vld [vmem:[%s9928_s3 + $0x440] ss:$16 sps:$4 sm:$0xff]   ;;  %v6851_v3 = vld [vmem:[%s9928_s3 + $0x448] ss:$16 sps:$4 sm:$0xff]  }
 0x176   :  { %3581 = vmatpush1.bf16.msra.mxu0 %v6770_v4  ;;  %3745 = vmatpush1.bf16.msra.mxu1 %v6773_v5  ;;  %v6856_v4 = vld [vmem:[%s9928_s3 + $0x464] ss:$16 sps:$4 sm:$0xff]   ;;  %v6859_v5 = vld [vmem:[%s9928_s3 + $0x46c] ss:$16 sps:$4 sm:$0xff]  }
 0x177   :  { %3582 = vmatprep.subr.bf16.mxu0 %v6778_v6  ;;  %3746 = vmatprep.subr.bf16.mxu1 %v6781_v7  ;;  %v6854_v6 = vld [vmem:[%s9928_s3 + $0x460] ss:$16 sps:$4 sm:$0xff]   ;;  %v6857_v7 = vld [vmem:[%s9928_s3 + $0x468] ss:$16 sps:$4 sm:$0xff]  }
 0x17a   :  { %3583 = vmatpush1.bf16.msra.mxu0 %v6776_v8  ;;  %3747 = vmatpush1.bf16.msra.mxu1 %v6779_v9  ;;  %v6862_v8 = vld [vmem:[%s9928_s3 + $0x484] ss:$16 sps:$4 sm:$0xff]   ;;  %v6865_v9 = vld [vmem:[%s9928_s3 + $0x48c] ss:$16 sps:$4 sm:$0xff]  }
 0x17b   :  { %3584 = vmatprep.subr.bf16.mxu0 %v6784_v10  ;;  %3748 = vmatprep.subr.bf16.mxu1 %v6787_v11  ;;  %v6860_v10 = vld [vmem:[%s9928_s3 + $0x480] ss:$16 sps:$4 sm:$0xff]   ;;  %v6863_v11 = vld [vmem:[%s9928_s3 + $0x488] ss:$16 sps:$4 sm:$0xff]  }
 0x17e   :  { %3585 = vmatpush1.bf16.msra.mxu0 %v6782_v13  ;;  %3749 = vmatpush1.bf16.msra.mxu1 %v6785_v14  ;;  %v6868_v13 = vld [vmem:[%s9928_s3 + $0x4a4] ss:$16 sps:$4 sm:$0xff]   ;;  %v6871_v14 = vld [vmem:[%s9928_s3 + $0x4ac] ss:$16 sps:$4 sm:$0xff]  }
 0x17f   :  { %3586 = vmatprep.subr.bf16.mxu0 %v6790_v16  ;;  %3750 = vmatprep.subr.bf16.mxu1 %v6793_v17  ;;  %v6866_v16 = vld [vmem:[%s9928_s3 + $0x4a0] ss:$16 sps:$4 sm:$0xff]   ;;  %v6869_v17 = vld [vmem:[%s9928_s3 + $0x4a8] ss:$16 sps:$4 sm:$0xff]  }
 0x182   :  { %3587 = vmatpush1.bf16.msra.mxu0 %v6788_v53  ;;  %3751 = vmatpush1.bf16.msra.mxu1 %v6791_v18  ;;  %v6874_v53 = vld [vmem:[%s9928_s3 + $0x4c4] ss:$16 sps:$4 sm:$0xff]   ;;  %v6877_v18 = vld [vmem:[%s9928_s3 + $0x4cc] ss:$16 sps:$4 sm:$0xff]  }
 0x183   :  { %3588 = vmatprep.subr.bf16.mxu0 %v6796_v19  ;;  %3752 = vmatprep.subr.bf16.mxu1 %v6799_v20  ;;  %v6872_v19 = vld [vmem:[%s9928_s3 + $0x4c0] ss:$16 sps:$4 sm:$0xff]   ;;  %v6875_v20 = vld [vmem:[%s9928_s3 + $0x4c8] ss:$16 sps:$4 sm:$0xff]  }
 0x186   :  { %3589 = vmatpush1.bf16.msra.mxu0 %v6794_v21  ;;  %3753 = vmatpush1.bf16.msra.mxu1 %v6797_v22  ;;  %v6880_v21 = vld [vmem:[%s9928_s3 + $0x4e4] ss:$16 sps:$4 sm:$0xff]   ;;  %v6883_v22 = vld [vmem:[%s9928_s3 + $0x4ec] ss:$16 sps:$4 sm:$0xff]  }
 0x187   :  { %3590 = vmatprep.subr.bf16.mxu0 %v6802_v25  ;;  %3754 = vmatprep.subr.bf16.mxu1 %v6805_v15  ;;  %v6878_v25 = vld [vmem:[%s9928_s3 + $0x4e0] ss:$16 sps:$4 sm:$0xff]   ;;  %v6881_v15 = vld [vmem:[%s9928_s3 + $0x4e8] ss:$16 sps:$4 sm:$0xff]  }
 0x18a   :  { %3591 = vmatpush1.bf16.msra.mxu0 %v6800_v31  ;;  %3755 = vmatpush1.bf16.msra.mxu1 %v6803_v24  ;;  %v6886_v31 = vld [vmem:[%s9928_s3 + $0x504] ss:$16 sps:$4 sm:$0xff]   ;;  %v6889_v24 = vld [vmem:[%s9928_s3 + $0x50c] ss:$16 sps:$4 sm:$0xff]  }
 0x18b   :  { %3592 = vmatprep.subr.bf16.mxu0 %v6808_v32  ;;  %3756 = vmatprep.subr.bf16.mxu1 %v6811_v33  ;;  %v6884_v32 = vld [vmem:[%s9928_s3 + $0x500] ss:$16 sps:$4 sm:$0xff]   ;;  %v6887_v33 = vld [vmem:[%s9928_s3 + $0x508] ss:$16 sps:$4 sm:$0xff]  }
 0x18e   :  { %3593 = vmatpush1.bf16.msra.mxu0 %v6806_v35  ;;  %3757 = vmatpush1.bf16.msra.mxu1 %v6809_v36  ;;  %v6892_v35 = vld [vmem:[%s9928_s3 + $0x524] ss:$16 sps:$4 sm:$0xff]   ;;  %v6895_v36 = vld [vmem:[%s9928_s3 + $0x52c] ss:$16 sps:$4 sm:$0xff]  }
 0x18f   :  { %3594 = vmatprep.subr.bf16.mxu0 %v6814_v37  ;;  %3758 = vmatprep.subr.bf16.mxu1 %v6817_v38  ;;  %v6890_v37 = vld [vmem:[%s9928_s3 + $0x520] ss:$16 sps:$4 sm:$0xff]   ;;  %v6893_v38 = vld [vmem:[%s9928_s3 + $0x528] ss:$16 sps:$4 sm:$0xff]  }
 0x192   :  { %3595 = vmatpush1.bf16.msra.mxu0 %v6812_v39  ;;  %3759 = vmatpush1.bf16.msra.mxu1 %v6815_v40  ;;  %v6898_v39 = vld [vmem:[%s9928_s3 + $0x544] ss:$16 sps:$4 sm:$0xff]   ;;  %v6901_v40 = vld [vmem:[%s9928_s3 + $0x54c] ss:$16 sps:$4 sm:$0xff]  }
 0x193   :  { %3596 = vmatprep.subr.bf16.mxu0 %v6820_v42  ;;  %3760 = vmatprep.subr.bf16.mxu1 %v6823_v43  ;;  %v6896_v42 = vld [vmem:[%s9928_s3 + $0x540] ss:$16 sps:$4 sm:$0xff]   ;;  %v6899_v43 = vld [vmem:[%s9928_s3 + $0x548] ss:$16 sps:$4 sm:$0xff]  }
 0x196   :  { %3597 = vmatpush1.bf16.msra.mxu0 %v6818_v12  ;;  %3761 = vmatpush1.bf16.msra.mxu1 %v6821_v44  ;;  %v6904_v12 = vld [vmem:[%s9928_s3 + $0x564] ss:$16 sps:$4 sm:$0xff]   ;;  %v6907_v44 = vld [vmem:[%s9928_s3 + $0x56c] ss:$16 sps:$4 sm:$0xff]  }
 0x197   :  { %3598 = vmatprep.subr.bf16.mxu0 %v6826_v57  ;;  %3762 = vmatprep.subr.bf16.mxu1 %v6829_v46  ;;  %v6905_v57 = vld [vmem:[%s9928_s3 + $0x568] ss:$16 sps:$4 sm:$0xff]   ;;  %v6910_v46 = vld [vmem:[%s9928_s3 + $0x584] ss:$16 sps:$4 sm:$0xff]  }
 0x19a   :  { %3599 = vmatpush1.bf16.msra.mxu0 %v6824_v47  ;;  %3763 = vmatpush1.bf16.msra.mxu1 %v6827_v48  ;;  %v6913_v47 = vld [vmem:[%s9928_s3 + $0x58c] ss:$16 sps:$4 sm:$0xff]   ;;  %v6908_v48 = vld [vmem:[%s9928_s3 + $0x580] ss:$16 sps:$4 sm:$0xff]  }
 0x19b   :  { %3600 = vmatprep.subr.bf16.mxu0 %v6832_v23  ;;  %3764 = vmatprep.subr.bf16.mxu1 %v6835_v50  ;;  %v6916_v23 = vld [vmem:[%s9928_s3 + $0x5a4] ss:$16 sps:$4 sm:$0xff]   ;;  %v6919_v50 = vld [vmem:[%s9928_s3 + $0x5ac] ss:$16 sps:$4 sm:$0xff]  }
 0x19e   :  { %3601 = vmatpush1.bf16.msra.mxu0 %v6830_v51  ;;  %3765 = vmatpush1.bf16.msra.mxu1 %v6833_v34  ;;  %v311_v51 = vsub.s32 4, %v8495_v26  ;;  %v6914_v34 = vld [vmem:[%s9928_s3 + $0x5a0] ss:$16 sps:$4 sm:$0xff]  }
 0x19f   :  { %3611 = vmatprep.subr.bf16.mxu0 %v6838_v54  ;;  %3775 = vmatprep.subr.bf16.mxu1 %v6841_v55  ;;  %v315_v54 = vsub.s32 5, %v8495_v26  ;;  %v6922_v55 = vld [vmem:[%s9928_s3 + $0x5c4] ss:$16 sps:$4 sm:$0xff]  }
 0x1a1   :  { %3603 = vmatmul.mubr.bf16.vlgmr.msra.gmra.mrb[8].mxu0 %v1965_v59  ;;  %3767 = vmatmul.mubr.bf16.vlgmr.msra.gmra.mrb[8].mxu1 %v1965_v59  ;;  %v312_v59 = vrot.slane %v8503_v28, %v311_v51  ;;  %v6973_v51 = vld [vmem:[%s9928_s3 + $0x6cc] ss:$16 sps:$4 sm:$0xff]  }
 0x1a2   :  { %3612 = vmatpush1.bf16.msra.mxu0 %v6836_v56  ;;  %3776 = vmatpush1.bf16.msra.mxu1 %v6839_v58  ;;  %v6925_v56 = vld [vmem:[%s9928_s3 + $0x5cc] ss:$16 sps:$4 sm:$0xff]   ;;  %v323_v58 = vsub.s32 7, %v8495_v26 }
 0x1a3   :  { %3613 = vmatprep.subr.bf16.mxu0 %v6844_v60  ;;  %3777 = vmatprep.subr.bf16.mxu1 %v6847_v61  ;;  %v6920_v60 = vld [vmem:[%s9928_s3 + $0x5c0] ss:$16 sps:$4 sm:$0xff]   ;;  %v6923_v61 = vld [vmem:[%s9928_s3 + $0x5c8] ss:$16 sps:$4 sm:$0xff]  }
 0x1a6   :  { %3614 = vmatpush1.bf16.msra.mxu0 %v6842_v62  ;;  %3778 = vmatpush1.bf16.msra.mxu1 %v6845_v63  ;;  %v316_v62 = vrot.slane %v8503_v28, %v315_v54  ;;  %v324_v63 = vrot.slane %v8503_v28, %v323_v58  ;;  %v6976_v54 = vld [vmem:[%s9928_s3 + $0x6e4] ss:$16 sps:$4 sm:$0xff]   ;;  %v6977_v58 = vld [vmem:[%s9928_s3 + $0x6e8] ss:$16 sps:$4 sm:$0xff]  }
 0x1a7   :  { %3615 = vmatprep.subr.bf16.mxu0 %v6850_v0  ;;  %3779 = vmatprep.subr.bf16.mxu1 %v6853_v1  ;;  %v6928_v0 = vld [vmem:[%s9928_s3 + $0x5e4] ss:$16 sps:$4 sm:$0xff]   ;;  %v6931_v1 = vld [vmem:[%s9928_s3 + $0x5ec] ss:$16 sps:$4 sm:$0xff]  }
 0x1aa   :  { %3616 = vmatpush1.bf16.msra.mxu0 %v6848_v2  ;;  %3780 = vmatpush1.bf16.msra.mxu1 %v6851_v3 }
 0x1ab   :  { %3617 = vmatprep.subr.bf16.mxu0 %v6856_v4  ;;  %3781 = vmatprep.subr.bf16.mxu1 %v6859_v5 }
 0x1ae   :  { %3618 = vmatpush1.bf16.msra.mxu0 %v6854_v6  ;;  %3782 = vmatpush1.bf16.msra.mxu1 %v6857_v7  ;;  %v6926_v6 = vld [vmem:[%s9928_s3 + $0x5e0] ss:$16 sps:$4 sm:$0xff]  }
 0x1af   :  { %3619 = vmatprep.subr.bf16.mxu0 %v6862_v8  ;;  %3783 = vmatprep.subr.bf16.mxu1 %v6865_v9 }
 0x1b2   :  { %3620 = vmatpush1.bf16.msra.mxu0 %v6860_v10  ;;  %3784 = vmatpush1.bf16.msra.mxu1 %v6863_v11  ;;  %v6929_v10 = vld [vmem:[%s9928_s3 + $0x5e8] ss:$16 sps:$4 sm:$0xff]   ;;  %v6934_v11 = vld [vmem:[%s9928_s3 + $0x604] ss:$16 sps:$4 sm:$0xff]  }
 0x1b3   :  { %3621 = vmatprep.subr.bf16.mxu0 %v6868_v13  ;;  %3785 = vmatprep.subr.bf16.mxu1 %v6871_v14 }
 0x1b6   :  { %3622 = vmatpush1.bf16.msra.mxu0 %v6866_v16  ;;  %3786 = vmatpush1.bf16.msra.mxu1 %v6869_v17 }
 0x1b7   :  { %3623 = vmatprep.subr.bf16.mxu0 %v6874_v53  ;;  %3787 = vmatprep.subr.bf16.mxu1 %v6877_v18  ;;  %v6937_v53 = vld [vmem:[%s9928_s3 + $0x60c] ss:$16 sps:$4 sm:$0xff]  }
 0x1ba   :  { %3624 = vmatpush1.bf16.msra.mxu0 %v6872_v19  ;;  %3788 = vmatpush1.bf16.msra.mxu1 %v6875_v20 }
 0x1bb   :  { %3625 = vmatprep.subr.bf16.mxu0 %v6880_v21  ;;  %3789 = vmatprep.subr.bf16.mxu1 %v6883_v22  ;;  %v6932_v22 = vld [vmem:[%s9928_s3 + $0x600] ss:$16 sps:$4 sm:$0xff]  }
 0x1be   :  { %3626 = vmatpush1.bf16.msra.mxu0 %v6878_v25  ;;  %3790 = vmatpush1.bf16.msra.mxu1 %v6881_v15  ;;  %v6935_v25 = vld [vmem:[%s9928_s3 + $0x608] ss:$16 sps:$4 sm:$0xff]  }
 0x1bf   :  { %3627 = vmatprep.subr.bf16.mxu0 %v6886_v31  ;;  %3791 = vmatprep.subr.bf16.mxu1 %v6889_v24  ;;  %v6940_v31 = vld [vmem:[%s9928_s3 + $0x624] ss:$16 sps:$4 sm:$0xff]   ;;  %v6943_v24 = vld [vmem:[%s9928_s3 + $0x62c] ss:$16 sps:$4 sm:$0xff]  }
 0x1c2   :  { %3628 = vmatpush1.bf16.msra.mxu0 %v6884_v32  ;;  %3792 = vmatpush1.bf16.msra.mxu1 %v6887_v33  ;;  %v6938_v33 = vld [vmem:[%s9928_s3 + $0x620] ss:$16 sps:$4 sm:$0xff]  }
 0x1c3   :  { %3629 = vmatprep.subr.bf16.mxu0 %v6892_v35  ;;  %3793 = vmatprep.subr.bf16.mxu1 %v6895_v36  ;;  %v6941_v35 = vld [vmem:[%s9928_s3 + $0x628] ss:$16 sps:$4 sm:$0xff]   ;;  %v6946_v36 = vld [vmem:[%s9928_s3 + $0x644] ss:$16 sps:$4 sm:$0xff]  }
 0x1c6   :  { %3630 = vmatpush1.bf16.msra.mxu0 %v6890_v37  ;;  %3794 = vmatpush1.bf16.msra.mxu1 %v6893_v38  ;;  %v6949_v37 = vld [vmem:[%s9928_s3 + $0x64c] ss:$16 sps:$4 sm:$0xff]   ;;  %v6944_v38 = vld [vmem:[%s9928_s3 + $0x640] ss:$16 sps:$4 sm:$0xff]  }
 0x1c7   :  { %3631 = vmatprep.subr.bf16.mxu0 %v6898_v39  ;;  %3795 = vmatprep.subr.bf16.mxu1 %v6901_v40  ;;  %v6947_v39 = vld [vmem:[%s9928_s3 + $0x648] ss:$16 sps:$4 sm:$0xff]   ;;  %v6952_v40 = vld [vmem:[%s9928_s3 + $0x664] ss:$16 sps:$4 sm:$0xff]  }
 0x1ca   :  { %3632 = vmatpush1.bf16.msra.mxu0 %v6896_v42  ;;  %3796 = vmatpush1.bf16.msra.mxu1 %v6899_v43  ;;  %v6955_v42 = vld [vmem:[%s9928_s3 + $0x66c] ss:$16 sps:$4 sm:$0xff]   ;;  %v6950_v43 = vld [vmem:[%s9928_s3 + $0x660] ss:$16 sps:$4 sm:$0xff]  }
 0x1cb   :  { %3633 = vmatprep.subr.bf16.mxu0 %v6904_v12  ;;  %3797 = vmatprep.subr.bf16.mxu1 %v6907_v44  ;;  %v6953_v12 = vld [vmem:[%s9928_s3 + $0x668] ss:$16 sps:$4 sm:$0xff]   ;;  %v6958_v44 = vld [vmem:[%s9928_s3 + $0x684] ss:$16 sps:$4 sm:$0xff]  }
 0x1ce   :  { %3634 = vmatpush1.bf16.msra.mxu0 %v6902_v45  ;;  %3798 = vmatpush1.bf16.msra.mxu1 %v6905_v57  ;;  %v6961_v45 = vld [vmem:[%s9928_s3 + $0x68c] ss:$16 sps:$4 sm:$0xff]   ;;  %v6956_v57 = vld [vmem:[%s9928_s3 + $0x680] ss:$16 sps:$4 sm:$0xff]  }
 0x1cf   :  { %3635 = vmatprep.subr.bf16.mxu0 %v6910_v46  ;;  %3799 = vmatprep.subr.bf16.mxu1 %v6913_v47  ;;  %v6959_v46 = vld [vmem:[%s9928_s3 + $0x688] ss:$16 sps:$4 sm:$0xff]   ;;  %v6964_v47 = vld [vmem:[%s9928_s3 + $0x6a4] ss:$16 sps:$4 sm:$0xff]  }
 0x1d2   :  { %3636 = vmatpush1.bf16.msra.mxu0 %v6908_v48  ;;  %3800 = vmatpush1.bf16.msra.mxu1 %v6911_v49  ;;  %v6967_v48 = vld [vmem:[%s9928_s3 + $0x6ac] ss:$16 sps:$4 sm:$0xff]   ;;  %v6962_v49 = vld [vmem:[%s9928_s3 + $0x6a0] ss:$16 sps:$4 sm:$0xff]  }
 0x1d3   :  { %3637 = vmatprep.subr.bf16.mxu0 %v6916_v23  ;;  %3801 = vmatprep.subr.bf16.mxu1 %v6919_v50  ;;  %v6965_v23 = vld [vmem:[%s9928_s3 + $0x6a8] ss:$16 sps:$4 sm:$0xff]   ;;  %v6970_v50 = vld [vmem:[%s9928_s3 + $0x6c4] ss:$16 sps:$4 sm:$0xff]  }
 0x1d6   :  { %3638 = vmatpush1.bf16.msra.mxu0 %v6914_v34  ;;  %3802 = vmatpush1.bf16.msra.mxu1 %v6917_v52  ;;  %v6968_v34 = vld [vmem:[%s9928_s3 + $0x6c0] ss:$16 sps:$4 sm:$0xff]   ;;  %v6971_v52 = vld [vmem:[%s9928_s3 + $0x6c8] ss:$16 sps:$4 sm:$0xff]  }
 0x1d7   :  { %3639 = vmatprep.subr.bf16.mxu0 %v6922_v55  ;;  %3803 = vmatprep.subr.bf16.mxu1 %v6925_v56  ;;  %v6979_v55 = vld [vmem:[%s9928_s3 + $0x6ec] ss:$16 sps:$4 sm:$0xff]   ;;  %v6974_v56 = vld [vmem:[%s9928_s3 + $0x6e0] ss:$16 sps:$4 sm:$0xff]  }
 0x1d8   :  { %v1866_v2 = vpop.f32.mrb[4].mxu0  ;;  %v8903_v4 = vpop.f32.mrb[4].mxu1 }
 0x1d9   :  { %v6567_v3 = vadd.f32 %v1866_v2, %v312_v59  ;;  %v1868_v5 = vpop.f32.mrb[5].mxu0  ;;  %v1950_v8 = vpop.f32.mrb[5].mxu1  ;;  %v6982_v59 = vld [vmem:[%s9928_s3 + $0x704] ss:$16 sps:$4 sm:$0xff]   ;;  %v6989_v2 = vld [vmem:[%s9928_s3 + $0x728] ss:$16 sps:$4 sm:$0xff]  }
 0x1da   :  { %v6568_v7 = vadd.f32 %v1868_v5, %v316_v62  ;;  %3640 = vmatpush1.bf16.msra.mxu0 %v6920_v60  ;;  %3804 = vmatpush1.bf16.msra.mxu1 %v6923_v61  ;;  %v1870_v9 = vpop.f32.mrb[6].mxu0  ;;  %v6570_v14 = vadd.f32 %v1950_v8, %v324_v63  ;;  %v1952_v16 = vpop.f32.mrb[6].mxu1  ;;  %v6985_v60 = vld [vmem:[%s9928_s3 + $0x70c] ss:$16 sps:$4 sm:$0xff]   ;;  %v6980_v61 = vld [vmem:[%s9928_s3 + $0x700] ss:$16 sps:$4 sm:$0xff]  }
 0x1db   :  { %v1959_v13 = vmax.f32 %v6567_v3, 0.0  ;;  %v1871_v17 = vpop.f32.mrb[7].mxu0  ;;  %3641 = vmatprep.subr.bf16.mxu0 %v6928_v0  ;;  %3805 = vmatprep.subr.bf16.mxu1 %v6931_v1  ;;  %v1953_v19 = vpop.f32.mrb[7].mxu1  ;;  %v6983_v62 = vld [vmem:[%s9928_s3 + $0x708] ss:$16 sps:$4 sm:$0xff]  }
 0x1dc   :  { %v1960_v18 = vmax.f32 %v6568_v7, 0.0  ;;  %v1962_v20 = vmax.f32 %v6570_v14, 0.0  ;;  %v6988_v63 = vld [vmem:[%s9928_s3 + $0x724] ss:$16 sps:$4 sm:$0xff]   ;;  %v6991_v0 = vld [vmem:[%s9928_s3 + $0x72c] ss:$16 sps:$4 sm:$0xff]  }
 0x1dd   :  { %v1967_v15 = vpack.c.bf16 %v1959_v13, %v1959_v13  ;;  %v6986_v1 = vld [vmem:[%s9928_s3 + $0x720] ss:$16 sps:$4 sm:$0xff]   ;;  %v6994_v3 = vld [vmem:[%s9928_s3 + $0x744] ss:$16 sps:$4 sm:$0xff]   ;;  %v6997_v5 = vld [vmem:[%s9928_s3 + $0x74c] ss:$16 sps:$4 sm:$0xff]  }
 0x1de   :  { %v1968_v21 = vpack.c.bf16 %v1960_v18, %v1960_v18  ;;  %3642 = vmatpush1.bf16.msra.mxu0 %v6926_v6  ;;  %3806 = vmatpush1.bf16.msra.mxu1 %v6929_v10  ;;  %v1970_v32 = vpack.c.bf16 %v1962_v20, %v1962_v20  ;;  %v6992_v6 = vld [vmem:[%s9928_s3 + $0x740] ss:$16 sps:$4 sm:$0xff]   ;;  %v6995_v7 = vld [vmem:[%s9928_s3 + $0x748] ss:$16 sps:$4 sm:$0xff]   ;;  %v7000_v8 = vld [vmem:[%s9928_s3 + $0x764] ss:$16 sps:$4 sm:$0xff]  }
 0x1df   :  { %3652 = vmatprep.subr.bf16.mxu0 %v6934_v11  ;;  %3816 = vmatprep.subr.bf16.mxu1 %v6937_v53  ;;  %v7003_v9 = vld [vmem:[%s9928_s3 + $0x76c] ss:$16 sps:$4 sm:$0xff]   ;;  %v6998_v10 = vld [vmem:[%s9928_s3 + $0x760] ss:$16 sps:$4 sm:$0xff]   ;;  %v7001_v11 = vld [vmem:[%s9928_s3 + $0x768] ss:$16 sps:$4 sm:$0xff]  }
 0x1e0   :  { %3643 = vmatprep.mubr.bf16.mxu0 %v1968_v21  ;;  %3807 = vmatprep.mubr.bf16.mxu1 %v1968_v21  ;;  %v7006_v13 = vld [vmem:[%s9928_s3 + $0x784] ss:$16 sps:$4 sm:$0xff]   ;;  %v7009_v14 = vld [vmem:[%s9928_s3 + $0x78c] ss:$16 sps:$4 sm:$0xff]   ;;  %v7004_v16 = vld [vmem:[%s9928_s3 + $0x780] ss:$16 sps:$4 sm:$0xff]  }
 0x1e1   :  { %3644 = vmatmul.mubr.bf16.vlgmr.msra.gmra.mrb[8].mxu0 %v1967_v15  ;;  %3808 = vmatmul.mubr.bf16.vlgmr.msra.gmra.mrb[8].mxu1 %v1967_v15  ;;  %v7007_v17 = vld [vmem:[%s9928_s3 + $0x788] ss:$16 sps:$4 sm:$0xff]   ;;  %v319_v53 = vsub.s32 6, %v8495_v26  ;;  %v7012_v18 = vld [vmem:[%s9928_s3 + $0x7a4] ss:$16 sps:$4 sm:$0xff]  }
 0x1e2   :  { %3653 = vmatpush1.bf16.msra.mxu0 %v6932_v22  ;;  %3817 = vmatpush1.bf16.msra.mxu1 %v6935_v25  ;;  %v7015_v19 = vld [vmem:[%s9928_s3 + $0x7ac] ss:$16 sps:$4 sm:$0xff]   ;;  %v7010_v20 = vld [vmem:[%s9928_s3 + $0x7a0] ss:$16 sps:$4 sm:$0xff]   ;;  %v7013_v26 = vld [vmem:[%s9928_s3 + $0x7a8] ss:$16 sps:$4 sm:$0xff]  }
 0x1e3   :  { %3684 = vmatprep.mubr.bf16.mxu0 %v1970_v32  ;;  %3848 = vmatprep.mubr.bf16.mxu1 %v1970_v32  ;;  %v320_v21 = vrot.slane %v8503_v28, %v319_v53  ;;  %v7018_v22 = vld [vmem:[%s9928_s3 + $0x7c4] ss:$16 sps:$4 sm:$0xff]   ;;  %v7021_v25 = vld [vmem:[%s9928_s3 + $0x7cc] ss:$16 sps:$4 sm:$0xff]   ;;  %v7016_v15 = vld [vmem:[%s9928_s3 + $0x7c0] ss:$16 sps:$4 sm:$0xff]  }
 0x1e4   :  { %3654 = vmatprep.subr.bf16.mxu0 %v6940_v31  ;;  %3818 = vmatprep.subr.bf16.mxu1 %v6943_v24  ;;  %v7019_v28 = vld [vmem:[%s9928_s3 + $0x7c8] ss:$16 sps:$4 sm:$0xff]   ;;  %v7024_v24 = vld [vmem:[%s9928_s3 + $0x7e4] ss:$16 sps:$4 sm:$0xff]   ;;  %v7027_v32 = vld [vmem:[%s9928_s3 + $0x7ec] ss:$16 sps:$4 sm:$0xff]  }
 0x1e5   :  { %v6569_v31 = vadd.f32 %v8903_v4, %v320_v21  ;;  %v7025_v4 = vld [vmem:[%s9928_s3 + $0x7e8] ss:$16 sps:$4 sm:$0xff]   ;;  %v7102_v21 = vld [vmem:[%s9930_s5 + $0x184] ss:$16 sps:$4 sm:$0xff]  }
 0x1e6   :  { %3655 = vmatpush1.bf16.msra.mxu0 %v6938_v33  ;;  %3819 = vmatpush1.bf16.msra.mxu1 %v6941_v35  ;;  %v7022_v33 = vld [vmem:[%s9928_s3 + $0x7e0] ss:$16 sps:$4 sm:$0xff]   ;;  %v7091_v53 = vld [vmem:[%s9930_s5 + $0x148] ss:$16 sps:$4 sm:$0xff]  }
 0x1e7   :  { %3656 = vmatprep.subr.bf16.mxu0 %v6946_v36  ;;  %3820 = vmatprep.subr.bf16.mxu1 %v6949_v37  ;;  %v1961_v35 = vmax.f32 %v6569_v31, 0.0  ;;  %v7030_v36 = vld [vmem:[%s9930_s5 + $0x4] ss:$16 sps:$4 sm:$0xff]   ;;  %v7033_v37 = vld [vmem:[%s9930_s5 + $0xc] ss:$16 sps:$4 sm:$0xff]  }
 0x1e8   :  { %v7111_v31 = vld [vmem:[%s9930_s5 + $0x1ac] ss:$16 sps:$4 sm:$0xff]  }
 0x1ea   :  { %3657 = vmatpush1.bf16.msra.mxu0 %v6944_v38  ;;  %3821 = vmatpush1.bf16.msra.mxu1 %v6947_v39  ;;  %v7028_v38 = vld [vmem:[%s9930_s5] ss:$16 sps:$4 sm:$0xff]   ;;  %v7031_v39 = vld [vmem:[%s9930_s5 + $0x8] ss:$16 sps:$4 sm:$0xff]  }
 0x1eb   :  { %3658 = vmatprep.subr.bf16.mxu0 %v6952_v40  ;;  %3822 = vmatprep.subr.bf16.mxu1 %v6955_v42  ;;  %v1969_v40 = vpack.c.bf16 %v1961_v35, %v1961_v35  ;;  %v7036_v42 = vld [vmem:[%s9930_s5 + $0x24] ss:$16 sps:$4 sm:$0xff]   ;;  %v7112_v35 = vld [vmem:[%s9930_s5 + $0x1c0] ss:$16 sps:$4 sm:$0xff]  }
 0x1ee   :  { %3659 = vmatpush1.bf16.msra.mxu0 %v6950_v43  ;;  %3823 = vmatpush1.bf16.msra.mxu1 %v6953_v12  ;;  %v7039_v43 = vld [vmem:[%s9930_s5 + $0x2c] ss:$16 sps:$4 sm:$0xff]   ;;  %v7034_v12 = vld [vmem:[%s9930_s5 + $0x20] ss:$16 sps:$4 sm:$0xff]  }
 0x1ef   :  { %3660 = vmatprep.subr.bf16.mxu0 %v6958_v44  ;;  %3824 = vmatprep.subr.bf16.mxu1 %v6961_v45  ;;  %v7037_v44 = vld [vmem:[%s9930_s5 + $0x28] ss:$16 sps:$4 sm:$0xff]   ;;  %v7042_v45 = vld [vmem:[%s9930_s5 + $0x44] ss:$16 sps:$4 sm:$0xff]  }
 0x1f2   :  { %3661 = vmatpush1.bf16.msra.mxu0 %v6956_v57  ;;  %3825 = vmatpush1.bf16.msra.mxu1 %v6959_v46  ;;  %v7045_v57 = vld [vmem:[%s9930_s5 + $0x4c] ss:$16 sps:$4 sm:$0xff]   ;;  %v7040_v46 = vld [vmem:[%s9930_s5 + $0x40] ss:$16 sps:$4 sm:$0xff]  }
 0x1f3   :  { %3662 = vmatprep.subr.bf16.mxu0 %v6964_v47  ;;  %3826 = vmatprep.subr.bf16.mxu1 %v6967_v48  ;;  %v7043_v47 = vld [vmem:[%s9930_s5 + $0x48] ss:$16 sps:$4 sm:$0xff]   ;;  %v7048_v48 = vld [vmem:[%s9930_s5 + $0x64] ss:$16 sps:$4 sm:$0xff]  }
 0x1f6   :  { %3663 = vmatpush1.bf16.msra.mxu0 %v6962_v49  ;;  %3827 = vmatpush1.bf16.msra.mxu1 %v6965_v23  ;;  %v7051_v49 = vld [vmem:[%s9930_s5 + $0x6c] ss:$16 sps:$4 sm:$0xff]   ;;  %v7046_v23 = vld [vmem:[%s9930_s5 + $0x60] ss:$16 sps:$4 sm:$0xff]  }
 0x1f7   :  { %3664 = vmatprep.subr.bf16.mxu0 %v6970_v50  ;;  %3828 = vmatprep.subr.bf16.mxu1 %v6973_v51  ;;  %v7049_v50 = vld [vmem:[%s9930_s5 + $0x68] ss:$16 sps:$4 sm:$0xff]   ;;  %v7054_v51 = vld [vmem:[%s9930_s5 + $0x84] ss:$16 sps:$4 sm:$0xff]  }
 0x1fa   :  { %3665 = vmatpush1.bf16.msra.mxu0 %v6968_v34  ;;  %3829 = vmatpush1.bf16.msra.mxu1 %v6971_v52  ;;  %v7057_v34 = vld [vmem:[%s9930_s5 + $0x8c] ss:$16 sps:$4 sm:$0xff]   ;;  %v7052_v52 = vld [vmem:[%s9930_s5 + $0x80] ss:$16 sps:$4 sm:$0xff]  }
 0x1fb   :  { %3666 = vmatprep.subr.bf16.mxu0 %v6976_v54  ;;  %3830 = vmatprep.subr.bf16.mxu1 %v6979_v55  ;;  %v7055_v54 = vld [vmem:[%s9930_s5 + $0x88] ss:$16 sps:$4 sm:$0xff]   ;;  %v7060_v55 = vld [vmem:[%s9930_s5 + $0xa4] ss:$16 sps:$4 sm:$0xff]  }
 0x1fe   :  { %3667 = vmatpush1.bf16.msra.mxu0 %v6974_v56  ;;  %3831 = vmatpush1.bf16.msra.mxu1 %v6977_v58  ;;  %v7063_v56 = vld [vmem:[%s9930_s5 + $0xac] ss:$16 sps:$4 sm:$0xff]   ;;  %v7058_v58 = vld [vmem:[%s9930_s5 + $0xa0] ss:$16 sps:$4 sm:$0xff]  }
 0x1ff   :  { %3668 = vmatprep.subr.bf16.mxu0 %v6982_v59  ;;  %3832 = vmatprep.subr.bf16.mxu1 %v6985_v60  ;;  %v7061_v59 = vld [vmem:[%s9930_s5 + $0xa8] ss:$16 sps:$4 sm:$0xff]   ;;  %v7066_v60 = vld [vmem:[%s9930_s5 + $0xc4] ss:$16 sps:$4 sm:$0xff]  }
 0x202   :  { %3669 = vmatpush1.bf16.msra.mxu0 %v6980_v61  ;;  %3833 = vmatpush1.bf16.msra.mxu1 %v6983_v62  ;;  %v7069_v61 = vld [vmem:[%s9930_s5 + $0xcc] ss:$16 sps:$4 sm:$0xff]   ;;  %v7064_v62 = vld [vmem:[%s9930_s5 + $0xc0] ss:$16 sps:$4 sm:$0xff]  }
 0x203   :  { %3670 = vmatprep.subr.bf16.mxu0 %v6988_v63  ;;  %3834 = vmatprep.subr.bf16.mxu1 %v6991_v0  ;;  %v7067_v63 = vld [vmem:[%s9930_s5 + $0xc8] ss:$16 sps:$4 sm:$0xff]   ;;  %v7072_v0 = vld [vmem:[%s9930_s5 + $0xe4] ss:$16 sps:$4 sm:$0xff]  }
 0x206   :  { %3671 = vmatpush1.bf16.msra.mxu0 %v6986_v1  ;;  %3835 = vmatpush1.bf16.msra.mxu1 %v6989_v2  ;;  %v7075_v1 = vld [vmem:[%s9930_s5 + $0xec] ss:$16 sps:$4 sm:$0xff]   ;;  %v7070_v2 = vld [vmem:[%s9930_s5 + $0xe0] ss:$16 sps:$4 sm:$0xff]  }
 0x207   :  { %3672 = vmatprep.subr.bf16.mxu0 %v6994_v3  ;;  %3836 = vmatprep.subr.bf16.mxu1 %v6997_v5  ;;  %v7073_v3 = vld [vmem:[%s9930_s5 + $0xe8] ss:$16 sps:$4 sm:$0xff]   ;;  %v7078_v5 = vld [vmem:[%s9930_s5 + $0x104] ss:$16 sps:$4 sm:$0xff]  }
 0x20a   :  { %3673 = vmatpush1.bf16.msra.mxu0 %v6992_v6  ;;  %3837 = vmatpush1.bf16.msra.mxu1 %v6995_v7  ;;  %v7081_v6 = vld [vmem:[%s9930_s5 + $0x10c] ss:$16 sps:$4 sm:$0xff]   ;;  %v7076_v7 = vld [vmem:[%s9930_s5 + $0x100] ss:$16 sps:$4 sm:$0xff]  }
 0x20b   :  { %3674 = vmatprep.subr.bf16.mxu0 %v7000_v8  ;;  %3838 = vmatprep.subr.bf16.mxu1 %v7003_v9  ;;  %v7079_v8 = vld [vmem:[%s9930_s5 + $0x108] ss:$16 sps:$4 sm:$0xff]   ;;  %v7084_v9 = vld [vmem:[%s9930_s5 + $0x124] ss:$16 sps:$4 sm:$0xff]  }
 0x20e   :  { %3675 = vmatpush1.bf16.msra.mxu0 %v6998_v10  ;;  %3839 = vmatpush1.bf16.msra.mxu1 %v7001_v11  ;;  %v7087_v10 = vld [vmem:[%s9930_s5 + $0x12c] ss:$16 sps:$4 sm:$0xff]   ;;  %v7082_v11 = vld [vmem:[%s9930_s5 + $0x120] ss:$16 sps:$4 sm:$0xff]  }
 0x20f   :  { %3676 = vmatprep.subr.bf16.mxu0 %v7006_v13  ;;  %3840 = vmatprep.subr.bf16.mxu1 %v7009_v14  ;;  %v7085_v13 = vld [vmem:[%s9930_s5 + $0x128] ss:$16 sps:$4 sm:$0xff]   ;;  %v7090_v14 = vld [vmem:[%s9930_s5 + $0x144] ss:$16 sps:$4 sm:$0xff]  }
 0x212   :  { %3677 = vmatpush1.bf16.msra.mxu0 %v7004_v16  ;;  %3841 = vmatpush1.bf16.msra.mxu1 %v7007_v17  ;;  %v7093_v16 = vld [vmem:[%s9930_s5 + $0x14c] ss:$16 sps:$4 sm:$0xff]   ;;  %v7088_v17 = vld [vmem:[%s9930_s5 + $0x140] ss:$16 sps:$4 sm:$0xff]  }
 0x213   :  { %3678 = vmatprep.subr.bf16.mxu0 %v7012_v18  ;;  %3842 = vmatprep.subr.bf16.mxu1 %v7015_v19  ;;  %v7096_v18 = vld [vmem:[%s9930_s5 + $0x164] ss:$16 sps:$4 sm:$0xff]   ;;  %v7099_v19 = vld [vmem:[%s9930_s5 + $0x16c] ss:$16 sps:$4 sm:$0xff]  }
 0x216   :  { %3679 = vmatpush1.bf16.msra.mxu0 %v7010_v20  ;;  %3843 = vmatpush1.bf16.msra.mxu1 %v7013_v26  ;;  %v7094_v20 = vld [vmem:[%s9930_s5 + $0x160] ss:$16 sps:$4 sm:$0xff]   ;;  %v7097_v26 = vld [vmem:[%s9930_s5 + $0x168] ss:$16 sps:$4 sm:$0xff]  }
 0x217   :  { %3680 = vmatprep.subr.bf16.mxu0 %v7018_v22  ;;  %3844 = vmatprep.subr.bf16.mxu1 %v7021_v25  ;;  %v7105_v22 = vld [vmem:[%s9930_s5 + $0x18c] ss:$16 sps:$4 sm:$0xff]   ;;  %v7100_v25 = vld [vmem:[%s9930_s5 + $0x180] ss:$16 sps:$4 sm:$0xff]  }
 0x21a   :  { %3681 = vmatpush1.bf16.msra.mxu0 %v7016_v15  ;;  %3845 = vmatpush1.bf16.msra.mxu1 %v7019_v28  ;;  %v7103_v15 = vld [vmem:[%s9930_s5 + $0x188] ss:$16 sps:$4 sm:$0xff]   ;;  %v7108_v28 = vld [vmem:[%s9930_s5 + $0x1a4] ss:$16 sps:$4 sm:$0xff]  }
 0x21b   :  { %3682 = vmatprep.subr.bf16.mxu0 %v7024_v24  ;;  %3846 = vmatprep.subr.bf16.mxu1 %v7027_v32  ;;  %v7106_v24 = vld [vmem:[%s9930_s5 + $0x1a0] ss:$16 sps:$4 sm:$0xff]   ;;  %v7109_v32 = vld [vmem:[%s9930_s5 + $0x1a8] ss:$16 sps:$4 sm:$0xff]  }
 0x21e   :  { %3683 = vmatpush1.bf16.msra.mxu0 %v7022_v33  ;;  %3847 = vmatpush1.bf16.msra.mxu1 %v7025_v4  ;;  %v7114_v33 = vld [vmem:[%s9930_s5 + $0x1c4] ss:$16 sps:$4 sm:$0xff]   ;;  %v7117_v4 = vld [vmem:[%s9930_s5 + $0x1cc] ss:$16 sps:$4 sm:$0xff]  }
 0x21f   :  { %4651 = vmatprep.subr.bf16.mxu0 %v7030_v36  ;;  %4733 = vmatprep.subr.bf16.mxu1 %v7033_v37  ;;  %v7115_v36 = vld [vmem:[%s9930_s5 + $0x1c8] ss:$16 sps:$4 sm:$0xff]   ;;  %v7120_v37 = vld [vmem:[%s9930_s5 + $0x1e4] ss:$16 sps:$4 sm:$0xff]  }
 0x221   :  { %3685 = vmatmul.mubr.bf16.vlgmr.msra.gmra.mrb[8].mxu0 %v1969_v40  ;;  %3849 = vmatmul.mubr.bf16.vlgmr.msra.gmra.mrb[8].mxu1 %v1969_v40  ;;  %v7121_v40 = vld [vmem:[%s9930_s5 + $0x1e8] ss:$16 sps:$4 sm:$0xff]  }
 0x222   :  { %4652 = vmatpush1.bf16.msra.mxu0 %v7028_v38  ;;  %4734 = vmatpush1.bf16.msra.mxu1 %v7031_v39  ;;  %v7123_v38 = vld [vmem:[%s9930_s5 + $0x1ec] ss:$16 sps:$4 sm:$0xff]   ;;  %v7118_v39 = vld [vmem:[%s9930_s5 + $0x1e0] ss:$16 sps:$4 sm:$0xff]  }
 0x223   :  { %4653 = vmatprep.subr.bf16.mxu0 %v7036_v42  ;;  %4735 = vmatprep.subr.bf16.mxu1 %v7039_v43  ;;  %v7126_v42 = vld [vmem:[%s9930_s5 + $0x204] ss:$16 sps:$4 sm:$0xff]   ;;  %v7129_v43 = vld [vmem:[%s9930_s5 + $0x20c] ss:$16 sps:$4 sm:$0xff]  }
 0x226   :  { %4654 = vmatpush1.bf16.msra.mxu0 %v7034_v12  ;;  %4736 = vmatpush1.bf16.msra.mxu1 %v7037_v44  ;;  %v9307_v12 = vld [vmem:[%s9929_s4] sm:$0xf] }
 0x227   :  { %4655 = vmatprep.subr.bf16.mxu0 %v7042_v45  ;;  %4737 = vmatprep.subr.bf16.mxu1 %v7045_v57  ;;  %v2232_v44 = vrot.slane %v9307_v12, %v8498_v27  ;;  %v2236_v45 = vrot.slane %v9307_v12, %v8506_v29  ;;  %v2244_v57 = vrot.slane %v9307_v12, %v8509_v30 }
 0x22a   :  { %4656 = vmatpush1.bf16.msra.mxu0 %v7040_v46  ;;  %4738 = vmatpush1.bf16.msra.mxu1 %v7043_v47 }
 0x22b   :  { %4657 = vmatprep.subr.bf16.mxu0 %v7048_v48  ;;  %4739 = vmatprep.subr.bf16.mxu1 %v7051_v49 }
 0x22e   :  { %4658 = vmatpush1.bf16.msra.mxu0 %v7046_v23  ;;  %4740 = vmatpush1.bf16.msra.mxu1 %v7049_v50 }
 0x22f   :  { %4659 = vmatprep.subr.bf16.mxu0 %v7054_v51  ;;  %4741 = vmatprep.subr.bf16.mxu1 %v7057_v34 }
 0x232   :  { %4660 = vmatpush1.bf16.msra.mxu0 %v7052_v52  ;;  %4742 = vmatpush1.bf16.msra.mxu1 %v7055_v54 }
 0x233   :  { %4661 = vmatprep.subr.bf16.mxu0 %v7060_v55  ;;  %4743 = vmatprep.subr.bf16.mxu1 %v7063_v56 }
 0x236   :  { %4662 = vmatpush1.bf16.msra.mxu0 %v7058_v58  ;;  %4744 = vmatpush1.bf16.msra.mxu1 %v7061_v59  ;;  %v7124_v58 = vld [vmem:[%s9930_s5 + $0x200] ss:$16 sps:$4 sm:$0xff]   ;;  %v7127_v59 = vld [vmem:[%s9930_s5 + $0x208] ss:$16 sps:$4 sm:$0xff]  }
 0x237   :  { %4663 = vmatprep.subr.bf16.mxu0 %v7066_v60  ;;  %4745 = vmatprep.subr.bf16.mxu1 %v7069_v61  ;;  %v7132_v61 = vld [vmem:[%s9930_s5 + $0x224] ss:$16 sps:$4 sm:$0xff]  }
 0x23a   :  { %4664 = vmatpush1.bf16.msra.mxu0 %v7064_v62  ;;  %4746 = vmatpush1.bf16.msra.mxu1 %v7067_v63  ;;  %v7135_v62 = vld [vmem:[%s9930_s5 + $0x22c] ss:$16 sps:$4 sm:$0xff]  }
 0x23b   :  { %4665 = vmatprep.subr.bf16.mxu0 %v7072_v0  ;;  %4747 = vmatprep.subr.bf16.mxu1 %v7075_v1  ;;  %v7130_v0 = vld [vmem:[%s9930_s5 + $0x220] ss:$16 sps:$4 sm:$0xff]   ;;  %v7133_v1 = vld [vmem:[%s9930_s5 + $0x228] ss:$16 sps:$4 sm:$0xff]  }
 0x23e   :  { %4666 = vmatpush1.bf16.msra.mxu0 %v7070_v2  ;;  %4748 = vmatpush1.bf16.msra.mxu1 %v7073_v3  ;;  %v7138_v2 = vld [vmem:[%s9930_s5 + $0x244] ss:$16 sps:$4 sm:$0xff]   ;;  %v7141_v3 = vld [vmem:[%s9930_s5 + $0x24c] ss:$16 sps:$4 sm:$0xff]  }
 0x23f   :  { %4667 = vmatprep.subr.bf16.mxu0 %v7078_v5  ;;  %4749 = vmatprep.subr.bf16.mxu1 %v7081_v6  ;;  %v7136_v5 = vld [vmem:[%s9930_s5 + $0x240] ss:$16 sps:$4 sm:$0xff]   ;;  %v7139_v6 = vld [vmem:[%s9930_s5 + $0x248] ss:$16 sps:$4 sm:$0xff]  }
 0x242   :  { %4668 = vmatpush1.bf16.msra.mxu0 %v7076_v7  ;;  %4750 = vmatpush1.bf16.msra.mxu1 %v7079_v8  ;;  %v7144_v7 = vld [vmem:[%s9930_s5 + $0x264] ss:$16 sps:$4 sm:$0xff]   ;;  %v7147_v8 = vld [vmem:[%s9930_s5 + $0x26c] ss:$16 sps:$4 sm:$0xff]  }
 0x243   :  { %4669 = vmatprep.subr.bf16.mxu0 %v7084_v9  ;;  %4751 = vmatprep.subr.bf16.mxu1 %v7087_v10  ;;  %v7142_v9 = vld [vmem:[%s9930_s5 + $0x260] ss:$16 sps:$4 sm:$0xff]   ;;  %v7145_v10 = vld [vmem:[%s9930_s5 + $0x268] ss:$16 sps:$4 sm:$0xff]  }
 0x246   :  { %4670 = vmatpush1.bf16.msra.mxu0 %v7082_v11  ;;  %4752 = vmatpush1.bf16.msra.mxu1 %v7085_v13  ;;  %v7150_v11 = vld [vmem:[%s9930_s5 + $0x284] ss:$16 sps:$4 sm:$0xff]   ;;  %v7153_v13 = vld [vmem:[%s9930_s5 + $0x28c] ss:$16 sps:$4 sm:$0xff]  }
 0x247   :  { %4671 = vmatprep.subr.bf16.mxu0 %v7090_v14  ;;  %4753 = vmatprep.subr.bf16.mxu1 %v7093_v16  ;;  %v7148_v14 = vld [vmem:[%s9930_s5 + $0x280] ss:$16 sps:$4 sm:$0xff]   ;;  %v7151_v16 = vld [vmem:[%s9930_s5 + $0x288] ss:$16 sps:$4 sm:$0xff]  }
 0x24a   :  { %4672 = vmatpush1.bf16.msra.mxu0 %v7088_v17  ;;  %4754 = vmatpush1.bf16.msra.mxu1 %v7091_v53  ;;  %v7156_v17 = vld [vmem:[%s9930_s5 + $0x2a4] ss:$16 sps:$4 sm:$0xff]   ;;  %v7159_v53 = vld [vmem:[%s9930_s5 + $0x2ac] ss:$16 sps:$4 sm:$0xff]  }
 0x24b   :  { %4673 = vmatprep.subr.bf16.mxu0 %v7096_v18  ;;  %4755 = vmatprep.subr.bf16.mxu1 %v7099_v19  ;;  %v7154_v18 = vld [vmem:[%s9930_s5 + $0x2a0] ss:$16 sps:$4 sm:$0xff]   ;;  %v7157_v19 = vld [vmem:[%s9930_s5 + $0x2a8] ss:$16 sps:$4 sm:$0xff]  }
 0x24e   :  { %4674 = vmatpush1.bf16.msra.mxu0 %v7094_v20  ;;  %4756 = vmatpush1.bf16.msra.mxu1 %v7097_v26  ;;  %v7162_v20 = vld [vmem:[%s9930_s5 + $0x2c4] ss:$16 sps:$4 sm:$0xff]   ;;  %v7165_v26 = vld [vmem:[%s9930_s5 + $0x2cc] ss:$16 sps:$4 sm:$0xff]  }
 0x24f   :  { %4675 = vmatprep.subr.bf16.mxu0 %v7102_v21  ;;  %4757 = vmatprep.subr.bf16.mxu1 %v7105_v22  ;;  %v7160_v21 = vld [vmem:[%s9930_s5 + $0x2c0] ss:$16 sps:$4 sm:$0xff]   ;;  %v7163_v22 = vld [vmem:[%s9930_s5 + $0x2c8] ss:$16 sps:$4 sm:$0xff]  }
 0x252   :  { %4676 = vmatpush1.bf16.msra.mxu0 %v7100_v25  ;;  %4758 = vmatpush1.bf16.msra.mxu1 %v7103_v15  ;;  %v7168_v25 = vld [vmem:[%s9930_s5 + $0x2e4] ss:$16 sps:$4 sm:$0xff]   ;;  %v7171_v15 = vld [vmem:[%s9930_s5 + $0x2ec] ss:$16 sps:$4 sm:$0xff]  }
 0x253   :  { %4677 = vmatprep.subr.bf16.mxu0 %v7108_v28  ;;  %4759 = vmatprep.subr.bf16.mxu1 %v7111_v31  ;;  %v7166_v28 = vld [vmem:[%s9930_s5 + $0x2e0] ss:$16 sps:$4 sm:$0xff]   ;;  %v7169_v31 = vld [vmem:[%s9930_s5 + $0x2e8] ss:$16 sps:$4 sm:$0xff]  }
 0x256   :  { %4678 = vmatpush1.bf16.msra.mxu0 %v7106_v24  ;;  %4760 = vmatpush1.bf16.msra.mxu1 %v7109_v32  ;;  %v7174_v24 = vld [vmem:[%s9930_s5 + $0x304] ss:$16 sps:$4 sm:$0xff]   ;;  %v7177_v32 = vld [vmem:[%s9930_s5 + $0x30c] ss:$16 sps:$4 sm:$0xff]  }
 0x257   :  { %4679 = vmatprep.subr.bf16.mxu0 %v7114_v33  ;;  %4761 = vmatprep.subr.bf16.mxu1 %v7117_v4  ;;  %v7172_v33 = vld [vmem:[%s9930_s5 + $0x300] ss:$16 sps:$4 sm:$0xff]   ;;  %v7175_v4 = vld [vmem:[%s9930_s5 + $0x308] ss:$16 sps:$4 sm:$0xff]  }
 0x25a   :  { %4680 = vmatpush1.bf16.msra.mxu0 %v7112_v35  ;;  %4762 = vmatpush1.bf16.msra.mxu1 %v7115_v36  ;;  %v7180_v35 = vld [vmem:[%s9930_s5 + $0x324] ss:$16 sps:$4 sm:$0xff]   ;;  %v7183_v36 = vld [vmem:[%s9930_s5 + $0x32c] ss:$16 sps:$4 sm:$0xff]  }
 0x25b   :  { %4681 = vmatprep.subr.bf16.mxu0 %v7120_v37  ;;  %4763 = vmatprep.subr.bf16.mxu1 %v7123_v38  ;;  %v7178_v37 = vld [vmem:[%s9930_s5 + $0x320] ss:$16 sps:$4 sm:$0xff]   ;;  %v7181_v38 = vld [vmem:[%s9930_s5 + $0x328] ss:$16 sps:$4 sm:$0xff]  }
 0x25e   :  { %4682 = vmatpush1.bf16.msra.mxu0 %v7118_v39  ;;  %4764 = vmatpush1.bf16.msra.mxu1 %v7121_v40  ;;  %v7186_v39 = vld [vmem:[%s9930_s5 + $0x344] ss:$16 sps:$4 sm:$0xff]   ;;  %v7189_v40 = vld [vmem:[%s9930_s5 + $0x34c] ss:$16 sps:$4 sm:$0xff]  }
 0x25f   :  { %4692 = vmatprep.subr.bf16.mxu0 %v7126_v42  ;;  %4774 = vmatprep.subr.bf16.mxu1 %v7129_v43  ;;  %v7184_v42 = vld [vmem:[%s9930_s5 + $0x340] ss:$16 sps:$4 sm:$0xff]   ;;  %v7187_v43 = vld [vmem:[%s9930_s5 + $0x348] ss:$16 sps:$4 sm:$0xff]  }
 0x2f4   :  { %v3686_v46 = vpop.f32.mrb[8].mxu0  ;;  %v9315_v47 = vpop.f32.mrb[8].mxu1 }
 0x2f5   :  { %v6571_v48 = vadd.f32 %v3686_v46, %v2232_v44  ;;  %v3688_v49 = vpop.f32.mrb[9].mxu0  ;;  %v3852_v23 = vpop.f32.mrb[9].mxu1  ;;  %v7192_v44 = vld [vmem:[%s9930_s5 + $0x364] ss:$16 sps:$4 sm:$0xff]   ;;  %v7193_v46 = vld [vmem:[%s9930_s5 + $0x368] ss:$16 sps:$4 sm:$0xff]  }
 0x2f6   :  { %v6572_v50 = vadd.f32 %v3688_v49, %v2236_v45  ;;  %v3690_v51 = vpop.f32.mrb[10].mxu0  ;;  %v3854_v34 = vpop.f32.mrb[10].mxu1  ;;  %v6574_v52 = vadd.f32 %v3852_v23, %v2244_v57  ;;  %v7195_v45 = vld [vmem:[%s9930_s5 + $0x36c] ss:$16 sps:$4 sm:$0xff]   ;;  %v7190_v57 = vld [vmem:[%s9930_s5 + $0x360] ss:$16 sps:$4 sm:$0xff]  }
 0x2f7   :  { %v3691_v54 = vpop.f32.mrb[11].mxu0  ;;  %v3855_v55 = vpop.f32.mrb[11].mxu1  ;;  %v3857_v60 = vpack.c.bf16 %v6571_v48, %v6571_v48  ;;  %v7198_v48 = vld [vmem:[%s9930_s5 + $0x384] ss:$16 sps:$4 sm:$0xff]   ;;  %v7201_v49 = vld [vmem:[%s9930_s5 + $0x38c] ss:$16 sps:$4 sm:$0xff]  }
 0x2f8   :  { %v3858_v56 = vpack.c.bf16 %v6572_v50, %v6572_v50  ;;  %v3860_v63 = vpack.c.bf16 %v6574_v52, %v6574_v52  ;;  %v7196_v23 = vld [vmem:[%s9930_s5 + $0x380] ss:$16 sps:$4 sm:$0xff]   ;;  %v7199_v50 = vld [vmem:[%s9930_s5 + $0x388] ss:$16 sps:$4 sm:$0xff]   ;;  %v7204_v51 = vld [vmem:[%s9930_s5 + $0x3a4] ss:$16 sps:$4 sm:$0xff]  }
 0x2f9   :  { %v7207_v34 = vld [vmem:[%s9930_s5 + $0x3ac] ss:$16 sps:$4 sm:$0xff]   ;;  %v7202_v52 = vld [vmem:[%s9930_s5 + $0x3a0] ss:$16 sps:$4 sm:$0xff]   ;;  %v7205_v54 = vld [vmem:[%s9930_s5 + $0x3a8] ss:$16 sps:$4 sm:$0xff]  }
 0x2fa   :  { %4683 = vmatprep.mubr.bf16.mxu0 %v3858_v56  ;;  %4765 = vmatprep.mubr.bf16.mxu1 %v3858_v56  ;;  %v7210_v55 = vld [vmem:[%s9930_s5 + $0x3c4] ss:$16 sps:$4 sm:$0xff]   ;;  %v7213_v56 = vld [vmem:[%s9930_s5 + $0x3cc] ss:$16 sps:$4 sm:$0xff]  }
 0x2fb   :  { %4684 = vmatmul.mubr.bf16.vlgmr.msra.gmra.mrb[12].mxu0 %v3857_v60  ;;  %4766 = vmatmul.mubr.bf16.vlgmr.msra.gmra.mrb[12].mxu1 %v3857_v60  ;;  %v2240_v60 = vrot.slane %v9307_v12, %v8670_v41  ;;  %v7217_v12 = vld [vmem:[%s9930_s5 + $0x3e8] ss:$16 sps:$4 sm:$0xff]  }
 0x2fc   :  { %4693 = vmatpush1.bf16.msra.mxu0 %v7124_v58  ;;  %4775 = vmatpush1.bf16.msra.mxu1 %v7127_v59  ;;  %v7208_v58 = vld [vmem:[%s9930_s5 + $0x3c0] ss:$16 sps:$4 sm:$0xff]   ;;  %v7211_v59 = vld [vmem:[%s9930_s5 + $0x3c8] ss:$16 sps:$4 sm:$0xff]  }
 0x2fd   :  { %4724 = vmatprep.mubr.bf16.mxu0 %v3860_v63  ;;  %4806 = vmatprep.mubr.bf16.mxu1 %v3860_v63  ;;  %v7214_v63 = vld [vmem:[%s9930_s5 + $0x3e0] ss:$16 sps:$4 sm:$0xff]  }
 0x2fe   :  { %4694 = vmatprep.subr.bf16.mxu0 %v7132_v61  ;;  %4776 = vmatprep.subr.bf16.mxu1 %v7135_v62  ;;  %v7216_v61 = vld [vmem:[%s9930_s5 + $0x3e4] ss:$16 sps:$4 sm:$0xff]   ;;  %v7219_v62 = vld [vmem:[%s9930_s5 + $0x3ec] ss:$16 sps:$4 sm:$0xff]  }
 0x300   :  { %4695 = vmatpush1.bf16.msra.mxu0 %v7130_v0  ;;  %4777 = vmatpush1.bf16.msra.mxu1 %v7133_v1  ;;  %v6573_v0 = vadd.f32 %v9315_v47, %v2240_v60  ;;  %v7222_v1 = vld [vmem:[%s9932_s7 + $0x4] ss:$16 sps:$4 sm:$0xff]   ;;  %v7223_v47 = vld [vmem:[%s9932_s7 + $0x8] ss:$16 sps:$4 sm:$0xff]   ;;  %v7303_v60 = vld [vmem:[%s9932_s7 + $0x1ac] ss:$16 sps:$4 sm:$0xff]  }
 0x301   :  { %4696 = vmatprep.subr.bf16.mxu0 %v7138_v2  ;;  %4778 = vmatprep.subr.bf16.mxu1 %v7141_v3  ;;  %v7225_v2 = vld [vmem:[%s9932_s7 + $0xc] ss:$16 sps:$4 sm:$0xff]   ;;  %v7220_v3 = vld [vmem:[%s9932_s7] ss:$16 sps:$4 sm:$0xff]  }
 0x304   :  { %4697 = vmatpush1.bf16.msra.mxu0 %v7136_v5  ;;  %4779 = vmatpush1.bf16.msra.mxu1 %v7139_v6  ;;  %v3859_v5 = vpack.c.bf16 %v6573_v0, %v6573_v0  ;;  %v7228_v6 = vld [vmem:[%s9932_s7 + $0x24] ss:$16 sps:$4 sm:$0xff]   ;;  %v7304_v0 = vld [vmem:[%s9932_s7 + $0x1c0] ss:$16 sps:$4 sm:$0xff]  }
 0x305   :  { %4698 = vmatprep.subr.bf16.mxu0 %v7144_v7  ;;  %4780 = vmatprep.subr.bf16.mxu1 %v7147_v8  ;;  %v7231_v7 = vld [vmem:[%s9932_s7 + $0x2c] ss:$16 sps:$4 sm:$0xff]   ;;  %v7226_v8 = vld [vmem:[%s9932_s7 + $0x20] ss:$16 sps:$4 sm:$0xff]  }
 0x308   :  { %4699 = vmatpush1.bf16.msra.mxu0 %v7142_v9  ;;  %4781 = vmatpush1.bf16.msra.mxu1 %v7145_v10  ;;  %v7229_v9 = vld [vmem:[%s9932_s7 + $0x28] ss:$16 sps:$4 sm:$0xff]   ;;  %v7234_v10 = vld [vmem:[%s9932_s7 + $0x44] ss:$16 sps:$4 sm:$0xff]  }
 0x309   :  { %4700 = vmatprep.subr.bf16.mxu0 %v7150_v11  ;;  %4782 = vmatprep.subr.bf16.mxu1 %v7153_v13  ;;  %v7237_v11 = vld [vmem:[%s9932_s7 + $0x4c] ss:$16 sps:$4 sm:$0xff]   ;;  %v7232_v13 = vld [vmem:[%s9932_s7 + $0x40] ss:$16 sps:$4 sm:$0xff]  }
 0x30c   :  { %4701 = vmatpush1.bf16.msra.mxu0 %v7148_v14  ;;  %4783 = vmatpush1.bf16.msra.mxu1 %v7151_v16  ;;  %v7235_v14 = vld [vmem:[%s9932_s7 + $0x48] ss:$16 sps:$4 sm:$0xff]   ;;  %v7240_v16 = vld [vmem:[%s9932_s7 + $0x64] ss:$16 sps:$4 sm:$0xff]  }
 0x30d   :  { %4702 = vmatprep.subr.bf16.mxu0 %v7156_v17  ;;  %4784 = vmatprep.subr.bf16.mxu1 %v7159_v53  ;;  %v7243_v17 = vld [vmem:[%s9932_s7 + $0x6c] ss:$16 sps:$4 sm:$0xff]   ;;  %v7238_v53 = vld [vmem:[%s9932_s7 + $0x60] ss:$16 sps:$4 sm:$0xff]  }
 0x310   :  { %4703 = vmatpush1.bf16.msra.mxu0 %v7154_v18  ;;  %4785 = vmatpush1.bf16.msra.mxu1 %v7157_v19  ;;  %v7241_v18 = vld [vmem:[%s9932_s7 + $0x68] ss:$16 sps:$4 sm:$0xff]   ;;  %v7246_v19 = vld [vmem:[%s9932_s7 + $0x84] ss:$16 sps:$4 sm:$0xff]  }
 0x311   :  { %4704 = vmatprep.subr.bf16.mxu0 %v7162_v20  ;;  %4786 = vmatprep.subr.bf16.mxu1 %v7165_v26  ;;  %v7249_v20 = vld [vmem:[%s9932_s7 + $0x8c] ss:$16 sps:$4 sm:$0xff]   ;;  %v7244_v26 = vld [vmem:[%s9932_s7 + $0x80] ss:$16 sps:$4 sm:$0xff]  }
 0x314   :  { %4705 = vmatpush1.bf16.msra.mxu0 %v7160_v21  ;;  %4787 = vmatpush1.bf16.msra.mxu1 %v7163_v22  ;;  %v7247_v21 = vld [vmem:[%s9932_s7 + $0x88] ss:$16 sps:$4 sm:$0xff]   ;;  %v7252_v22 = vld [vmem:[%s9932_s7 + $0xa4] ss:$16 sps:$4 sm:$0xff]  }
 0x315   :  { %4706 = vmatprep.subr.bf16.mxu0 %v7168_v25  ;;  %4788 = vmatprep.subr.bf16.mxu1 %v7171_v15  ;;  %v7255_v25 = vld [vmem:[%s9932_s7 + $0xac] ss:$16 sps:$4 sm:$0xff]   ;;  %v7250_v15 = vld [vmem:[%s9932_s7 + $0xa0] ss:$16 sps:$4 sm:$0xff]  }
 0x318   :  { %4707 = vmatpush1.bf16.msra.mxu0 %v7166_v28  ;;  %4789 = vmatpush1.bf16.msra.mxu1 %v7169_v31  ;;  %v7253_v28 = vld [vmem:[%s9932_s7 + $0xa8] ss:$16 sps:$4 sm:$0xff]   ;;  %v7258_v31 = vld [vmem:[%s9932_s7 + $0xc4] ss:$16 sps:$4 sm:$0xff]  }
 0x319   :  { %4708 = vmatprep.subr.bf16.mxu0 %v7174_v24  ;;  %4790 = vmatprep.subr.bf16.mxu1 %v7177_v32  ;;  %v7261_v24 = vld [vmem:[%s9932_s7 + $0xcc] ss:$16 sps:$4 sm:$0xff]   ;;  %v7256_v32 = vld [vmem:[%s9932_s7 + $0xc0] ss:$16 sps:$4 sm:$0xff]  }
 0x31c   :  { %4709 = vmatpush1.bf16.msra.mxu0 %v7172_v33  ;;  %4791 = vmatpush1.bf16.msra.mxu1 %v7175_v4  ;;  %v7259_v33 = vld [vmem:[%s9932_s7 + $0xc8] ss:$16 sps:$4 sm:$0xff]   ;;  %v7264_v4 = vld [vmem:[%s9932_s7 + $0xe4] ss:$16 sps:$4 sm:$0xff]  }
 0x31d   :  { %4710 = vmatprep.subr.bf16.mxu0 %v7180_v35  ;;  %4792 = vmatprep.subr.bf16.mxu1 %v7183_v36  ;;  %v7267_v35 = vld [vmem:[%s9932_s7 + $0xec] ss:$16 sps:$4 sm:$0xff]   ;;  %v7262_v36 = vld [vmem:[%s9932_s7 + $0xe0] ss:$16 sps:$4 sm:$0xff]  }
 0x320   :  { %4711 = vmatpush1.bf16.msra.mxu0 %v7178_v37  ;;  %4793 = vmatpush1.bf16.msra.mxu1 %v7181_v38  ;;  %v7265_v37 = vld [vmem:[%s9932_s7 + $0xe8] ss:$16 sps:$4 sm:$0xff]   ;;  %v7270_v38 = vld [vmem:[%s9932_s7 + $0x104] ss:$16 sps:$4 sm:$0xff]  }
 0x321   :  { %4712 = vmatprep.subr.bf16.mxu0 %v7186_v39  ;;  %4794 = vmatprep.subr.bf16.mxu1 %v7189_v40  ;;  %v7273_v39 = vld [vmem:[%s9932_s7 + $0x10c] ss:$16 sps:$4 sm:$0xff]   ;;  %v7268_v40 = vld [vmem:[%s9932_s7 + $0x100] ss:$16 sps:$4 sm:$0xff]  }
 0x324   :  { %4713 = vmatpush1.bf16.msra.mxu0 %v7184_v42  ;;  %4795 = vmatpush1.bf16.msra.mxu1 %v7187_v43  ;;  %v7271_v42 = vld [vmem:[%s9932_s7 + $0x108] ss:$16 sps:$4 sm:$0xff]   ;;  %v7276_v43 = vld [vmem:[%s9932_s7 + $0x124] ss:$16 sps:$4 sm:$0xff]  }
 0x325   :  { %4714 = vmatprep.subr.bf16.mxu0 %v7192_v44  ;;  %4796 = vmatprep.subr.bf16.mxu1 %v7195_v45  ;;  %v7279_v44 = vld [vmem:[%s9932_s7 + $0x12c] ss:$16 sps:$4 sm:$0xff]   ;;  %v7274_v45 = vld [vmem:[%s9932_s7 + $0x120] ss:$16 sps:$4 sm:$0xff]  }
 0x328   :  { %4715 = vmatpush1.bf16.msra.mxu0 %v7190_v57  ;;  %4797 = vmatpush1.bf16.msra.mxu1 %v7193_v46  ;;  %v7277_v57 = vld [vmem:[%s9932_s7 + $0x128] ss:$16 sps:$4 sm:$0xff]   ;;  %v7282_v46 = vld [vmem:[%s9932_s7 + $0x144] ss:$16 sps:$4 sm:$0xff]  }
 0x329   :  { %4716 = vmatprep.subr.bf16.mxu0 %v7198_v48  ;;  %4798 = vmatprep.subr.bf16.mxu1 %v7201_v49  ;;  %v7285_v48 = vld [vmem:[%s9932_s7 + $0x14c] ss:$16 sps:$4 sm:$0xff]   ;;  %v7280_v49 = vld [vmem:[%s9932_s7 + $0x140] ss:$16 sps:$4 sm:$0xff]  }
 0x32c   :  { %4717 = vmatpush1.bf16.msra.mxu0 %v7196_v23  ;;  %4799 = vmatpush1.bf16.msra.mxu1 %v7199_v50  ;;  %v7283_v23 = vld [vmem:[%s9932_s7 + $0x148] ss:$16 sps:$4 sm:$0xff]   ;;  %v7288_v50 = vld [vmem:[%s9932_s7 + $0x164] ss:$16 sps:$4 sm:$0xff]  }
 0x32d   :  { %4718 = vmatprep.subr.bf16.mxu0 %v7204_v51  ;;  %4800 = vmatprep.subr.bf16.mxu1 %v7207_v34  ;;  %v7291_v51 = vld [vmem:[%s9932_s7 + $0x16c] ss:$16 sps:$4 sm:$0xff]   ;;  %v7286_v34 = vld [vmem:[%s9932_s7 + $0x160] ss:$16 sps:$4 sm:$0xff]  }
 0x330   :  { %4719 = vmatpush1.bf16.msra.mxu0 %v7202_v52  ;;  %4801 = vmatpush1.bf16.msra.mxu1 %v7205_v54  ;;  %v7289_v52 = vld [vmem:[%s9932_s7 + $0x168] ss:$16 sps:$4 sm:$0xff]   ;;  %v7294_v54 = vld [vmem:[%s9932_s7 + $0x184] ss:$16 sps:$4 sm:$0xff]  }
 0x331   :  { %4720 = vmatprep.subr.bf16.mxu0 %v7210_v55  ;;  %4802 = vmatprep.subr.bf16.mxu1 %v7213_v56  ;;  %v7297_v55 = vld [vmem:[%s9932_s7 + $0x18c] ss:$16 sps:$4 sm:$0xff]   ;;  %v7292_v56 = vld [vmem:[%s9932_s7 + $0x180] ss:$16 sps:$4 sm:$0xff]  }
 0x334   :  { %4721 = vmatpush1.bf16.msra.mxu0 %v7208_v58  ;;  %4803 = vmatpush1.bf16.msra.mxu1 %v7211_v59  ;;  %v7295_v58 = vld [vmem:[%s9932_s7 + $0x188] ss:$16 sps:$4 sm:$0xff]   ;;  %v7300_v59 = vld [vmem:[%s9932_s7 + $0x1a4] ss:$16 sps:$4 sm:$0xff]  }
 0x335   :  { %4722 = vmatprep.subr.bf16.mxu0 %v7216_v61  ;;  %4804 = vmatprep.subr.bf16.mxu1 %v7219_v62  ;;  %v7298_v61 = vld [vmem:[%s9932_s7 + $0x1a0] ss:$16 sps:$4 sm:$0xff]   ;;  %v7301_v62 = vld [vmem:[%s9932_s7 + $0x1a8] ss:$16 sps:$4 sm:$0xff]  }
 0x338   :  { %4723 = vmatpush1.bf16.msra.mxu0 %v7214_v63  ;;  %4805 = vmatpush1.bf16.msra.mxu1 %v7217_v12  ;;  %v7306_v63 = vld [vmem:[%s9932_s7 + $0x1c4] ss:$16 sps:$4 sm:$0xff]   ;;  %v7309_v12 = vld [vmem:[%s9932_s7 + $0x1cc] ss:$16 sps:$4 sm:$0xff]  }
 0x339   :  { %5609 = vmatprep.subr.bf16.mxu0 %v7222_v1  ;;  %5691 = vmatprep.subr.bf16.mxu1 %v7225_v2  ;;  %v7307_v1 = vld [vmem:[%s9932_s7 + $0x1c8] ss:$16 sps:$4 sm:$0xff]   ;;  %v7312_v2 = vld [vmem:[%s9932_s7 + $0x1e4] ss:$16 sps:$4 sm:$0xff]  }
 0x33b   :  { %4725 = vmatmul.mubr.bf16.vlgmr.msra.gmra.mrb[12].mxu0 %v3859_v5  ;;  %4807 = vmatmul.mubr.bf16.vlgmr.msra.gmra.mrb[12].mxu1 %v3859_v5  ;;  %v7313_v5 = vld [vmem:[%s9932_s7 + $0x1e8] ss:$16 sps:$4 sm:$0xff]  }
 0x33c   :  { %5610 = vmatpush1.bf16.msra.mxu0 %v7220_v3  ;;  %5692 = vmatpush1.bf16.msra.mxu1 %v7223_v47  ;;  %v7315_v3 = vld [vmem:[%s9932_s7 + $0x1ec] ss:$16 sps:$4 sm:$0xff]   ;;  %v7310_v47 = vld [vmem:[%s9932_s7 + $0x1e0] ss:$16 sps:$4 sm:$0xff]  }
 0x33d   :  { %5611 = vmatprep.subr.bf16.mxu0 %v7228_v6  ;;  %5693 = vmatprep.subr.bf16.mxu1 %v7231_v7  ;;  %v7318_v6 = vld [vmem:[%s9932_s7 + $0x204] ss:$16 sps:$4 sm:$0xff]   ;;  %v7321_v7 = vld [vmem:[%s9932_s7 + $0x20c] ss:$16 sps:$4 sm:$0xff]  }
 0x340   :  { %5612 = vmatpush1.bf16.msra.mxu0 %v7226_v8  ;;  %5694 = vmatpush1.bf16.msra.mxu1 %v7229_v9  ;;  %v9707_v8 = vld [vmem:[%s9931_s6] sm:$0xf] }
 0x341   :  { %5613 = vmatprep.subr.bf16.mxu0 %v7234_v10  ;;  %5695 = vmatprep.subr.bf16.mxu1 %v7237_v11  ;;  %v3994_v9 = vrot.slane %v9707_v8, %v8498_v27  ;;  %v3998_v10 = vrot.slane %v9707_v8, %v8506_v29  ;;  %v4006_v11 = vrot.slane %v9707_v8, %v8509_v30 }
 0x344   :  { %5614 = vmatpush1.bf16.msra.mxu0 %v7232_v13  ;;  %5696 = vmatpush1.bf16.msra.mxu1 %v7235_v14 }
 0x345   :  { %5615 = vmatprep.subr.bf16.mxu0 %v7240_v16  ;;  %5697 = vmatprep.subr.bf16.mxu1 %v7243_v17 }
 0x348   :  { %5616 = vmatpush1.bf16.msra.mxu0 %v7238_v53  ;;  %5698 = vmatpush1.bf16.msra.mxu1 %v7241_v18 }
 0x349   :  { %5617 = vmatprep.subr.bf16.mxu0 %v7246_v19  ;;  %5699 = vmatprep.subr.bf16.mxu1 %v7249_v20 }
 0x34c   :  { %5618 = vmatpush1.bf16.msra.mxu0 %v7244_v26  ;;  %5700 = vmatpush1.bf16.msra.mxu1 %v7247_v21 }
 0x34d   :  { %5619 = vmatprep.subr.bf16.mxu0 %v7252_v22  ;;  %5701 = vmatprep.subr.bf16.mxu1 %v7255_v25 }
 0x350   :  { %5620 = vmatpush1.bf16.msra.mxu0 %v7250_v15  ;;  %5702 = vmatpush1.bf16.msra.mxu1 %v7253_v28  ;;  %v7316_v15 = vld [vmem:[%s9932_s7 + $0x200] ss:$16 sps:$4 sm:$0xff]   ;;  %v7319_v28 = vld [vmem:[%s9932_s7 + $0x208] ss:$16 sps:$4 sm:$0xff]  }
 0x351   :  { %5621 = vmatprep.subr.bf16.mxu0 %v7258_v31  ;;  %5703 = vmatprep.subr.bf16.mxu1 %v7261_v24  ;;  %v7324_v24 = vld [vmem:[%s9932_s7 + $0x224] ss:$16 sps:$4 sm:$0xff]  }
 0x354   :  { %5622 = vmatpush1.bf16.msra.mxu0 %v7256_v32  ;;  %5704 = vmatpush1.bf16.msra.mxu1 %v7259_v33  ;;  %v7327_v32 = vld [vmem:[%s9932_s7 + $0x22c] ss:$16 sps:$4 sm:$0xff]  }
 0x355   :  { %5623 = vmatprep.subr.bf16.mxu0 %v7264_v4  ;;  %5705 = vmatprep.subr.bf16.mxu1 %v7267_v35  ;;  %v7322_v4 = vld [vmem:[%s9932_s7 + $0x220] ss:$16 sps:$4 sm:$0xff]   ;;  %v7325_v35 = vld [vmem:[%s9932_s7 + $0x228] ss:$16 sps:$4 sm:$0xff]  }
 0x358   :  { %5624 = vmatpush1.bf16.msra.mxu0 %v7262_v36  ;;  %5706 = vmatpush1.bf16.msra.mxu1 %v7265_v37  ;;  %v7330_v36 = vld [vmem:[%s9932_s7 + $0x244] ss:$16 sps:$4 sm:$0xff]   ;;  %v7333_v37 = vld [vmem:[%s9932_s7 + $0x24c] ss:$16 sps:$4 sm:$0xff]  }
 0x359   :  { %5625 = vmatprep.subr.bf16.mxu0 %v7270_v38  ;;  %5707 = vmatprep.subr.bf16.mxu1 %v7273_v39  ;;  %v7328_v38 = vld [vmem:[%s9932_s7 + $0x240] ss:$16 sps:$4 sm:$0xff]   ;;  %v7331_v39 = vld [vmem:[%s9932_s7 + $0x248] ss:$16 sps:$4 sm:$0xff]  }
 0x35c   :  { %5626 = vmatpush1.bf16.msra.mxu0 %v7268_v40  ;;  %5708 = vmatpush1.bf16.msra.mxu1 %v7271_v42  ;;  %v7336_v40 = vld [vmem:[%s9932_s7 + $0x264] ss:$16 sps:$4 sm:$0xff]   ;;  %v7339_v42 = vld [vmem:[%s9932_s7 + $0x26c] ss:$16 sps:$4 sm:$0xff]  }
 0x35d   :  { %5627 = vmatprep.subr.bf16.mxu0 %v7276_v43  ;;  %5709 = vmatprep.subr.bf16.mxu1 %v7279_v44  ;;  %v7334_v43 = vld [vmem:[%s9932_s7 + $0x260] ss:$16 sps:$4 sm:$0xff]   ;;  %v7337_v44 = vld [vmem:[%s9932_s7 + $0x268] ss:$16 sps:$4 sm:$0xff]  }
 0x360   :  { %5628 = vmatpush1.bf16.msra.mxu0 %v7274_v45  ;;  %5710 = vmatpush1.bf16.msra.mxu1 %v7277_v57  ;;  %v7342_v45 = vld [vmem:[%s9932_s7 + $0x284] ss:$16 sps:$4 sm:$0xff]   ;;  %v7345_v57 = vld [vmem:[%s9932_s7 + $0x28c] ss:$16 sps:$4 sm:$0xff]  }
 0x361   :  { %5629 = vmatprep.subr.bf16.mxu0 %v7282_v46  ;;  %5711 = vmatprep.subr.bf16.mxu1 %v7285_v48  ;;  %v7340_v46 = vld [vmem:[%s9932_s7 + $0x280] ss:$16 sps:$4 sm:$0xff]   ;;  %v7343_v48 = vld [vmem:[%s9932_s7 + $0x288] ss:$16 sps:$4 sm:$0xff]  }
 0x364   :  { %5630 = vmatpush1.bf16.msra.mxu0 %v7280_v49  ;;  %5712 = vmatpush1.bf16.msra.mxu1 %v7283_v23  ;;  %v7348_v49 = vld [vmem:[%s9932_s7 + $0x2a4] ss:$16 sps:$4 sm:$0xff]   ;;  %v7351_v23 = vld [vmem:[%s9932_s7 + $0x2ac] ss:$16 sps:$4 sm:$0xff]  }
 0x365   :  { %5631 = vmatprep.subr.bf16.mxu0 %v7288_v50  ;;  %5713 = vmatprep.subr.bf16.mxu1 %v7291_v51  ;;  %v7346_v50 = vld [vmem:[%s9932_s7 + $0x2a0] ss:$16 sps:$4 sm:$0xff]   ;;  %v7349_v51 = vld [vmem:[%s9932_s7 + $0x2a8] ss:$16 sps:$4 sm:$0xff]  }
 0x368   :  { %5632 = vmatpush1.bf16.msra.mxu0 %v7286_v34  ;;  %5714 = vmatpush1.bf16.msra.mxu1 %v7289_v52  ;;  %v7354_v34 = vld [vmem:[%s9932_s7 + $0x2c4] ss:$16 sps:$4 sm:$0xff]   ;;  %v7357_v52 = vld [vmem:[%s9932_s7 + $0x2cc] ss:$16 sps:$4 sm:$0xff]  }
 0x369   :  { %5633 = vmatprep.subr.bf16.mxu0 %v7294_v54  ;;  %5715 = vmatprep.subr.bf16.mxu1 %v7297_v55  ;;  %v7352_v54 = vld [vmem:[%s9932_s7 + $0x2c0] ss:$16 sps:$4 sm:$0xff]   ;;  %v7355_v55 = vld [vmem:[%s9932_s7 + $0x2c8] ss:$16 sps:$4 sm:$0xff]  }
 0x36c   :  { %5634 = vmatpush1.bf16.msra.mxu0 %v7292_v56  ;;  %5716 = vmatpush1.bf16.msra.mxu1 %v7295_v58  ;;  %v7360_v56 = vld [vmem:[%s9932_s7 + $0x2e4] ss:$16 sps:$4 sm:$0xff]   ;;  %v7363_v58 = vld [vmem:[%s9932_s7 + $0x2ec] ss:$16 sps:$4 sm:$0xff]  }
 0x36d   :  { %5635 = vmatprep.subr.bf16.mxu0 %v7300_v59  ;;  %5717 = vmatprep.subr.bf16.mxu1 %v7303_v60  ;;  %v7358_v59 = vld [vmem:[%s9932_s7 + $0x2e0] ss:$16 sps:$4 sm:$0xff]   ;;  %v7361_v60 = vld [vmem:[%s9932_s7 + $0x2e8] ss:$16 sps:$4 sm:$0xff]  }
 0x370   :  { %5636 = vmatpush1.bf16.msra.mxu0 %v7298_v61  ;;  %5718 = vmatpush1.bf16.msra.mxu1 %v7301_v62  ;;  %v7366_v61 = vld [vmem:[%s9932_s7 + $0x304] ss:$16 sps:$4 sm:$0xff]   ;;  %v7369_v62 = vld [vmem:[%s9932_s7 + $0x30c] ss:$16 sps:$4 sm:$0xff]  }
 0x371   :  { %5637 = vmatprep.subr.bf16.mxu0 %v7306_v63  ;;  %5719 = vmatprep.subr.bf16.mxu1 %v7309_v12  ;;  %v7364_v63 = vld [vmem:[%s9932_s7 + $0x300] ss:$16 sps:$4 sm:$0xff]   ;;  %v7367_v12 = vld [vmem:[%s9932_s7 + $0x308] ss:$16 sps:$4 sm:$0xff]  }
 0x374   :  { %5638 = vmatpush1.bf16.msra.mxu0 %v7304_v0  ;;  %5720 = vmatpush1.bf16.msra.mxu1 %v7307_v1  ;;  %v7372_v0 = vld [vmem:[%s9932_s7 + $0x324] ss:$16 sps:$4 sm:$0xff]   ;;  %v7375_v1 = vld [vmem:[%s9932_s7 + $0x32c] ss:$16 sps:$4 sm:$0xff]  }
 0x375   :  { %5639 = vmatprep.subr.bf16.mxu0 %v7312_v2  ;;  %5721 = vmatprep.subr.bf16.mxu1 %v7315_v3  ;;  %v7370_v2 = vld [vmem:[%s9932_s7 + $0x320] ss:$16 sps:$4 sm:$0xff]   ;;  %v7373_v3 = vld [vmem:[%s9932_s7 + $0x328] ss:$16 sps:$4 sm:$0xff]  }
 0x378   :  { %5640 = vmatpush1.bf16.msra.mxu0 %v7310_v47  ;;  %5722 = vmatpush1.bf16.msra.mxu1 %v7313_v5  ;;  %v7378_v47 = vld [vmem:[%s9932_s7 + $0x344] ss:$16 sps:$4 sm:$0xff]   ;;  %v7381_v5 = vld [vmem:[%s9932_s7 + $0x34c] ss:$16 sps:$4 sm:$0xff]  }
 0x379   :  { %5650 = vmatprep.subr.bf16.mxu0 %v7318_v6  ;;  %5732 = vmatprep.subr.bf16.mxu1 %v7321_v7  ;;  %v7376_v6 = vld [vmem:[%s9932_s7 + $0x340] ss:$16 sps:$4 sm:$0xff]   ;;  %v7379_v7 = vld [vmem:[%s9932_s7 + $0x348] ss:$16 sps:$4 sm:$0xff]  }
 0x40e   :  { %v4726_v13 = vpop.f32.mrb[12].mxu0  ;;  %v9715_v14 = vpop.f32.mrb[12].mxu1 }
 0x40f   :  { %v6575_v16 = vadd.f32 %v4726_v13, %v3994_v9  ;;  %v4728_v17 = vpop.f32.mrb[13].mxu0  ;;  %v4810_v53 = vpop.f32.mrb[13].mxu1  ;;  %v7384_v9 = vld [vmem:[%s9932_s7 + $0x364] ss:$16 sps:$4 sm:$0xff]   ;;  %v7385_v13 = vld [vmem:[%s9932_s7 + $0x368] ss:$16 sps:$4 sm:$0xff]  }
 0x410   :  { %v6576_v18 = vadd.f32 %v4728_v17, %v3998_v10  ;;  %v4730_v19 = vpop.f32.mrb[14].mxu0  ;;  %v4812_v20 = vpop.f32.mrb[14].mxu1  ;;  %v6578_v26 = vadd.f32 %v4810_v53, %v4006_v11  ;;  %v7387_v10 = vld [vmem:[%s9932_s7 + $0x36c] ss:$16 sps:$4 sm:$0xff]   ;;  %v7382_v11 = vld [vmem:[%s9932_s7 + $0x360] ss:$16 sps:$4 sm:$0xff]  }
 0x411   :  { %v4731_v21 = vpop.f32.mrb[15].mxu0  ;;  %v4813_v22 = vpop.f32.mrb[15].mxu1  ;;  %v4815_v31 = vpack.c.bf16 %v6575_v16, %v6575_v16  ;;  %v7390_v16 = vld [vmem:[%s9932_s7 + $0x384] ss:$16 sps:$4 sm:$0xff]   ;;  %v7393_v17 = vld [vmem:[%s9932_s7 + $0x38c] ss:$16 sps:$4 sm:$0xff]  }
 0x412   :  { %v4816_v25 = vpack.c.bf16 %v6576_v18, %v6576_v18  ;;  %v4818_v33 = vpack.c.bf16 %v6578_v26, %v6578_v26  ;;  %v7388_v53 = vld [vmem:[%s9932_s7 + $0x380] ss:$16 sps:$4 sm:$0xff]   ;;  %v7391_v18 = vld [vmem:[%s9932_s7 + $0x388] ss:$16 sps:$4 sm:$0xff]   ;;  %v7396_v19 = vld [vmem:[%s9932_s7 + $0x3a4] ss:$16 sps:$4 sm:$0xff]  }
 0x413   :  { %v7399_v20 = vld [vmem:[%s9932_s7 + $0x3ac] ss:$16 sps:$4 sm:$0xff]   ;;  %v7394_v26 = vld [vmem:[%s9932_s7 + $0x3a0] ss:$16 sps:$4 sm:$0xff]   ;;  %v7397_v21 = vld [vmem:[%s9932_s7 + $0x3a8] ss:$16 sps:$4 sm:$0xff]  }
 0x414   :  { %5641 = vmatprep.mubr.bf16.mxu0 %v4816_v25  ;;  %5723 = vmatprep.mubr.bf16.mxu1 %v4816_v25  ;;  %v7402_v22 = vld [vmem:[%s9932_s7 + $0x3c4] ss:$16 sps:$4 sm:$0xff]   ;;  %v7405_v25 = vld [vmem:[%s9932_s7 + $0x3cc] ss:$16 sps:$4 sm:$0xff]  }
 0x415   :  { %5642 = vmatmul.mubr.bf16.vlgmr.msra.gmra.mrb[16].mxu0 %v4815_v31  ;;  %5724 = vmatmul.mubr.bf16.vlgmr.msra.gmra.mrb[16].mxu1 %v4815_v31  ;;  %v4002_v31 = vrot.slane %v9707_v8, %v8670_v41  ;;  %v7409_v8 = vld [vmem:[%s9932_s7 + $0x3e8] ss:$16 sps:$4 sm:$0xff]  }
 0x416   :  { %5651 = vmatpush1.bf16.msra.mxu0 %v7316_v15  ;;  %5733 = vmatpush1.bf16.msra.mxu1 %v7319_v28  ;;  %v7400_v15 = vld [vmem:[%s9932_s7 + $0x3c0] ss:$16 sps:$4 sm:$0xff]   ;;  %v7403_v28 = vld [vmem:[%s9932_s7 + $0x3c8] ss:$16 sps:$4 sm:$0xff]  }
 0x417   :  { %5682 = vmatprep.mubr.bf16.mxu0 %v4818_v33  ;;  %5764 = vmatprep.mubr.bf16.mxu1 %v4818_v33  ;;  %v7406_v33 = vld [vmem:[%s9932_s7 + $0x3e0] ss:$16 sps:$4 sm:$0xff]  }
 0x418   :  { %5652 = vmatprep.subr.bf16.mxu0 %v7324_v24  ;;  %5734 = vmatprep.subr.bf16.mxu1 %v7327_v32  ;;  %v7408_v24 = vld [vmem:[%s9932_s7 + $0x3e4] ss:$16 sps:$4 sm:$0xff]   ;;  %v7411_v32 = vld [vmem:[%s9932_s7 + $0x3ec] ss:$16 sps:$4 sm:$0xff]   ;;  %s7436_s7 = smov [#allocation2]  }
 0x419   :  { %s5783_s27 = sshll.u32 %s7436_s7, 4  ;;  %s5784_s27 = int_to_ptr.vmem [resolvable:$true] %s5783_s27 }
 0x41a   :  { %5653 = vmatpush1.bf16.msra.mxu0 %v7322_v4  ;;  %5735 = vmatpush1.bf16.msra.mxu1 %v7325_v35  ;;  %v6577_v4 = vadd.f32 %v9715_v14, %v4002_v31  ;;  %p7417_p1 = scmp.lt.s32.totalorder %s5784_s27, %s5784_s27 }
 0x41b   :  { %5654 = vmatprep.subr.bf16.mxu0 %v7330_v36  ;;  %5736 = vmatprep.subr.bf16.mxu1 %v7333_v37  ;;  %v4947_v36 = vld [vmem:[%s9933_s8] sm:$0xf]  ;;  %s7412_s8 = scalar_lea.vmem %s5784_s27, 512 }
 0x41c   :  { %v4817_v35 = vpack.c.bf16 %v6577_v4, %v6577_v4  ;;  %v4952_v37 = vrot.slane %v4947_v36, %v8498_v27  ;;  %p7413_p0 = scmp.ne.s32.totalorder %s5784_s27, %s7412_s8  ;;  %p7418_p2 = scmp.lt.s32.totalorder %s7412_s8, %s7412_s8 }
 0x41e   :  { %5655 = vmatpush1.bf16.msra.mxu0 %v7328_v38  ;;  %5737 = vmatpush1.bf16.msra.mxu1 %v7331_v39  ;;  %v4960_v38 = vrot.slane %v4947_v36, %v8670_v41  ;;  %v4956_v39 = vrot.slane %v4947_v36, %v8506_v29  ;;  %p7419_p3 = por %p7418_p2, %p7417_p1 }
 0x41f   :  { %5656 = vmatprep.subr.bf16.mxu0 %v7336_v40  ;;  %5738 = vmatprep.subr.bf16.mxu1 %v7339_v42  ;;  %v4964_v40 = vrot.slane %v4947_v36, %v8509_v30 }
 0x420   :  { %p7420_p4 = pnand %p7419_p3, %p7413_p0 }
 0x422   :  { %5657 = vmatpush1.bf16.msra.mxu0 %v7334_v43  ;;  %5739 = vmatpush1.bf16.msra.mxu1 %v7337_v44 }
 0x423   :  { %5658 = vmatprep.subr.bf16.mxu0 %v7342_v45  ;;  %5740 = vmatprep.subr.bf16.mxu1 %v7345_v57 }
 0x426   :  { %5659 = vmatpush1.bf16.msra.mxu0 %v7340_v46  ;;  %5741 = vmatpush1.bf16.msra.mxu1 %v7343_v48 }
 0x427   :  { %5660 = vmatprep.subr.bf16.mxu0 %v7348_v49  ;;  %5742 = vmatprep.subr.bf16.mxu1 %v7351_v23 }
 0x42a   :  { %5661 = vmatpush1.bf16.msra.mxu0 %v7346_v50  ;;  %5743 = vmatpush1.bf16.msra.mxu1 %v7349_v51 }
 0x42b   :  { %5662 = vmatprep.subr.bf16.mxu0 %v7354_v34  ;;  %5744 = vmatprep.subr.bf16.mxu1 %v7357_v52 }
 0x42e   :  { %5663 = vmatpush1.bf16.msra.mxu0 %v7352_v54  ;;  %5745 = vmatpush1.bf16.msra.mxu1 %v7355_v55 }
 0x42f   :  { %5664 = vmatprep.subr.bf16.mxu0 %v7360_v56  ;;  %5746 = vmatprep.subr.bf16.mxu1 %v7363_v58 }
 0x432   :  { %5665 = vmatpush1.bf16.msra.mxu0 %v7358_v59  ;;  %5747 = vmatpush1.bf16.msra.mxu1 %v7361_v60 }
 0x433   :  { %5666 = vmatprep.subr.bf16.mxu0 %v7366_v61  ;;  %5748 = vmatprep.subr.bf16.mxu1 %v7369_v62 }
 0x436   :  { %5667 = vmatpush1.bf16.msra.mxu0 %v7364_v63  ;;  %5749 = vmatpush1.bf16.msra.mxu1 %v7367_v12 }
 0x437   :  { %5668 = vmatprep.subr.bf16.mxu0 %v7372_v0  ;;  %5750 = vmatprep.subr.bf16.mxu1 %v7375_v1 }
 0x43a   :  { %5669 = vmatpush1.bf16.msra.mxu0 %v7370_v2  ;;  %5751 = vmatpush1.bf16.msra.mxu1 %v7373_v3 }
 0x43b   :  { %5670 = vmatprep.subr.bf16.mxu0 %v7378_v47  ;;  %5752 = vmatprep.subr.bf16.mxu1 %v7381_v5 }
 0x43e   :  { %5671 = vmatpush1.bf16.msra.mxu0 %v7376_v6  ;;  %5753 = vmatpush1.bf16.msra.mxu1 %v7379_v7 }
 0x43f   :  { %5672 = vmatprep.subr.bf16.mxu0 %v7384_v9  ;;  %5754 = vmatprep.subr.bf16.mxu1 %v7387_v10 }
 0x442   :  { %5673 = vmatpush1.bf16.msra.mxu0 %v7382_v11  ;;  %5755 = vmatpush1.bf16.msra.mxu1 %v7385_v13 }
 0x443   :  { %5674 = vmatprep.subr.bf16.mxu0 %v7390_v16  ;;  %5756 = vmatprep.subr.bf16.mxu1 %v7393_v17 }
 0x446   :  { %5675 = vmatpush1.bf16.msra.mxu0 %v7388_v53  ;;  %5757 = vmatpush1.bf16.msra.mxu1 %v7391_v18 }
 0x447   :  { %5676 = vmatprep.subr.bf16.mxu0 %v7396_v19  ;;  %5758 = vmatprep.subr.bf16.mxu1 %v7399_v20 }
 0x44a   :  { %5677 = vmatpush1.bf16.msra.mxu0 %v7394_v26  ;;  %5759 = vmatpush1.bf16.msra.mxu1 %v7397_v21 }
 0x44b   :  { %5678 = vmatprep.subr.bf16.mxu0 %v7402_v22  ;;  %5760 = vmatprep.subr.bf16.mxu1 %v7405_v25 }
 0x44e   :  { %5679 = vmatpush1.bf16.msra.mxu0 %v7400_v15  ;;  %5761 = vmatpush1.bf16.msra.mxu1 %v7403_v28 }
 0x44f   :  { %5680 = vmatprep.subr.bf16.mxu0 %v7408_v24  ;;  %5762 = vmatprep.subr.bf16.mxu1 %v7411_v32 }
 0x452   :  { %5681 = vmatpush1.bf16.msra.mxu0 %v7406_v33  ;;  %5763 = vmatpush1.bf16.msra.mxu1 %v7409_v8 }
 0x455   :  { %5683 = vmatmul.mubr.bf16.vlgmr.msra.gmra.mrb[16].mxu0 %v4817_v35  ;;  %5765 = vmatmul.mubr.bf16.vlgmr.msra.gmra.mrb[16].mxu1 %v4817_v35 }
 0x528   :  { %v5684_v14 = vpop.f32.mrb[16].mxu0  ;;  %v5766_v42 = vpop.f32.mrb[16].mxu1 }
 0x529   :  { %v6579_v43 = vadd.f32 %v5684_v14, %v4952_v37  ;;  %v6581_v44 = vadd.f32 %v5766_v42, %v4960_v38  ;;  %v5686_v45 = vpop.f32.mrb[17].mxu0  ;;  %v5768_v57 = vpop.f32.mrb[17].mxu1 }
 0x52a   :  { %v6580_v46 = vadd.f32 %v5686_v45, %v4956_v39  ;;  %v6582_v48 = vadd.f32 %v5768_v57, %v4964_v40  ;;  %v5688_v49 = vpop.f32.mrb[18].mxu0  ;;  %v5770_v23 = vpop.f32.mrb[18].mxu1 }
 0x52b   :  { %5773 = vst [vmem:[#allocation2] sm:$0xff] %v6579_v43  ;;  %5775 = vst [vmem:[#allocation2 + $0x10] sm:$0xff] %v6581_v44  ;;  %v5689_v27 = vpop.f32.mrb[19].mxu0  ;;  %v5771_v41 = vpop.f32.mrb[19].mxu1 }
 0x52c   :  { %5774 = vst [vmem:[#allocation2 + $0x8] sm:$0xff] %v6580_v46  ;;  %5776 = vst [vmem:[#allocation2 + $0x18] sm:$0xff] %v6582_v48 }
 0x52d   :  { %7423 = shalt.err (!%p7420_p4)
}
 0x52e   :  { %s7424_s30 = scalar_lea.hbm %s9934_s9, 512 }
 0x52f   :  { %p7425_p5 = scmp.ne.s32.totalorder %s9934_s9, %s7424_s30  ;;  %p7428_p6 = scmp.lt.u32.totalorder %s7424_s30, %s9934_s9 }
 0x531   :  { %p7430_p7 = pnand %p7428_p6, %p7425_p5 }
 0x533   :  { %7433 = shalt.err (!%p7430_p7)
}
 0x534   :  { %5786 = dma.vmem_to_hbm [thread:$0]  %s5784_s27, 512, %s9934_s9, [#allocation3]  }
 0x535   :  { %7434 = dma.done.wait [#allocation3], 512  }
 0x536   :  { %7435 = vsyncadd [#allocation3], 4294966784 }
 0x537   :  { %5790 = vsyncpa [#allocation3], 1 }

</bundles_post_ra>
